<compile_context>
chip_gen: v5e
topology: v5e:2x2
jax: 0.10.0
libtpu: 0.0.40
codegen_flags: <defaults>
</compile_context>

<pallas_src>
import functools

import jax
import jax.numpy as jnp
from jax import lax
from jax.experimental import pallas as pl
from jax.experimental.pallas import tpu as pltpu

# ---- synthetic "bert-base-uncased" config, shrunk ----
VOCAB = 64
HIDDEN = 32
N_LAYERS = 2
N_HEADS = 2
HEAD_DIM = HIDDEN // N_HEADS
FFN = 64
SEQ = 8
BATCH = 2
PAD_ID, MASK_ID, CLS_ID, SEP_ID = 0, 1, 2, 3
LN_EPS = 1e-12

VMEM_SPEC = pl.BlockSpec(memory_space=pltpu.MemorySpace.VMEM)
SMEM_SPEC = pl.BlockSpec(memory_space=pltpu.MemorySpace.SMEM)


# ----------------------------- kernel helpers --------------------------------

def _layernorm(h, g, b):
    mu = jnp.mean(h, axis=-1, keepdims=True)
    var = jnp.mean((h - mu) * (h - mu), axis=-1, keepdims=True)
    return (h - mu) * lax.rsqrt(var + LN_EPS) * g + b


def _gelu(x):
    # TODO(synk): tanh-approx GELU; HF bert-base uses the exact erf-based GELU.
    return 0.5 * x * (1.0 + jnp.tanh(0.7978845608028654 *
                                     (x + 0.044715 * x * x * x)))


def _bf16_dot(a, w_bf16):
    # MXU: bf16 operands, f32 accumulation.
    return jnp.dot(a.astype(jnp.bfloat16), w_bf16,
                   preferred_element_type=jnp.float32)


# ------------------------------- Pallas kernel --------------------------------

def _mtb_kernel(x_ref, mask_ref, labels_ref, pos_ref, y_ref,
                emb_g_ref, emb_b_ref,
                wqkv_ref, bqkv_ref, wo_ref, bo_ref,
                ln1g_ref, ln1b_ref,
                w1_ref, b1_ref, w2_ref, b2_ref,
                ln2g_ref, ln2b_ref,
                lm_w_ref, lm_b_ref,
                m_loss_ref, r_loss_ref,
                hid_ref, *, B, L):
    """Both sentences' encoder + LM head + masked CE + MTB head in one body."""
    S = 2 * B                      # sentences (left batch stacked over right batch)
    SL = S * L                     # total token rows

    # additive attention bias from the (S, L) mask, built in-kernel (f32)
    bias = ((1.0 - mask_ref[...]) * -1e9)[:, None, :]            # (S, 1, L)

    # embedding layernorm
    x = _layernorm(x_ref[...], emb_g_ref[...], emb_b_ref[...])   # (SL, H) f32

    scale = 1.0 / (HEAD_DIM ** 0.5)
    for layer in range(N_LAYERS):
        # fused QKV projection: one (H, 3H) bf16 matmul for all 2*B sentences
        qkv = _bf16_dot(x, wqkv_ref[layer]) + bqkv_ref[layer]    # (SL, 3H) f32

        q = qkv[:, 0:HIDDEN].reshape(S, L, HIDDEN).astype(jnp.bfloat16)
        k = qkv[:, HIDDEN:2 * HIDDEN].reshape(S, L, HIDDEN).astype(jnp.bfloat16)
        v = qkv[:, 2 * HIDDEN:3 * HIDDEN].reshape(S, L, HIDDEN).astype(jnp.bfloat16)

        head_ctx = []
        for h in range(N_HEADS):                                 # tiny static loop
            dsl = slice(h * HEAD_DIM, (h + 1) * HEAD_DIM)
            s = jnp.einsum("bqd,bkd->bqk", q[:, :, dsl], k[:, :, dsl],
                           preferred_element_type=jnp.float32) * scale + bias
            m = jnp.max(s, axis=-1, keepdims=True)
            p = jnp.exp(s - m)
            p = p * pl.reciprocal(jnp.sum(p, axis=-1, keepdims=True), approx=True)
            head_ctx.append(
                jnp.einsum("bqk,bkd->bqd", p.astype(jnp.bfloat16), v[:, :, dsl],
                           preferred_element_type=jnp.float32))
        ctx = jnp.concatenate(head_ctx, axis=-1).reshape(SL, HIDDEN)

        attn_out = _bf16_dot(ctx, wo_ref[layer]) + bo_ref[layer]
        x = _layernorm(attn_out + x, ln1g_ref[layer], ln1b_ref[layer])

        hmid = _gelu(_bf16_dot(x, w1_ref[layer]) + b1_ref[layer])
        ff = _bf16_dot(hmid, w2_ref[layer]) + b2_ref[layer]
        x = _layernorm(ff + x, ln2g_ref[layer], ln2b_ref[layer])

    # hidden stays in a VMEM scratch (no HBM round trip) for the entity gather below
    hid_ref[...] = x                                             # (SL, H)

    # ---- LM head + masked-LM cross-entropy, separately for left / right ----
    logits = _bf16_dot(x, lm_w_ref[...]) + lm_b_ref[...]         # (SL, V) f32
    labels = labels_ref[...]                                     # (SL, 1) i32
    mmax = jnp.max(logits, axis=-1, keepdims=True)
    z = logits - mmax
    lse = jnp.log(jnp.sum(jnp.exp(z), axis=-1, keepdims=True))
    vocab_iota = lax.broadcasted_iota(jnp.int32, logits.shape, 1)
    z_y = jnp.sum(jnp.where(vocab_iota == labels, z, 0.0), axis=-1, keepdims=True)
    nll = lse - z_y                                              # (SL, 1)
    valid = (labels != -100).astype(jnp.float32)
    row = lax.broadcasted_iota(jnp.int32, (SL, 1), 0)
    left = (row < B * L).astype(jnp.float32)                     # left-side row mask
    # guard the zero-masked-token case; torch CrossEntropyLoss would yield NaN there.
    l_num = jnp.sum(nll * valid * left, keepdims=True)
    l_den = jnp.maximum(jnp.sum(valid * left, keepdims=True), 1.0)
    r_num = jnp.sum(nll * valid * (1.0 - left), keepdims=True)
    r_den = jnp.maximum(jnp.sum(valid * (1.0 - left), keepdims=True), 1.0)
    m_loss_ref[...] = l_num / l_den + r_num / r_den              # (1, 1)

    # ---- MTB head: entity-pair gather (SMEM scalar positions), sim, BCE ----
    bce_acc = jnp.zeros((1, 1), jnp.float32)
    for b in range(B):
        lph = pos_ref[b]
        lpt = pos_ref[B + b]
        rph = pos_ref[2 * B + b]
        rpt = pos_ref[3 * B + b]
        # hid_ref rows: left sentences [0, B*L), right sentences [B*L, 2*B*L)
        lh = hid_ref[pl.ds(b * L + lph, 1), :]                   # (1, H)
        lt = hid_ref[pl.ds(b * L + lpt, 1), :]
        rh = hid_ref[pl.ds((B + b) * L + rph, 1), :]
        rt = hid_ref[pl.ds((B + b) * L + rpt, 1), :]
        # sum(concat(lh,lt) * concat(rh,rt)) == sum(lh*rh) + sum(lt*rt)
        sim = jnp.sum(lh * rh + lt * rt, axis=-1, keepdims=True)  # (1, 1)
        yb = y_ref[b]
        bce_acc = bce_acc + (jnp.maximum(sim, 0.0) - sim * yb
                             + jnp.log(1.0 + jnp.exp(-jnp.abs(sim))))
    r_loss_ref[...] = bce_acc * (1.0 / B)


# ------------------------------ pallas wrapper ---------------------------------

def mtb_pallas(params, x, mask, labels, pos, y, B, L):
    """x: (2*B*L, H) f32; mask: (2*B, L) f32; labels: (2*B*L, 1) i32;
       pos: (4*B,) i32 (l_ph|l_pt|r_ph|r_pt); y: (B,) f32."""
    weight_order = ["emb_ln_g", "emb_ln_b", "wqkv", "bqkv", "wo", "bo",
                    "ln1_g", "ln1_b", "w1", "b1", "w2", "b2",
                    "ln2_g", "ln2_b", "lm_w", "lm_b"]
    weights = [params[k] for k in weight_order]

    in_specs = ([VMEM_SPEC, VMEM_SPEC, VMEM_SPEC,   # x, mask, labels
                 SMEM_SPEC, SMEM_SPEC]              # pos, y (scalar reads)
                + [VMEM_SPEC] * len(weights))

    return pl.pallas_call(
        functools.partial(_mtb_kernel, B=B, L=L),
        out_shape=(jax.ShapeDtypeStruct((1, 1), jnp.float32),
                   jax.ShapeDtypeStruct((1, 1), jnp.float32)),
        in_specs=in_specs,
        out_specs=(VMEM_SPEC, VMEM_SPEC),
        scratch_shapes=[pltpu.VMEM((2 * B * L, HIDDEN), jnp.float32)],
    )(x, mask, labels, pos, y, *weights)


# ------------------------------ model (glue) ----------------------------------

def init_params(key):
    keys = jax.random.split(key, 3 + 4 * N_LAYERS)
    it = iter(range(len(keys)))

    def nrm(shape):
        return jax.random.normal(keys[next(it)], shape, jnp.float32) * 0.02

    def zeros(shape):
        return jnp.zeros(shape, jnp.float32)

    def ones(shape):
        return jnp.ones(shape, jnp.float32)

    wqkv = jnp.stack([nrm((HIDDEN, 3 * HIDDEN)) for _ in range(N_LAYERS)])
    wo = jnp.stack([nrm((HIDDEN, HIDDEN)) for _ in range(N_LAYERS)])
    w1 = jnp.stack([nrm((HIDDEN, FFN)) for _ in range(N_LAYERS)])
    w2 = jnp.stack([nrm((FFN, HIDDEN)) for _ in range(N_LAYERS)])

    return {
        "word_emb": nrm((VOCAB, HIDDEN)),
        "pos_emb": nrm((SEQ, HIDDEN)),
        "emb_ln_g": ones((1, HIDDEN)), "emb_ln_b": zeros((1, HIDDEN)),
        # dense projection weights in bf16 (MXU bf16-in / f32-accumulate)
        "wqkv": wqkv.astype(jnp.bfloat16), "bqkv": zeros((N_LAYERS, 1, 3 * HIDDEN)),
        "wo": wo.astype(jnp.bfloat16), "bo": zeros((N_LAYERS, 1, HIDDEN)),
        "ln1_g": ones((N_LAYERS, 1, HIDDEN)), "ln1_b": zeros((N_LAYERS, 1, HIDDEN)),
        "w1": w1.astype(jnp.bfloat16), "b1": zeros((N_LAYERS, 1, FFN)),
        "w2": w2.astype(jnp.bfloat16), "b2": zeros((N_LAYERS, 1, HIDDEN)),
        "ln2_g": ones((N_LAYERS, 1, HIDDEN)), "ln2_b": zeros((N_LAYERS, 1, HIDDEN)),
        "lm_w": nrm((HIDDEN, VOCAB)).astype(jnp.bfloat16), "lm_b": zeros((1, VOCAB)),
    }


def mask_tokens_jax(key, inputs, not_mask_pos):
    # deterministic JAX re-implementation of mask_tokens (80/10/10 MLM masking);
    # host-side data prep in the torch code, so it stays in glue.
    # TODO(synk): tokenizer-specific get_special_tokens_mask replaced by "id < 4".
    shape = inputs.shape
    labels = inputs
    prob = jnp.full(shape, 0.15, jnp.float32)
    prob = jnp.where(inputs < 4, 0.0, prob)            # special tokens
    prob = jnp.where(inputs == PAD_ID, 0.0, prob)      # padding
    k1, k2, k3, k4 = jax.random.split(key, 4)
    masked = (jax.random.uniform(k1, shape) < prob) & (~not_mask_pos.astype(bool))
    labels = jnp.where(masked, labels, -100)
    replaced = (jax.random.uniform(k2, shape) < 0.8) & masked
    inputs = jnp.where(replaced, MASK_ID, inputs)
    rnd = (jax.random.uniform(k3, shape) < 0.5) & masked & (~replaced)
    random_words = jax.random.randint(k4, shape, 0, VOCAB, dtype=inputs.dtype)
    inputs = jnp.where(rnd, random_words, inputs)
    return inputs, labels


def mtb_forward(params, l_input, l_mask, l_ph, l_pt,
                r_input, r_mask, r_ph, r_pt, label, rng):
    B, L = l_input.shape
    indice = jnp.arange(B)
    l_nm = jnp.zeros((B, L), jnp.int32).at[indice, l_ph].set(1).at[indice, l_pt].set(1)
    r_nm = jnp.zeros((B, L), jnp.int32).at[indice, r_ph].set(1).at[indice, r_pt].set(1)
    kl, kr = jax.random.split(rng)
    m_l_input, m_l_labels = mask_tokens_jax(kl, l_input, l_nm)
    m_r_input, m_r_labels = mask_tokens_jax(kr, r_input, r_nm)

    # stack left/right along the batch axis -> one kernel pass for both sides
    ids = jnp.concatenate([m_l_input, m_r_input], axis=0)            # (2B, L)
    x = params["word_emb"][ids] + params["pos_emb"][None, :L, :]     # (2B, L, H)
    x = x.reshape(2 * B * L, HIDDEN).astype(jnp.float32)
    mask = jnp.concatenate([l_mask, r_mask], axis=0).astype(jnp.float32)   # (2B, L)
    labels = jnp.concatenate([m_l_labels, m_r_labels], axis=0) \
                .reshape(2 * B * L, 1).astype(jnp.int32)

    pos = jnp.concatenate([l_ph, l_pt, r_ph, r_pt]).astype(jnp.int32)      # (4B,)
    y = label.astype(jnp.float32)                                          # (B,)

    m_loss, r_loss = mtb_pallas(params, x, mask, labels, pos, y, B, L)
    return m_loss[0, 0], r_loss[0, 0]


# --------------------------------- main ----------------------------------------

if __name__ == "__main__":
    root = jax.random.PRNGKey(0)
    kp, kd = jax.random.split(root)
    params = init_params(kp)

    ks = jax.random.split(kd, 8)
    l_input = jax.random.randint(ks[0], (BATCH, SEQ), 4, VOCAB, dtype=jnp.int32)
    r_input = jax.random.randint(ks[1], (BATCH, SEQ), 4, VOCAB, dtype=jnp.int32)
    l_input = l_input.at[:, 0].set(CLS_ID).at[:, -1].set(SEP_ID)
    r_input = r_input.at[:, 0].set(CLS_ID).at[:, -1].set(SEP_ID)
    l_mask = jnp.ones((BATCH, SEQ), jnp.int32)
    r_mask = jnp.ones((BATCH, SEQ), jnp.int32)
    l_ph = jax.random.randint(ks[2], (BATCH,), 1, SEQ - 1, dtype=jnp.int32)
    l_pt = jax.random.randint(ks[3], (BATCH,), 1, SEQ - 1, dtype=jnp.int32)
    r_ph = jax.random.randint(ks[4], (BATCH,), 1, SEQ - 1, dtype=jnp.int32)
    r_pt = jax.random.randint(ks[5], (BATCH,), 1, SEQ - 1, dtype=jnp.int32)
    label = jax.random.randint(ks[6], (BATCH,), 0, 2, dtype=jnp.int32)

    fwd = jax.jit(mtb_forward)
    m_loss, r_loss = fwd(params, l_input, l_mask, l_ph, l_pt,
                         r_input, r_mask, r_ph, r_pt, label, ks[7])
    jax.block_until_ready((m_loss, r_loss))
    assert jnp.isfinite(m_loss) and jnp.isfinite(r_loss)
    print("KERNEL_OK")
</pallas_src>

<mosaic_0001>
module attributes {stable_mosaic.version = 11 : i64} {
  func.func @_mtb_kernel(%arg0: memref<32x32xf32, #tpu.memory_space<vmem>>, %arg1: memref<4x8xf32, #tpu.memory_space<vmem>>, %arg2: memref<32x1xi32, #tpu.memory_space<vmem>>, %arg3: memref<8xi32, #tpu.memory_space<smem>>, %arg4: memref<2xf32, #tpu.memory_space<smem>>, %arg5: memref<1x32xf32, #tpu.memory_space<vmem>>, %arg6: memref<1x32xf32, #tpu.memory_space<vmem>>, %arg7: memref<2x32x96xbf16, #tpu.memory_space<vmem>>, %arg8: memref<2x1x96xf32, #tpu.memory_space<vmem>>, %arg9: memref<2x32x32xbf16, #tpu.memory_space<vmem>>, %arg10: memref<2x1x32xf32, #tpu.memory_space<vmem>>, %arg11: memref<2x1x32xf32, #tpu.memory_space<vmem>>, %arg12: memref<2x1x32xf32, #tpu.memory_space<vmem>>, %arg13: memref<2x32x64xbf16, #tpu.memory_space<vmem>>, %arg14: memref<2x1x64xf32, #tpu.memory_space<vmem>>, %arg15: memref<2x64x32xbf16, #tpu.memory_space<vmem>>, %arg16: memref<2x1x32xf32, #tpu.memory_space<vmem>>, %arg17: memref<2x1x32xf32, #tpu.memory_space<vmem>>, %arg18: memref<2x1x32xf32, #tpu.memory_space<vmem>>, %arg19: memref<32x64xbf16, #tpu.memory_space<vmem>>, %arg20: memref<1x64xf32, #tpu.memory_space<vmem>>, %arg21: memref<1x1xf32, #tpu.memory_space<vmem>>, %arg22: memref<1x1xf32, #tpu.memory_space<vmem>>, %arg23: memref<32x32xf32, #tpu.memory_space<vmem>>) attributes {dimension_semantics = [], scalar_prefetch = 0 : i64, scratch_operands = 1 : i64, tpu.core_type = #tpu.core_type<tc>} {
    %c0 = arith.constant 0 : index
    %c0_0 = arith.constant 0 : index
    %0 = vector.load %arg1[%c0, %c0_0] : memref<4x8xf32, #tpu.memory_space<vmem>>, vector<4x8xf32>
    %cst = arith.constant 1.000000e+00 : f32
    %1 = vector.broadcast %cst : f32 to vector<4x8xf32>
    %2 = arith.subf %1, %0 : vector<4x8xf32>
    %cst_1 = arith.constant -1.000000e+09 : f32
    %3 = vector.broadcast %cst_1 : f32 to vector<4x8xf32>
    %4 = arith.mulf %2, %3 : vector<4x8xf32>
    %5 = vector.shape_cast %4 : vector<4x8xf32> to vector<4x1x8xf32>
    %c0_2 = arith.constant 0 : index
    %c0_3 = arith.constant 0 : index
    %6 = vector.load %arg0[%c0_2, %c0_3] : memref<32x32xf32, #tpu.memory_space<vmem>>, vector<32x32xf32>
    %c0_4 = arith.constant 0 : index
    %c0_5 = arith.constant 0 : index
    %7 = vector.load %arg5[%c0_4, %c0_5] : memref<1x32xf32, #tpu.memory_space<vmem>>, vector<1x32xf32>
    %c0_6 = arith.constant 0 : index
    %c0_7 = arith.constant 0 : index
    %8 = vector.load %arg6[%c0_6, %c0_7] : memref<1x32xf32, #tpu.memory_space<vmem>>, vector<1x32xf32>
    %cst_8 = arith.constant dense<0.000000e+00> : vector<32xf32>
    %9 = vector.multi_reduction <add>, %6, %cst_8 [1] : vector<32x32xf32> to vector<32xf32>
    %10 = vector.shape_cast %9 : vector<32xf32> to vector<32x1xf32>
    %cst_9 = arith.constant 3.200000e+01 : f32
    %11 = vector.broadcast %cst_9 : f32 to vector<32x1xf32>
    %12 = arith.divf %10, %11 : vector<32x1xf32>
    %13 = vector.broadcast %12 : vector<32x1xf32> to vector<32x32xf32>
    %14 = arith.subf %6, %13 : vector<32x32xf32>
    %15 = vector.broadcast %12 : vector<32x1xf32> to vector<32x32xf32>
    %16 = arith.subf %6, %15 : vector<32x32xf32>
    %17 = arith.mulf %14, %16 : vector<32x32xf32>
    %cst_10 = arith.constant dense<0.000000e+00> : vector<32xf32>
    %18 = vector.multi_reduction <add>, %17, %cst_10 [1] : vector<32x32xf32> to vector<32xf32>
    %19 = vector.shape_cast %18 : vector<32xf32> to vector<32x1xf32>
    %cst_11 = arith.constant 3.200000e+01 : f32
    %20 = vector.broadcast %cst_11 : f32 to vector<32x1xf32>
    %21 = arith.divf %19, %20 : vector<32x1xf32>
    %22 = vector.broadcast %12 : vector<32x1xf32> to vector<32x32xf32>
    %23 = arith.subf %6, %22 : vector<32x32xf32>
    %cst_12 = arith.constant 9.99999996E-13 : f32
    %24 = vector.broadcast %cst_12 : f32 to vector<32x1xf32>
    %25 = arith.addf %21, %24 : vector<32x1xf32>
    %26 = math.rsqrt %25 : vector<32x1xf32>
    %27 = vector.broadcast %26 : vector<32x1xf32> to vector<32x32xf32>
    %28 = arith.mulf %23, %27 : vector<32x32xf32>
    %29 = vector.broadcast %7 : vector<1x32xf32> to vector<32x32xf32>
    %30 = arith.mulf %28, %29 : vector<32x32xf32>
    %31 = vector.broadcast %8 : vector<1x32xf32> to vector<32x32xf32>
    %32 = arith.addf %30, %31 : vector<32x32xf32>
    %c0_13 = arith.constant 0 : index
    %c0_14 = arith.constant 0 : index
    %c0_15 = arith.constant 0 : index
    %33 = vector.load %arg7[%c0_13, %c0_14, %c0_15] : memref<2x32x96xbf16, #tpu.memory_space<vmem>>, vector<1x32x96xbf16>
    %34 = vector.shape_cast %33 : vector<1x32x96xbf16> to vector<32x96xbf16>
    %35 = arith.truncf %32 : vector<32x32xf32> to vector<32x32xbf16>
    %cst_16 = arith.constant dense<0.000000e+00> : vector<32x96xf32>
    %36 = tpu.matmul %35, %34, %cst_16 {dimension_numbers = #tpu.dot_dimension_numbers<[1], [0], [0], [1], [0, 0, 1, 1], [], []>} : vector<32x32xbf16>, vector<32x96xbf16>, vector<32x96xf32> -> vector<32x96xf32>
    %c0_17 = arith.constant 0 : index
    %c0_18 = arith.constant 0 : index
    %c0_19 = arith.constant 0 : index
    %37 = vector.load %arg8[%c0_17, %c0_18, %c0_19] : memref<2x1x96xf32, #tpu.memory_space<vmem>>, vector<1x1x96xf32>
    %38 = vector.shape_cast %37 : vector<1x1x96xf32> to vector<1x96xf32>
    %39 = vector.broadcast %38 : vector<1x96xf32> to vector<32x96xf32>
    %40 = arith.addf %36, %39 : vector<32x96xf32>
    %41 = vector.extract_strided_slice %40 {offsets = [0, 0], sizes = [32, 32], strides = [1, 1]} : vector<32x96xf32> to vector<32x32xf32>
    %42 = vector.shape_cast %41 : vector<32x32xf32> to vector<4x8x32xf32>
    %43 = arith.truncf %42 : vector<4x8x32xf32> to vector<4x8x32xbf16>
    %44 = vector.extract_strided_slice %40 {offsets = [0, 32], sizes = [32, 32], strides = [1, 1]} : vector<32x96xf32> to vector<32x32xf32>
    %45 = vector.shape_cast %44 : vector<32x32xf32> to vector<4x8x32xf32>
    %46 = arith.truncf %45 : vector<4x8x32xf32> to vector<4x8x32xbf16>
    %47 = vector.extract_strided_slice %40 {offsets = [0, 64], sizes = [32, 32], strides = [1, 1]} : vector<32x96xf32> to vector<32x32xf32>
    %48 = vector.shape_cast %47 : vector<32x32xf32> to vector<4x8x32xf32>
    %49 = arith.truncf %48 : vector<4x8x32xf32> to vector<4x8x32xbf16>
    %50 = vector.extract_strided_slice %43 {offsets = [0, 0, 0], sizes = [4, 8, 16], strides = [1, 1, 1]} : vector<4x8x32xbf16> to vector<4x8x16xbf16>
    %51 = vector.extract_strided_slice %46 {offsets = [0, 0, 0], sizes = [4, 8, 16], strides = [1, 1, 1]} : vector<4x8x32xbf16> to vector<4x8x16xbf16>
    "tpu.trace_start"() <{level = 10 : i32, message = "bqd,bkd->bqk"}> : () -> ()
    %cst_20 = arith.constant dense<0.000000e+00> : vector<4x8x8xf32>
    %52 = tpu.matmul %50, %51, %cst_20 {dimension_numbers = #tpu.dot_dimension_numbers<[2], [2], [1], [1], [0, 0, 0, 1, 1, 1], [0], [0]>} : vector<4x8x16xbf16>, vector<4x8x16xbf16>, vector<4x8x8xf32> -> vector<4x8x8xf32>
    "tpu.trace_stop"() : () -> ()
    %cst_21 = arith.constant 2.500000e-01 : f32
    %53 = vector.broadcast %cst_21 : f32 to vector<4x8x8xf32>
    %54 = arith.mulf %52, %53 : vector<4x8x8xf32>
    %55 = vector.broadcast %5 : vector<4x1x8xf32> to vector<4x8x8xf32>
    %56 = arith.addf %54, %55 : vector<4x8x8xf32>
    %cst_22 = arith.constant dense<0xFF800000> : vector<4x8xf32>
    %57 = vector.multi_reduction <maximumf>, %56, %cst_22 [2] : vector<4x8x8xf32> to vector<4x8xf32>
    %58 = vector.shape_cast %57 : vector<4x8xf32> to vector<4x8x1xf32>
    %59 = vector.broadcast %58 : vector<4x8x1xf32> to vector<4x8x8xf32>
    %60 = arith.subf %56, %59 : vector<4x8x8xf32>
    %61 = math.exp %60 : vector<4x8x8xf32>
    %cst_23 = arith.constant dense<0.000000e+00> : vector<4x8xf32>
    %62 = vector.multi_reduction <add>, %61, %cst_23 [2] : vector<4x8x8xf32> to vector<4x8xf32>
    %63 = vector.shape_cast %62 : vector<4x8xf32> to vector<4x8x1xf32>
    %64 = tpu.reciprocal %63 {approx = true} : vector<4x8x1xf32> -> vector<4x8x1xf32>
    %65 = vector.broadcast %64 : vector<4x8x1xf32> to vector<4x8x8xf32>
    %66 = arith.mulf %61, %65 : vector<4x8x8xf32>
    %67 = arith.truncf %66 : vector<4x8x8xf32> to vector<4x8x8xbf16>
    %68 = vector.extract_strided_slice %49 {offsets = [0, 0, 0], sizes = [4, 8, 16], strides = [1, 1, 1]} : vector<4x8x32xbf16> to vector<4x8x16xbf16>
    "tpu.trace_start"() <{level = 10 : i32, message = "bqk,bkd->bqd"}> : () -> ()
    %cst_24 = arith.constant dense<0.000000e+00> : vector<4x8x16xf32>
    %69 = tpu.matmul %67, %68, %cst_24 {dimension_numbers = #tpu.dot_dimension_numbers<[2], [1], [1], [2], [0, 0, 0, 1, 1, 2], [0], [0]>} : vector<4x8x8xbf16>, vector<4x8x16xbf16>, vector<4x8x16xf32> -> vector<4x8x16xf32>
    "tpu.trace_stop"() : () -> ()
    %70 = vector.extract_strided_slice %43 {offsets = [0, 0, 16], sizes = [4, 8, 16], strides = [1, 1, 1]} : vector<4x8x32xbf16> to vector<4x8x16xbf16>
    %71 = vector.extract_strided_slice %46 {offsets = [0, 0, 16], sizes = [4, 8, 16], strides = [1, 1, 1]} : vector<4x8x32xbf16> to vector<4x8x16xbf16>
    "tpu.trace_start"() <{level = 10 : i32, message = "bqd,bkd->bqk"}> : () -> ()
    %cst_25 = arith.constant dense<0.000000e+00> : vector<4x8x8xf32>
    %72 = tpu.matmul %70, %71, %cst_25 {dimension_numbers = #tpu.dot_dimension_numbers<[2], [2], [1], [1], [0, 0, 0, 1, 1, 1], [0], [0]>} : vector<4x8x16xbf16>, vector<4x8x16xbf16>, vector<4x8x8xf32> -> vector<4x8x8xf32>
    "tpu.trace_stop"() : () -> ()
    %cst_26 = arith.constant 2.500000e-01 : f32
    %73 = vector.broadcast %cst_26 : f32 to vector<4x8x8xf32>
    %74 = arith.mulf %72, %73 : vector<4x8x8xf32>
    %75 = vector.broadcast %5 : vector<4x1x8xf32> to vector<4x8x8xf32>
    %76 = arith.addf %74, %75 : vector<4x8x8xf32>
    %cst_27 = arith.constant dense<0xFF800000> : vector<4x8xf32>
    %77 = vector.multi_reduction <maximumf>, %76, %cst_27 [2] : vector<4x8x8xf32> to vector<4x8xf32>
    %78 = vector.shape_cast %77 : vector<4x8xf32> to vector<4x8x1xf32>
    %79 = vector.broadcast %78 : vector<4x8x1xf32> to vector<4x8x8xf32>
    %80 = arith.subf %76, %79 : vector<4x8x8xf32>
    %81 = math.exp %80 : vector<4x8x8xf32>
    %cst_28 = arith.constant dense<0.000000e+00> : vector<4x8xf32>
    %82 = vector.multi_reduction <add>, %81, %cst_28 [2] : vector<4x8x8xf32> to vector<4x8xf32>
    %83 = vector.shape_cast %82 : vector<4x8xf32> to vector<4x8x1xf32>
    %84 = tpu.reciprocal %83 {approx = true} : vector<4x8x1xf32> -> vector<4x8x1xf32>
    %85 = vector.broadcast %84 : vector<4x8x1xf32> to vector<4x8x8xf32>
    %86 = arith.mulf %81, %85 : vector<4x8x8xf32>
    %87 = arith.truncf %86 : vector<4x8x8xf32> to vector<4x8x8xbf16>
    %88 = vector.extract_strided_slice %49 {offsets = [0, 0, 16], sizes = [4, 8, 16], strides = [1, 1, 1]} : vector<4x8x32xbf16> to vector<4x8x16xbf16>
    "tpu.trace_start"() <{level = 10 : i32, message = "bqk,bkd->bqd"}> : () -> ()
    %cst_29 = arith.constant dense<0.000000e+00> : vector<4x8x16xf32>
    %89 = tpu.matmul %87, %88, %cst_29 {dimension_numbers = #tpu.dot_dimension_numbers<[2], [1], [1], [2], [0, 0, 0, 1, 1, 2], [0], [0]>} : vector<4x8x8xbf16>, vector<4x8x16xbf16>, vector<4x8x16xf32> -> vector<4x8x16xf32>
    "tpu.trace_stop"() : () -> ()
    %90 = tpu.concatenate %69, %89 in 2 : vector<4x8x16xf32>, vector<4x8x16xf32> -> vector<4x8x32xf32>
    %91 = vector.shape_cast %90 : vector<4x8x32xf32> to vector<32x32xf32>
    %c0_30 = arith.constant 0 : index
    %c0_31 = arith.constant 0 : index
    %c0_32 = arith.constant 0 : index
    %92 = vector.load %arg9[%c0_30, %c0_31, %c0_32] : memref<2x32x32xbf16, #tpu.memory_space<vmem>>, vector<1x32x32xbf16>
    %93 = vector.shape_cast %92 : vector<1x32x32xbf16> to vector<32x32xbf16>
    %94 = arith.truncf %91 : vector<32x32xf32> to vector<32x32xbf16>
    %cst_33 = arith.constant dense<0.000000e+00> : vector<32x32xf32>
    %95 = tpu.matmul %94, %93, %cst_33 {dimension_numbers = #tpu.dot_dimension_numbers<[1], [0], [0], [1], [0, 0, 1, 1], [], []>} : vector<32x32xbf16>, vector<32x32xbf16>, vector<32x32xf32> -> vector<32x32xf32>
    %c0_34 = arith.constant 0 : index
    %c0_35 = arith.constant 0 : index
    %c0_36 = arith.constant 0 : index
    %96 = vector.load %arg10[%c0_34, %c0_35, %c0_36] : memref<2x1x32xf32, #tpu.memory_space<vmem>>, vector<1x1x32xf32>
    %97 = vector.shape_cast %96 : vector<1x1x32xf32> to vector<1x32xf32>
    %98 = vector.broadcast %97 : vector<1x32xf32> to vector<32x32xf32>
    %99 = arith.addf %95, %98 : vector<32x32xf32>
    %100 = arith.addf %99, %32 : vector<32x32xf32>
    %c0_37 = arith.constant 0 : index
    %c0_38 = arith.constant 0 : index
    %c0_39 = arith.constant 0 : index
    %101 = vector.load %arg11[%c0_37, %c0_38, %c0_39] : memref<2x1x32xf32, #tpu.memory_space<vmem>>, vector<1x1x32xf32>
    %102 = vector.shape_cast %101 : vector<1x1x32xf32> to vector<1x32xf32>
    %c0_40 = arith.constant 0 : index
    %c0_41 = arith.constant 0 : index
    %c0_42 = arith.constant 0 : index
    %103 = vector.load %arg12[%c0_40, %c0_41, %c0_42] : memref<2x1x32xf32, #tpu.memory_space<vmem>>, vector<1x1x32xf32>
    %104 = vector.shape_cast %103 : vector<1x1x32xf32> to vector<1x32xf32>
    %cst_43 = arith.constant dense<0.000000e+00> : vector<32xf32>
    %105 = vector.multi_reduction <add>, %100, %cst_43 [1] : vector<32x32xf32> to vector<32xf32>
    %106 = vector.shape_cast %105 : vector<32xf32> to vector<32x1xf32>
    %cst_44 = arith.constant 3.200000e+01 : f32
    %107 = vector.broadcast %cst_44 : f32 to vector<32x1xf32>
    %108 = arith.divf %106, %107 : vector<32x1xf32>
    %109 = vector.broadcast %108 : vector<32x1xf32> to vector<32x32xf32>
    %110 = arith.subf %100, %109 : vector<32x32xf32>
    %111 = vector.broadcast %108 : vector<32x1xf32> to vector<32x32xf32>
    %112 = arith.subf %100, %111 : vector<32x32xf32>
    %113 = arith.mulf %110, %112 : vector<32x32xf32>
    %cst_45 = arith.constant dense<0.000000e+00> : vector<32xf32>
    %114 = vector.multi_reduction <add>, %113, %cst_45 [1] : vector<32x32xf32> to vector<32xf32>
    %115 = vector.shape_cast %114 : vector<32xf32> to vector<32x1xf32>
    %cst_46 = arith.constant 3.200000e+01 : f32
    %116 = vector.broadcast %cst_46 : f32 to vector<32x1xf32>
    %117 = arith.divf %115, %116 : vector<32x1xf32>
    %118 = vector.broadcast %108 : vector<32x1xf32> to vector<32x32xf32>
    %119 = arith.subf %100, %118 : vector<32x32xf32>
    %cst_47 = arith.constant 9.99999996E-13 : f32
    %120 = vector.broadcast %cst_47 : f32 to vector<32x1xf32>
    %121 = arith.addf %117, %120 : vector<32x1xf32>
    %122 = math.rsqrt %121 : vector<32x1xf32>
    %123 = vector.broadcast %122 : vector<32x1xf32> to vector<32x32xf32>
    %124 = arith.mulf %119, %123 : vector<32x32xf32>
    %125 = vector.broadcast %102 : vector<1x32xf32> to vector<32x32xf32>
    %126 = arith.mulf %124, %125 : vector<32x32xf32>
    %127 = vector.broadcast %104 : vector<1x32xf32> to vector<32x32xf32>
    %128 = arith.addf %126, %127 : vector<32x32xf32>
    %c0_48 = arith.constant 0 : index
    %c0_49 = arith.constant 0 : index
    %c0_50 = arith.constant 0 : index
    %129 = vector.load %arg13[%c0_48, %c0_49, %c0_50] : memref<2x32x64xbf16, #tpu.memory_space<vmem>>, vector<1x32x64xbf16>
    %130 = vector.shape_cast %129 : vector<1x32x64xbf16> to vector<32x64xbf16>
    %131 = arith.truncf %128 : vector<32x32xf32> to vector<32x32xbf16>
    %cst_51 = arith.constant dense<0.000000e+00> : vector<32x64xf32>
    %132 = tpu.matmul %131, %130, %cst_51 {dimension_numbers = #tpu.dot_dimension_numbers<[1], [0], [0], [1], [0, 0, 1, 1], [], []>} : vector<32x32xbf16>, vector<32x64xbf16>, vector<32x64xf32> -> vector<32x64xf32>
    %c0_52 = arith.constant 0 : index
    %c0_53 = arith.constant 0 : index
    %c0_54 = arith.constant 0 : index
    %133 = vector.load %arg14[%c0_52, %c0_53, %c0_54] : memref<2x1x64xf32, #tpu.memory_space<vmem>>, vector<1x1x64xf32>
    %134 = vector.shape_cast %133 : vector<1x1x64xf32> to vector<1x64xf32>
    %135 = vector.broadcast %134 : vector<1x64xf32> to vector<32x64xf32>
    %136 = arith.addf %132, %135 : vector<32x64xf32>
    %cst_55 = arith.constant 5.000000e-01 : f32
    %137 = vector.broadcast %cst_55 : f32 to vector<32x64xf32>
    %138 = arith.mulf %137, %136 : vector<32x64xf32>
    %cst_56 = arith.constant 4.471500e-02 : f32
    %139 = vector.broadcast %cst_56 : f32 to vector<32x64xf32>
    %140 = arith.mulf %139, %136 : vector<32x64xf32>
    %141 = arith.mulf %140, %136 : vector<32x64xf32>
    %142 = arith.mulf %141, %136 : vector<32x64xf32>
    %143 = arith.addf %136, %142 : vector<32x64xf32>
    %cst_57 = arith.constant 0.797884583 : f32
    %144 = vector.broadcast %cst_57 : f32 to vector<32x64xf32>
    %145 = arith.mulf %144, %143 : vector<32x64xf32>
    %146 = math.tanh %145 : vector<32x64xf32>
    %cst_58 = arith.constant 1.000000e+00 : f32
    %147 = vector.broadcast %cst_58 : f32 to vector<32x64xf32>
    %148 = arith.addf %147, %146 : vector<32x64xf32>
    %149 = arith.mulf %138, %148 : vector<32x64xf32>
    %c0_59 = arith.constant 0 : index
    %c0_60 = arith.constant 0 : index
    %c0_61 = arith.constant 0 : index
    %150 = vector.load %arg15[%c0_59, %c0_60, %c0_61] : memref<2x64x32xbf16, #tpu.memory_space<vmem>>, vector<1x64x32xbf16>
    %151 = vector.shape_cast %150 : vector<1x64x32xbf16> to vector<64x32xbf16>
    %152 = arith.truncf %149 : vector<32x64xf32> to vector<32x64xbf16>
    %cst_62 = arith.constant dense<0.000000e+00> : vector<32x32xf32>
    %153 = tpu.matmul %152, %151, %cst_62 {dimension_numbers = #tpu.dot_dimension_numbers<[1], [0], [0], [1], [0, 0, 1, 1], [], []>} : vector<32x64xbf16>, vector<64x32xbf16>, vector<32x32xf32> -> vector<32x32xf32>
    %c0_63 = arith.constant 0 : index
    %c0_64 = arith.constant 0 : index
    %c0_65 = arith.constant 0 : index
    %154 = vector.load %arg16[%c0_63, %c0_64, %c0_65] : memref<2x1x32xf32, #tpu.memory_space<vmem>>, vector<1x1x32xf32>
    %155 = vector.shape_cast %154 : vector<1x1x32xf32> to vector<1x32xf32>
    %156 = vector.broadcast %155 : vector<1x32xf32> to vector<32x32xf32>
    %157 = arith.addf %153, %156 : vector<32x32xf32>
    %158 = arith.addf %157, %128 : vector<32x32xf32>
    %c0_66 = arith.constant 0 : index
    %c0_67 = arith.constant 0 : index
    %c0_68 = arith.constant 0 : index
    %159 = vector.load %arg17[%c0_66, %c0_67, %c0_68] : memref<2x1x32xf32, #tpu.memory_space<vmem>>, vector<1x1x32xf32>
    %160 = vector.shape_cast %159 : vector<1x1x32xf32> to vector<1x32xf32>
    %c0_69 = arith.constant 0 : index
    %c0_70 = arith.constant 0 : index
    %c0_71 = arith.constant 0 : index
    %161 = vector.load %arg18[%c0_69, %c0_70, %c0_71] : memref<2x1x32xf32, #tpu.memory_space<vmem>>, vector<1x1x32xf32>
    %162 = vector.shape_cast %161 : vector<1x1x32xf32> to vector<1x32xf32>
    %cst_72 = arith.constant dense<0.000000e+00> : vector<32xf32>
    %163 = vector.multi_reduction <add>, %158, %cst_72 [1] : vector<32x32xf32> to vector<32xf32>
    %164 = vector.shape_cast %163 : vector<32xf32> to vector<32x1xf32>
    %cst_73 = arith.constant 3.200000e+01 : f32
    %165 = vector.broadcast %cst_73 : f32 to vector<32x1xf32>
    %166 = arith.divf %164, %165 : vector<32x1xf32>
    %167 = vector.broadcast %166 : vector<32x1xf32> to vector<32x32xf32>
    %168 = arith.subf %158, %167 : vector<32x32xf32>
    %169 = vector.broadcast %166 : vector<32x1xf32> to vector<32x32xf32>
    %170 = arith.subf %158, %169 : vector<32x32xf32>
    %171 = arith.mulf %168, %170 : vector<32x32xf32>
    %cst_74 = arith.constant dense<0.000000e+00> : vector<32xf32>
    %172 = vector.multi_reduction <add>, %171, %cst_74 [1] : vector<32x32xf32> to vector<32xf32>
    %173 = vector.shape_cast %172 : vector<32xf32> to vector<32x1xf32>
    %cst_75 = arith.constant 3.200000e+01 : f32
    %174 = vector.broadcast %cst_75 : f32 to vector<32x1xf32>
    %175 = arith.divf %173, %174 : vector<32x1xf32>
    %176 = vector.broadcast %166 : vector<32x1xf32> to vector<32x32xf32>
    %177 = arith.subf %158, %176 : vector<32x32xf32>
    %cst_76 = arith.constant 9.99999996E-13 : f32
    %178 = vector.broadcast %cst_76 : f32 to vector<32x1xf32>
    %179 = arith.addf %175, %178 : vector<32x1xf32>
    %180 = math.rsqrt %179 : vector<32x1xf32>
    %181 = vector.broadcast %180 : vector<32x1xf32> to vector<32x32xf32>
    %182 = arith.mulf %177, %181 : vector<32x32xf32>
    %183 = vector.broadcast %160 : vector<1x32xf32> to vector<32x32xf32>
    %184 = arith.mulf %182, %183 : vector<32x32xf32>
    %185 = vector.broadcast %162 : vector<1x32xf32> to vector<32x32xf32>
    %186 = arith.addf %184, %185 : vector<32x32xf32>
    %c1 = arith.constant 1 : index
    %c0_77 = arith.constant 0 : index
    %c0_78 = arith.constant 0 : index
    %187 = vector.load %arg7[%c1, %c0_77, %c0_78] : memref<2x32x96xbf16, #tpu.memory_space<vmem>>, vector<1x32x96xbf16>
    %188 = vector.shape_cast %187 : vector<1x32x96xbf16> to vector<32x96xbf16>
    %189 = arith.truncf %186 : vector<32x32xf32> to vector<32x32xbf16>
    %cst_79 = arith.constant dense<0.000000e+00> : vector<32x96xf32>
    %190 = tpu.matmul %189, %188, %cst_79 {dimension_numbers = #tpu.dot_dimension_numbers<[1], [0], [0], [1], [0, 0, 1, 1], [], []>} : vector<32x32xbf16>, vector<32x96xbf16>, vector<32x96xf32> -> vector<32x96xf32>
    %c1_80 = arith.constant 1 : index
    %c0_81 = arith.constant 0 : index
    %c0_82 = arith.constant 0 : index
    %191 = vector.load %arg8[%c1_80, %c0_81, %c0_82] : memref<2x1x96xf32, #tpu.memory_space<vmem>>, vector<1x1x96xf32>
    %192 = vector.shape_cast %191 : vector<1x1x96xf32> to vector<1x96xf32>
    %193 = vector.broadcast %192 : vector<1x96xf32> to vector<32x96xf32>
    %194 = arith.addf %190, %193 : vector<32x96xf32>
    %195 = vector.extract_strided_slice %194 {offsets = [0, 0], sizes = [32, 32], strides = [1, 1]} : vector<32x96xf32> to vector<32x32xf32>
    %196 = vector.shape_cast %195 : vector<32x32xf32> to vector<4x8x32xf32>
    %197 = arith.truncf %196 : vector<4x8x32xf32> to vector<4x8x32xbf16>
    %198 = vector.extract_strided_slice %194 {offsets = [0, 32], sizes = [32, 32], strides = [1, 1]} : vector<32x96xf32> to vector<32x32xf32>
    %199 = vector.shape_cast %198 : vector<32x32xf32> to vector<4x8x32xf32>
    %200 = arith.truncf %199 : vector<4x8x32xf32> to vector<4x8x32xbf16>
    %201 = vector.extract_strided_slice %194 {offsets = [0, 64], sizes = [32, 32], strides = [1, 1]} : vector<32x96xf32> to vector<32x32xf32>
    %202 = vector.shape_cast %201 : vector<32x32xf32> to vector<4x8x32xf32>
    %203 = arith.truncf %202 : vector<4x8x32xf32> to vector<4x8x32xbf16>
    %204 = vector.extract_strided_slice %197 {offsets = [0, 0, 0], sizes = [4, 8, 16], strides = [1, 1, 1]} : vector<4x8x32xbf16> to vector<4x8x16xbf16>
    %205 = vector.extract_strided_slice %200 {offsets = [0, 0, 0], sizes = [4, 8, 16], strides = [1, 1, 1]} : vector<4x8x32xbf16> to vector<4x8x16xbf16>
    "tpu.trace_start"() <{level = 10 : i32, message = "bqd,bkd->bqk"}> : () -> ()
    %cst_83 = arith.constant dense<0.000000e+00> : vector<4x8x8xf32>
    %206 = tpu.matmul %204, %205, %cst_83 {dimension_numbers = #tpu.dot_dimension_numbers<[2], [2], [1], [1], [0, 0, 0, 1, 1, 1], [0], [0]>} : vector<4x8x16xbf16>, vector<4x8x16xbf16>, vector<4x8x8xf32> -> vector<4x8x8xf32>
    "tpu.trace_stop"() : () -> ()
    %cst_84 = arith.constant 2.500000e-01 : f32
    %207 = vector.broadcast %cst_84 : f32 to vector<4x8x8xf32>
    %208 = arith.mulf %206, %207 : vector<4x8x8xf32>
    %209 = vector.broadcast %5 : vector<4x1x8xf32> to vector<4x8x8xf32>
    %210 = arith.addf %208, %209 : vector<4x8x8xf32>
    %cst_85 = arith.constant dense<0xFF800000> : vector<4x8xf32>
    %211 = vector.multi_reduction <maximumf>, %210, %cst_85 [2] : vector<4x8x8xf32> to vector<4x8xf32>
    %212 = vector.shape_cast %211 : vector<4x8xf32> to vector<4x8x1xf32>
    %213 = vector.broadcast %212 : vector<4x8x1xf32> to vector<4x8x8xf32>
    %214 = arith.subf %210, %213 : vector<4x8x8xf32>
    %215 = math.exp %214 : vector<4x8x8xf32>
    %cst_86 = arith.constant dense<0.000000e+00> : vector<4x8xf32>
    %216 = vector.multi_reduction <add>, %215, %cst_86 [2] : vector<4x8x8xf32> to vector<4x8xf32>
    %217 = vector.shape_cast %216 : vector<4x8xf32> to vector<4x8x1xf32>
    %218 = tpu.reciprocal %217 {approx = true} : vector<4x8x1xf32> -> vector<4x8x1xf32>
    %219 = vector.broadcast %218 : vector<4x8x1xf32> to vector<4x8x8xf32>
    %220 = arith.mulf %215, %219 : vector<4x8x8xf32>
    %221 = arith.truncf %220 : vector<4x8x8xf32> to vector<4x8x8xbf16>
    %222 = vector.extract_strided_slice %203 {offsets = [0, 0, 0], sizes = [4, 8, 16], strides = [1, 1, 1]} : vector<4x8x32xbf16> to vector<4x8x16xbf16>
    "tpu.trace_start"() <{level = 10 : i32, message = "bqk,bkd->bqd"}> : () -> ()
    %cst_87 = arith.constant dense<0.000000e+00> : vector<4x8x16xf32>
    %223 = tpu.matmul %221, %222, %cst_87 {dimension_numbers = #tpu.dot_dimension_numbers<[2], [1], [1], [2], [0, 0, 0, 1, 1, 2], [0], [0]>} : vector<4x8x8xbf16>, vector<4x8x16xbf16>, vector<4x8x16xf32> -> vector<4x8x16xf32>
    "tpu.trace_stop"() : () -> ()
    %224 = vector.extract_strided_slice %197 {offsets = [0, 0, 16], sizes = [4, 8, 16], strides = [1, 1, 1]} : vector<4x8x32xbf16> to vector<4x8x16xbf16>
    %225 = vector.extract_strided_slice %200 {offsets = [0, 0, 16], sizes = [4, 8, 16], strides = [1, 1, 1]} : vector<4x8x32xbf16> to vector<4x8x16xbf16>
    "tpu.trace_start"() <{level = 10 : i32, message = "bqd,bkd->bqk"}> : () -> ()
    %cst_88 = arith.constant dense<0.000000e+00> : vector<4x8x8xf32>
    %226 = tpu.matmul %224, %225, %cst_88 {dimension_numbers = #tpu.dot_dimension_numbers<[2], [2], [1], [1], [0, 0, 0, 1, 1, 1], [0], [0]>} : vector<4x8x16xbf16>, vector<4x8x16xbf16>, vector<4x8x8xf32> -> vector<4x8x8xf32>
    "tpu.trace_stop"() : () -> ()
    %cst_89 = arith.constant 2.500000e-01 : f32
    %227 = vector.broadcast %cst_89 : f32 to vector<4x8x8xf32>
    %228 = arith.mulf %226, %227 : vector<4x8x8xf32>
    %229 = vector.broadcast %5 : vector<4x1x8xf32> to vector<4x8x8xf32>
    %230 = arith.addf %228, %229 : vector<4x8x8xf32>
    %cst_90 = arith.constant dense<0xFF800000> : vector<4x8xf32>
    %231 = vector.multi_reduction <maximumf>, %230, %cst_90 [2] : vector<4x8x8xf32> to vector<4x8xf32>
    %232 = vector.shape_cast %231 : vector<4x8xf32> to vector<4x8x1xf32>
    %233 = vector.broadcast %232 : vector<4x8x1xf32> to vector<4x8x8xf32>
    %234 = arith.subf %230, %233 : vector<4x8x8xf32>
    %235 = math.exp %234 : vector<4x8x8xf32>
    %cst_91 = arith.constant dense<0.000000e+00> : vector<4x8xf32>
    %236 = vector.multi_reduction <add>, %235, %cst_91 [2] : vector<4x8x8xf32> to vector<4x8xf32>
    %237 = vector.shape_cast %236 : vector<4x8xf32> to vector<4x8x1xf32>
    %238 = tpu.reciprocal %237 {approx = true} : vector<4x8x1xf32> -> vector<4x8x1xf32>
    %239 = vector.broadcast %238 : vector<4x8x1xf32> to vector<4x8x8xf32>
    %240 = arith.mulf %235, %239 : vector<4x8x8xf32>
    %241 = arith.truncf %240 : vector<4x8x8xf32> to vector<4x8x8xbf16>
    %242 = vector.extract_strided_slice %203 {offsets = [0, 0, 16], sizes = [4, 8, 16], strides = [1, 1, 1]} : vector<4x8x32xbf16> to vector<4x8x16xbf16>
    "tpu.trace_start"() <{level = 10 : i32, message = "bqk,bkd->bqd"}> : () -> ()
    %cst_92 = arith.constant dense<0.000000e+00> : vector<4x8x16xf32>
    %243 = tpu.matmul %241, %242, %cst_92 {dimension_numbers = #tpu.dot_dimension_numbers<[2], [1], [1], [2], [0, 0, 0, 1, 1, 2], [0], [0]>} : vector<4x8x8xbf16>, vector<4x8x16xbf16>, vector<4x8x16xf32> -> vector<4x8x16xf32>
    "tpu.trace_stop"() : () -> ()
    %244 = tpu.concatenate %223, %243 in 2 : vector<4x8x16xf32>, vector<4x8x16xf32> -> vector<4x8x32xf32>
    %245 = vector.shape_cast %244 : vector<4x8x32xf32> to vector<32x32xf32>
    %c1_93 = arith.constant 1 : index
    %c0_94 = arith.constant 0 : index
    %c0_95 = arith.constant 0 : index
    %246 = vector.load %arg9[%c1_93, %c0_94, %c0_95] : memref<2x32x32xbf16, #tpu.memory_space<vmem>>, vector<1x32x32xbf16>
    %247 = vector.shape_cast %246 : vector<1x32x32xbf16> to vector<32x32xbf16>
    %248 = arith.truncf %245 : vector<32x32xf32> to vector<32x32xbf16>
    %cst_96 = arith.constant dense<0.000000e+00> : vector<32x32xf32>
    %249 = tpu.matmul %248, %247, %cst_96 {dimension_numbers = #tpu.dot_dimension_numbers<[1], [0], [0], [1], [0, 0, 1, 1], [], []>} : vector<32x32xbf16>, vector<32x32xbf16>, vector<32x32xf32> -> vector<32x32xf32>
    %c1_97 = arith.constant 1 : index
    %c0_98 = arith.constant 0 : index
    %c0_99 = arith.constant 0 : index
    %250 = vector.load %arg10[%c1_97, %c0_98, %c0_99] : memref<2x1x32xf32, #tpu.memory_space<vmem>>, vector<1x1x32xf32>
    %251 = vector.shape_cast %250 : vector<1x1x32xf32> to vector<1x32xf32>
    %252 = vector.broadcast %251 : vector<1x32xf32> to vector<32x32xf32>
    %253 = arith.addf %249, %252 : vector<32x32xf32>
    %254 = arith.addf %253, %186 : vector<32x32xf32>
    %c1_100 = arith.constant 1 : index
    %c0_101 = arith.constant 0 : index
    %c0_102 = arith.constant 0 : index
    %255 = vector.load %arg11[%c1_100, %c0_101, %c0_102] : memref<2x1x32xf32, #tpu.memory_space<vmem>>, vector<1x1x32xf32>
    %256 = vector.shape_cast %255 : vector<1x1x32xf32> to vector<1x32xf32>
    %c1_103 = arith.constant 1 : index
    %c0_104 = arith.constant 0 : index
    %c0_105 = arith.constant 0 : index
    %257 = vector.load %arg12[%c1_103, %c0_104, %c0_105] : memref<2x1x32xf32, #tpu.memory_space<vmem>>, vector<1x1x32xf32>
    %258 = vector.shape_cast %257 : vector<1x1x32xf32> to vector<1x32xf32>
    %cst_106 = arith.constant dense<0.000000e+00> : vector<32xf32>
    %259 = vector.multi_reduction <add>, %254, %cst_106 [1] : vector<32x32xf32> to vector<32xf32>
    %260 = vector.shape_cast %259 : vector<32xf32> to vector<32x1xf32>
    %cst_107 = arith.constant 3.200000e+01 : f32
    %261 = vector.broadcast %cst_107 : f32 to vector<32x1xf32>
    %262 = arith.divf %260, %261 : vector<32x1xf32>
    %263 = vector.broadcast %262 : vector<32x1xf32> to vector<32x32xf32>
    %264 = arith.subf %254, %263 : vector<32x32xf32>
    %265 = vector.broadcast %262 : vector<32x1xf32> to vector<32x32xf32>
    %266 = arith.subf %254, %265 : vector<32x32xf32>
    %267 = arith.mulf %264, %266 : vector<32x32xf32>
    %cst_108 = arith.constant dense<0.000000e+00> : vector<32xf32>
    %268 = vector.multi_reduction <add>, %267, %cst_108 [1] : vector<32x32xf32> to vector<32xf32>
    %269 = vector.shape_cast %268 : vector<32xf32> to vector<32x1xf32>
    %cst_109 = arith.constant 3.200000e+01 : f32
    %270 = vector.broadcast %cst_109 : f32 to vector<32x1xf32>
    %271 = arith.divf %269, %270 : vector<32x1xf32>
    %272 = vector.broadcast %262 : vector<32x1xf32> to vector<32x32xf32>
    %273 = arith.subf %254, %272 : vector<32x32xf32>
    %cst_110 = arith.constant 9.99999996E-13 : f32
    %274 = vector.broadcast %cst_110 : f32 to vector<32x1xf32>
    %275 = arith.addf %271, %274 : vector<32x1xf32>
    %276 = math.rsqrt %275 : vector<32x1xf32>
    %277 = vector.broadcast %276 : vector<32x1xf32> to vector<32x32xf32>
    %278 = arith.mulf %273, %277 : vector<32x32xf32>
    %279 = vector.broadcast %256 : vector<1x32xf32> to vector<32x32xf32>
    %280 = arith.mulf %278, %279 : vector<32x32xf32>
    %281 = vector.broadcast %258 : vector<1x32xf32> to vector<32x32xf32>
    %282 = arith.addf %280, %281 : vector<32x32xf32>
    %c1_111 = arith.constant 1 : index
    %c0_112 = arith.constant 0 : index
    %c0_113 = arith.constant 0 : index
    %283 = vector.load %arg13[%c1_111, %c0_112, %c0_113] : memref<2x32x64xbf16, #tpu.memory_space<vmem>>, vector<1x32x64xbf16>
    %284 = vector.shape_cast %283 : vector<1x32x64xbf16> to vector<32x64xbf16>
    %285 = arith.truncf %282 : vector<32x32xf32> to vector<32x32xbf16>
    %cst_114 = arith.constant dense<0.000000e+00> : vector<32x64xf32>
    %286 = tpu.matmul %285, %284, %cst_114 {dimension_numbers = #tpu.dot_dimension_numbers<[1], [0], [0], [1], [0, 0, 1, 1], [], []>} : vector<32x32xbf16>, vector<32x64xbf16>, vector<32x64xf32> -> vector<32x64xf32>
    %c1_115 = arith.constant 1 : index
    %c0_116 = arith.constant 0 : index
    %c0_117 = arith.constant 0 : index
    %287 = vector.load %arg14[%c1_115, %c0_116, %c0_117] : memref<2x1x64xf32, #tpu.memory_space<vmem>>, vector<1x1x64xf32>
    %288 = vector.shape_cast %287 : vector<1x1x64xf32> to vector<1x64xf32>
    %289 = vector.broadcast %288 : vector<1x64xf32> to vector<32x64xf32>
    %290 = arith.addf %286, %289 : vector<32x64xf32>
    %cst_118 = arith.constant 5.000000e-01 : f32
    %291 = vector.broadcast %cst_118 : f32 to vector<32x64xf32>
    %292 = arith.mulf %291, %290 : vector<32x64xf32>
    %cst_119 = arith.constant 4.471500e-02 : f32
    %293 = vector.broadcast %cst_119 : f32 to vector<32x64xf32>
    %294 = arith.mulf %293, %290 : vector<32x64xf32>
    %295 = arith.mulf %294, %290 : vector<32x64xf32>
    %296 = arith.mulf %295, %290 : vector<32x64xf32>
    %297 = arith.addf %290, %296 : vector<32x64xf32>
    %cst_120 = arith.constant 0.797884583 : f32
    %298 = vector.broadcast %cst_120 : f32 to vector<32x64xf32>
    %299 = arith.mulf %298, %297 : vector<32x64xf32>
    %300 = math.tanh %299 : vector<32x64xf32>
    %cst_121 = arith.constant 1.000000e+00 : f32
    %301 = vector.broadcast %cst_121 : f32 to vector<32x64xf32>
    %302 = arith.addf %301, %300 : vector<32x64xf32>
    %303 = arith.mulf %292, %302 : vector<32x64xf32>
    %c1_122 = arith.constant 1 : index
    %c0_123 = arith.constant 0 : index
    %c0_124 = arith.constant 0 : index
    %304 = vector.load %arg15[%c1_122, %c0_123, %c0_124] : memref<2x64x32xbf16, #tpu.memory_space<vmem>>, vector<1x64x32xbf16>
    %305 = vector.shape_cast %304 : vector<1x64x32xbf16> to vector<64x32xbf16>
    %306 = arith.truncf %303 : vector<32x64xf32> to vector<32x64xbf16>
    %cst_125 = arith.constant dense<0.000000e+00> : vector<32x32xf32>
    %307 = tpu.matmul %306, %305, %cst_125 {dimension_numbers = #tpu.dot_dimension_numbers<[1], [0], [0], [1], [0, 0, 1, 1], [], []>} : vector<32x64xbf16>, vector<64x32xbf16>, vector<32x32xf32> -> vector<32x32xf32>
    %c1_126 = arith.constant 1 : index
    %c0_127 = arith.constant 0 : index
    %c0_128 = arith.constant 0 : index
    %308 = vector.load %arg16[%c1_126, %c0_127, %c0_128] : memref<2x1x32xf32, #tpu.memory_space<vmem>>, vector<1x1x32xf32>
    %309 = vector.shape_cast %308 : vector<1x1x32xf32> to vector<1x32xf32>
    %310 = vector.broadcast %309 : vector<1x32xf32> to vector<32x32xf32>
    %311 = arith.addf %307, %310 : vector<32x32xf32>
    %312 = arith.addf %311, %282 : vector<32x32xf32>
    %c1_129 = arith.constant 1 : index
    %c0_130 = arith.constant 0 : index
    %c0_131 = arith.constant 0 : index
    %313 = vector.load %arg17[%c1_129, %c0_130, %c0_131] : memref<2x1x32xf32, #tpu.memory_space<vmem>>, vector<1x1x32xf32>
    %314 = vector.shape_cast %313 : vector<1x1x32xf32> to vector<1x32xf32>
    %c1_132 = arith.constant 1 : index
    %c0_133 = arith.constant 0 : index
    %c0_134 = arith.constant 0 : index
    %315 = vector.load %arg18[%c1_132, %c0_133, %c0_134] : memref<2x1x32xf32, #tpu.memory_space<vmem>>, vector<1x1x32xf32>
    %316 = vector.shape_cast %315 : vector<1x1x32xf32> to vector<1x32xf32>
    %cst_135 = arith.constant dense<0.000000e+00> : vector<32xf32>
    %317 = vector.multi_reduction <add>, %312, %cst_135 [1] : vector<32x32xf32> to vector<32xf32>
    %318 = vector.shape_cast %317 : vector<32xf32> to vector<32x1xf32>
    %cst_136 = arith.constant 3.200000e+01 : f32
    %319 = vector.broadcast %cst_136 : f32 to vector<32x1xf32>
    %320 = arith.divf %318, %319 : vector<32x1xf32>
    %321 = vector.broadcast %320 : vector<32x1xf32> to vector<32x32xf32>
    %322 = arith.subf %312, %321 : vector<32x32xf32>
    %323 = vector.broadcast %320 : vector<32x1xf32> to vector<32x32xf32>
    %324 = arith.subf %312, %323 : vector<32x32xf32>
    %325 = arith.mulf %322, %324 : vector<32x32xf32>
    %cst_137 = arith.constant dense<0.000000e+00> : vector<32xf32>
    %326 = vector.multi_reduction <add>, %325, %cst_137 [1] : vector<32x32xf32> to vector<32xf32>
    %327 = vector.shape_cast %326 : vector<32xf32> to vector<32x1xf32>
    %cst_138 = arith.constant 3.200000e+01 : f32
    %328 = vector.broadcast %cst_138 : f32 to vector<32x1xf32>
    %329 = arith.divf %327, %328 : vector<32x1xf32>
    %330 = vector.broadcast %320 : vector<32x1xf32> to vector<32x32xf32>
    %331 = arith.subf %312, %330 : vector<32x32xf32>
    %cst_139 = arith.constant 9.99999996E-13 : f32
    %332 = vector.broadcast %cst_139 : f32 to vector<32x1xf32>
    %333 = arith.addf %329, %332 : vector<32x1xf32>
    %334 = math.rsqrt %333 : vector<32x1xf32>
    %335 = vector.broadcast %334 : vector<32x1xf32> to vector<32x32xf32>
    %336 = arith.mulf %331, %335 : vector<32x32xf32>
    %337 = vector.broadcast %314 : vector<1x32xf32> to vector<32x32xf32>
    %338 = arith.mulf %336, %337 : vector<32x32xf32>
    %339 = vector.broadcast %316 : vector<1x32xf32> to vector<32x32xf32>
    %340 = arith.addf %338, %339 : vector<32x32xf32>
    %c0_140 = arith.constant 0 : index
    %c0_141 = arith.constant 0 : index
    %341 = vector.load %arg23[%c0_140, %c0_141] : memref<32x32xf32, #tpu.memory_space<vmem>>, vector<32x32xf32>
    tpu.vector_store %arg23[%c0_140, %c0_141], %340 {strides = array<i32>} : memref<32x32xf32, #tpu.memory_space<vmem>>, vector<32x32xf32>,
    %c0_142 = arith.constant 0 : index
    %c0_143 = arith.constant 0 : index
    %342 = vector.load %arg19[%c0_142, %c0_143] : memref<32x64xbf16, #tpu.memory_space<vmem>>, vector<32x64xbf16>
    %343 = arith.truncf %340 : vector<32x32xf32> to vector<32x32xbf16>
    %cst_144 = arith.constant dense<0.000000e+00> : vector<32x64xf32>
    %344 = tpu.matmul %343, %342, %cst_144 {dimension_numbers = #tpu.dot_dimension_numbers<[1], [0], [0], [1], [0, 0, 1, 1], [], []>} : vector<32x32xbf16>, vector<32x64xbf16>, vector<32x64xf32> -> vector<32x64xf32>
    %c0_145 = arith.constant 0 : index
    %c0_146 = arith.constant 0 : index
    %345 = vector.load %arg20[%c0_145, %c0_146] : memref<1x64xf32, #tpu.memory_space<vmem>>, vector<1x64xf32>
    %346 = vector.broadcast %345 : vector<1x64xf32> to vector<32x64xf32>
    %347 = arith.addf %344, %346 : vector<32x64xf32>
    %c0_147 = arith.constant 0 : index
    %c0_148 = arith.constant 0 : index
    %348 = vector.load %arg2[%c0_147, %c0_148] : memref<32x1xi32, #tpu.memory_space<vmem>>, vector<32x1xi32>
    %cst_149 = arith.constant dense<0xFF800000> : vector<32xf32>
    %349 = vector.multi_reduction <maximumf>, %347, %cst_149 [1] : vector<32x64xf32> to vector<32xf32>
    %350 = vector.shape_cast %349 : vector<32xf32> to vector<32x1xf32>
    %351 = vector.broadcast %350 : vector<32x1xf32> to vector<32x64xf32>
    %352 = arith.subf %347, %351 : vector<32x64xf32>
    %353 = math.exp %352 : vector<32x64xf32>
    %cst_150 = arith.constant dense<0.000000e+00> : vector<32xf32>
    %354 = vector.multi_reduction <add>, %353, %cst_150 [1] : vector<32x64xf32> to vector<32xf32>
    %355 = vector.shape_cast %354 : vector<32xf32> to vector<32x1xf32>
    %356 = math.log %355 : vector<32x1xf32>
    %357 = tpu.iota {dimensions = array<i32: 1>} : vector<32x64xi32>
    %358 = vector.broadcast %348 : vector<32x1xi32> to vector<32x64xi32>
    %359 = arith.cmpi eq, %357, %358 : vector<32x64xi32>
    %cst_151 = arith.constant 0.000000e+00 : f32
    %360 = vector.broadcast %cst_151 : f32 to vector<32x64xf32>
    %361 = arith.select %359, %352, %360 : vector<32x64xi1>, vector<32x64xf32>
    %cst_152 = arith.constant dense<0.000000e+00> : vector<32xf32>
    %362 = vector.multi_reduction <add>, %361, %cst_152 [1] : vector<32x64xf32> to vector<32xf32>
    %363 = vector.shape_cast %362 : vector<32xf32> to vector<32x1xf32>
    %364 = arith.subf %356, %363 : vector<32x1xf32>
    %c-100_i32 = arith.constant -100 : i32
    %365 = vector.broadcast %c-100_i32 : i32 to vector<32x1xi32>
    %366 = arith.cmpi ne, %348, %365 : vector<32x1xi32>
    %367 = arith.extui %366 : vector<32x1xi1> to vector<32x1xi32>
    %368 = arith.sitofp %367 : vector<32x1xi32> to vector<32x1xf32>
    %369 = tpu.iota {dimensions = array<i32: 0>} : vector<32x1xi32>
    %c16_i32 = arith.constant 16 : i32
    %370 = vector.broadcast %c16_i32 : i32 to vector<32x1xi32>
    %371 = arith.cmpi slt, %369, %370 : vector<32x1xi32>
    %372 = arith.extui %371 : vector<32x1xi1> to vector<32x1xi32>
    %373 = arith.sitofp %372 : vector<32x1xi32> to vector<32x1xf32>
    %374 = arith.mulf %364, %368 : vector<32x1xf32>
    %375 = arith.mulf %374, %373 : vector<32x1xf32>
    %376 = vector.shape_cast %375 : vector<32x1xf32> to vector<1x32x1xf32>
    %cst_153 = arith.constant dense<0.000000e+00> : vector<1xf32>
    %377 = vector.multi_reduction <add>, %376, %cst_153 [1, 2] : vector<1x32x1xf32> to vector<1xf32>
    %378 = vector.shape_cast %377 : vector<1xf32> to vector<1x1x1xf32>
    %379 = vector.extract %378[0, 0, 0] : f32 from vector<1x1x1xf32>
    %380 = vector.broadcast %379 : f32 to vector<1x1xf32>
    %381 = arith.mulf %368, %373 : vector<32x1xf32>
    %382 = vector.shape_cast %381 : vector<32x1xf32> to vector<1x32x1xf32>
    %cst_154 = arith.constant dense<0.000000e+00> : vector<1xf32>
    %383 = vector.multi_reduction <add>, %382, %cst_154 [1, 2] : vector<1x32x1xf32> to vector<1xf32>
    %384 = vector.shape_cast %383 : vector<1xf32> to vector<1x1x1xf32>
    %385 = vector.extract %384[0, 0, 0] : f32 from vector<1x1x1xf32>
    %386 = vector.broadcast %385 : f32 to vector<1x1xf32>
    %cst_155 = arith.constant 1.000000e+00 : f32
    %387 = vector.broadcast %cst_155 : f32 to vector<1x1xf32>
    %388 = arith.maximumf %386, %387 : vector<1x1xf32>
    %389 = arith.mulf %364, %368 : vector<32x1xf32>
    %cst_156 = arith.constant 1.000000e+00 : f32
    %390 = vector.broadcast %cst_156 : f32 to vector<32x1xf32>
    %391 = arith.subf %390, %373 : vector<32x1xf32>
    %392 = arith.mulf %389, %391 : vector<32x1xf32>
    %393 = vector.shape_cast %392 : vector<32x1xf32> to vector<1x32x1xf32>
    %cst_157 = arith.constant dense<0.000000e+00> : vector<1xf32>
    %394 = vector.multi_reduction <add>, %393, %cst_157 [1, 2] : vector<1x32x1xf32> to vector<1xf32>
    %395 = vector.shape_cast %394 : vector<1xf32> to vector<1x1x1xf32>
    %396 = vector.extract %395[0, 0, 0] : f32 from vector<1x1x1xf32>
    %397 = vector.broadcast %396 : f32 to vector<1x1xf32>
    %cst_158 = arith.constant 1.000000e+00 : f32
    %398 = vector.broadcast %cst_158 : f32 to vector<32x1xf32>
    %399 = arith.subf %398, %373 : vector<32x1xf32>
    %400 = arith.mulf %368, %399 : vector<32x1xf32>
    %401 = vector.shape_cast %400 : vector<32x1xf32> to vector<1x32x1xf32>
    %cst_159 = arith.constant dense<0.000000e+00> : vector<1xf32>
    %402 = vector.multi_reduction <add>, %401, %cst_159 [1, 2] : vector<1x32x1xf32> to vector<1xf32>
    %403 = vector.shape_cast %402 : vector<1xf32> to vector<1x1x1xf32>
    %404 = vector.extract %403[0, 0, 0] : f32 from vector<1x1x1xf32>
    %405 = vector.broadcast %404 : f32 to vector<1x1xf32>
    %cst_160 = arith.constant 1.000000e+00 : f32
    %406 = vector.broadcast %cst_160 : f32 to vector<1x1xf32>
    %407 = arith.maximumf %405, %406 : vector<1x1xf32>
    %408 = arith.divf %380, %388 : vector<1x1xf32>
    %409 = arith.divf %397, %407 : vector<1x1xf32>
    %410 = arith.addf %408, %409 : vector<1x1xf32>
    %c0_161 = arith.constant 0 : index
    %c0_162 = arith.constant 0 : index
    %411 = vector.load %arg21[%c0_161, %c0_162] : memref<1x1xf32, #tpu.memory_space<vmem>>, vector<1x1xf32>
    tpu.vector_store %arg21[%c0_161, %c0_162], %410 {strides = array<i32>} : memref<1x1xf32, #tpu.memory_space<vmem>>, vector<1x1xf32>,
    %cst_163 = arith.constant 0.000000e+00 : f32
    %412 = vector.broadcast %cst_163 : f32 to vector<1x1xf32>
    %c0_164 = arith.constant 0 : index
    %413 = memref.load %arg3[%c0_164] : memref<8xi32, #tpu.memory_space<smem>>
    %c2 = arith.constant 2 : index
    %414 = memref.load %arg3[%c2] : memref<8xi32, #tpu.memory_space<smem>>
    %c4 = arith.constant 4 : index
    %415 = memref.load %arg3[%c4] : memref<8xi32, #tpu.memory_space<smem>>
    %c6 = arith.constant 6 : index
    %416 = memref.load %arg3[%c6] : memref<8xi32, #tpu.memory_space<smem>>
    %c0_i32 = arith.constant 0 : i32
    %417 = arith.addi %c0_i32, %413 : i32
    %418 = arith.index_cast %417 : i32 to index
    %c0_165 = arith.constant 0 : index
    %419 = vector.load %arg23[%418, %c0_165] : memref<32x32xf32, #tpu.memory_space<vmem>>, vector<1x32xf32>
    %c0_i32_166 = arith.constant 0 : i32
    %420 = arith.addi %c0_i32_166, %414 : i32
    %421 = arith.index_cast %420 : i32 to index
    %c0_167 = arith.constant 0 : index
    %422 = vector.load %arg23[%421, %c0_167] : memref<32x32xf32, #tpu.memory_space<vmem>>, vector<1x32xf32>
    %c16_i32_168 = arith.constant 16 : i32
    %423 = arith.addi %c16_i32_168, %415 : i32
    %424 = arith.index_cast %423 : i32 to index
    %c0_169 = arith.constant 0 : index
    %425 = vector.load %arg23[%424, %c0_169] : memref<32x32xf32, #tpu.memory_space<vmem>>, vector<1x32xf32>
    %c16_i32_170 = arith.constant 16 : i32
    %426 = arith.addi %c16_i32_170, %416 : i32
    %427 = arith.index_cast %426 : i32 to index
    %c0_171 = arith.constant 0 : index
    %428 = vector.load %arg23[%427, %c0_171] : memref<32x32xf32, #tpu.memory_space<vmem>>, vector<1x32xf32>
    %429 = arith.mulf %419, %425 : vector<1x32xf32>
    %430 = arith.mulf %422, %428 : vector<1x32xf32>
    %431 = arith.addf %429, %430 : vector<1x32xf32>
    %cst_172 = arith.constant dense<0.000000e+00> : vector<1xf32>
    %432 = vector.multi_reduction <add>, %431, %cst_172 [1] : vector<1x32xf32> to vector<1xf32>
    %433 = vector.shape_cast %432 : vector<1xf32> to vector<1x1xf32>
    %c0_173 = arith.constant 0 : index
    %434 = memref.load %arg4[%c0_173] : memref<2xf32, #tpu.memory_space<smem>>
    %cst_174 = arith.constant 0.000000e+00 : f32
    %435 = vector.broadcast %cst_174 : f32 to vector<1x1xf32>
    %436 = arith.maximumf %433, %435 : vector<1x1xf32>
    %437 = vector.broadcast %434 : f32 to vector<1x1xf32>
    %438 = arith.mulf %433, %437 : vector<1x1xf32>
    %439 = arith.subf %436, %438 : vector<1x1xf32>
    %440 = math.absf %433 : vector<1x1xf32>
    %cst_175 = arith.constant 0.000000e+00 : f32
    %441 = vector.broadcast %cst_175 : f32 to vector<1x1xf32>
    %442 = arith.subf %441, %440 : vector<1x1xf32>
    %443 = math.exp %442 : vector<1x1xf32>
    %cst_176 = arith.constant 1.000000e+00 : f32
    %444 = vector.broadcast %cst_176 : f32 to vector<1x1xf32>
    %445 = arith.addf %444, %443 : vector<1x1xf32>
    %446 = math.log %445 : vector<1x1xf32>
    %447 = arith.addf %439, %446 : vector<1x1xf32>
    %448 = arith.addf %412, %447 : vector<1x1xf32>
    %c1_177 = arith.constant 1 : index
    %449 = memref.load %arg3[%c1_177] : memref<8xi32, #tpu.memory_space<smem>>
    %c3 = arith.constant 3 : index
    %450 = memref.load %arg3[%c3] : memref<8xi32, #tpu.memory_space<smem>>
    %c5 = arith.constant 5 : index
    %451 = memref.load %arg3[%c5] : memref<8xi32, #tpu.memory_space<smem>>
    %c7 = arith.constant 7 : index
    %452 = memref.load %arg3[%c7] : memref<8xi32, #tpu.memory_space<smem>>
    %c8_i32 = arith.constant 8 : i32
    %453 = arith.addi %c8_i32, %449 : i32
    %454 = arith.index_cast %453 : i32 to index
    %c0_178 = arith.constant 0 : index
    %455 = vector.load %arg23[%454, %c0_178] : memref<32x32xf32, #tpu.memory_space<vmem>>, vector<1x32xf32>
    %c8_i32_179 = arith.constant 8 : i32
    %456 = arith.addi %c8_i32_179, %450 : i32
    %457 = arith.index_cast %456 : i32 to index
    %c0_180 = arith.constant 0 : index
    %458 = vector.load %arg23[%457, %c0_180] : memref<32x32xf32, #tpu.memory_space<vmem>>, vector<1x32xf32>
    %c24_i32 = arith.constant 24 : i32
    %459 = arith.addi %c24_i32, %451 : i32
    %460 = arith.index_cast %459 : i32 to index
    %c0_181 = arith.constant 0 : index
    %461 = vector.load %arg23[%460, %c0_181] : memref<32x32xf32, #tpu.memory_space<vmem>>, vector<1x32xf32>
    %c24_i32_182 = arith.constant 24 : i32
    %462 = arith.addi %c24_i32_182, %452 : i32
    %463 = arith.index_cast %462 : i32 to index
    %c0_183 = arith.constant 0 : index
    %464 = vector.load %arg23[%463, %c0_183] : memref<32x32xf32, #tpu.memory_space<vmem>>, vector<1x32xf32>
    %465 = arith.mulf %455, %461 : vector<1x32xf32>
    %466 = arith.mulf %458, %464 : vector<1x32xf32>
    %467 = arith.addf %465, %466 : vector<1x32xf32>
    %cst_184 = arith.constant dense<0.000000e+00> : vector<1xf32>
    %468 = vector.multi_reduction <add>, %467, %cst_184 [1] : vector<1x32xf32> to vector<1xf32>
    %469 = vector.shape_cast %468 : vector<1xf32> to vector<1x1xf32>
    %c1_185 = arith.constant 1 : index
    %470 = memref.load %arg4[%c1_185] : memref<2xf32, #tpu.memory_space<smem>>
    %cst_186 = arith.constant 0.000000e+00 : f32
    %471 = vector.broadcast %cst_186 : f32 to vector<1x1xf32>
    %472 = arith.maximumf %469, %471 : vector<1x1xf32>
    %473 = vector.broadcast %470 : f32 to vector<1x1xf32>
    %474 = arith.mulf %469, %473 : vector<1x1xf32>
    %475 = arith.subf %472, %474 : vector<1x1xf32>
    %476 = math.absf %469 : vector<1x1xf32>
    %cst_187 = arith.constant 0.000000e+00 : f32
    %477 = vector.broadcast %cst_187 : f32 to vector<1x1xf32>
    %478 = arith.subf %477, %476 : vector<1x1xf32>
    %479 = math.exp %478 : vector<1x1xf32>
    %cst_188 = arith.constant 1.000000e+00 : f32
    %480 = vector.broadcast %cst_188 : f32 to vector<1x1xf32>
    %481 = arith.addf %480, %479 : vector<1x1xf32>
    %482 = math.log %481 : vector<1x1xf32>
    %483 = arith.addf %475, %482 : vector<1x1xf32>
    %484 = arith.addf %448, %483 : vector<1x1xf32>
    %cst_189 = arith.constant 5.000000e-01 : f32
    %485 = vector.broadcast %cst_189 : f32 to vector<1x1xf32>
    %486 = arith.mulf %484, %485 : vector<1x1xf32>
    %c0_190 = arith.constant 0 : index
    %c0_191 = arith.constant 0 : index
    %487 = vector.load %arg22[%c0_190, %c0_191] : memref<1x1xf32, #tpu.memory_space<vmem>>, vector<1x1xf32>
    tpu.vector_store %arg22[%c0_190, %c0_191], %486 {strides = array<i32>} : memref<1x1xf32, #tpu.memory_space<vmem>>, vector<1x1xf32>,
    return
  }
}

</mosaic_0001>

<bundles_post_ra>
// kernel: mtb_forward.1
= control target key start
LH: loop header
LB: loop body
LE: loop exit
PB: predicated region body
PF: predicated region fallthrough
CT: control target
= control target key end

     0   :  { %s3915_s0 = inlined_call_operand.vmem [shape: f32[32,32], index: 0, kind: input, shape index: {}]   ;;  %s3916_s1 = inlined_call_operand.vmem [shape: f32[4,8], index: 1, kind: input, shape index: {}]   ;;  %s3917_s2 = inlined_call_operand.vmem [shape: s32[32,1], index: 2, kind: input, shape index: {}]   ;;  %s3918_s3 = inlined_call_operand.vmem [shape: s32[8], index: 3, kind: input, shape index: {}]   ;;  %s3919_s4 = inlined_call_operand.vmem [shape: f32[2], index: 4, kind: input, shape index: {}]   ;;  %s3920_s5 = inlined_call_operand.vmem [shape: f32[1,32], index: 5, kind: input, shape index: {}]   ;;  %s3921_s6 = inlined_call_operand.vmem [shape: f32[1,32], index: 6, kind: input, shape index: {}]   ;;  %s3922_s7 = inlined_call_operand.vmem [shape: bf16[2,32,96], index: 7, kind: input, shape index: {}]   ;;  %s3923_s8 = inlined_call_operand.vmem [shape: f32[2,1,96], index: 8, kind: input, shape index: {}]   ;;  %s3924_s9 = inlined_call_operand.vmem [shape: bf16[2,32,32], index: 9, kind: input, shape index: {}]   ;;  %s3925_s10 = inlined_call_operand.vmem [shape: f32[2,1,32], index: 10, kind: input, shape index: {}]   ;;  %s3926_s11 = inlined_call_operand.vmem [shape: f32[2,1,32], index: 11, kind: input, shape index: {}]   ;;  %s3927_s12 = inlined_call_operand.vmem [shape: f32[2,1,32], index: 12, kind: input, shape index: {}]   ;;  %s3928_s13 = inlined_call_operand.vmem [shape: bf16[2,32,64], index: 13, kind: input, shape index: {}]   ;;  %s3929_s14 = inlined_call_operand.vmem [shape: f32[2,1,64], index: 14, kind: input, shape index: {}]   ;;  %s3930_s15 = inlined_call_operand.vmem [shape: bf16[2,64,32], index: 15, kind: input, shape index: {}]   ;;  %s3931_s16 = inlined_call_operand.vmem [shape: f32[2,1,32], index: 16, kind: input, shape index: {}]   ;;  %s3932_s17 = inlined_call_operand.vmem [shape: f32[2,1,32], index: 17, kind: input, shape index: {}]   ;;  %s3933_s18 = inlined_call_operand.vmem [shape: f32[2,1,32], index: 18, kind: input, shape index: {}]   ;;  %s3934_s19 = inlined_call_operand.vmem [shape: bf16[32,64], index: 19, kind: input, shape index: {}]   ;;  %s3935_s20 = inlined_call_operand.vmem [shape: f32[1,64], index: 20, kind: input, shape index: {}]   ;;  %s3936_s21 = inlined_call_operand.hbm [shape: f32[1,1], index: 21, kind: output, shape index: {0}]   ;;  %s3937_s22 = inlined_call_operand.hbm [shape: f32[1,1], index: 22, kind: output, shape index: {1}]  }
   0x1   :  { %3942 = sst [smem:[#allocation15_spill]] %s3915_s0 }
   0x2   :  { %3943 = sst [smem:[#allocation16_spill]] %s3916_s1 }
   0x3   :  { %3944 = sst [smem:[#allocation17_spill]] %s3917_s2 }
   0x4   :  { %3945 = sst [smem:[#allocation18_spill]] %s3918_s3 }
   0x5   :  { %3946 = sst [smem:[#allocation19_spill]] %s3919_s4 }
   0x6   :  { %3947 = sst [smem:[#allocation20_spill]] %s3920_s5 }
   0x7   :  { %3948 = sst [smem:[#allocation21_spill]] %s3921_s6 }
   0x8   :  { %28 = vsyncpa [#allocation5], 0 }
   0x9   :  { %29 = vsyncpa [#allocation7], 0 }
   0xa   :  { %30 = vsyncpa [#allocation4], 0 }
   0xb   :  { %31 = vsyncpa [#allocation10], 0  ;;  %s3949_s29 = sld [smem:[#allocation18_spill]]  ;;  %s3055_s5 = smov [#allocation3]  }
   0xc   :  { %s3950_s23 = sld [smem:[#allocation19_spill]]  ;;  %s3056_s24 = smov [#allocation6]  }
  0x11   :  { %s43_s30 = sshll.u32 %s3949_s29, 4  ;;  %s44_s30 = int_to_ptr.vmem [resolvable:$true] %s43_s30 }
  0x12   :  { %s52_s1 = sshll.u32 %s3950_s23, 4  ;;  %s53_s1 = int_to_ptr.vmem [resolvable:$true] %s52_s1 }
  0x13   :  { %46 = dma.vmem_to_smem %s44_s30, 16, %s3055_s5, [#allocation5]  }
  0x14   :  { %55 = dma.vmem_to_smem %s53_s1, 16, %s3056_s24, [#allocation7]  }
  0x15   :  { %3047 = dma.done.wait [#allocation5], 16  }
  0x16   :  { %3048 = vsyncadd [#allocation5], 4294967280 }
  0x17   :  { %3049 = dma.done.wait [#allocation7], 16  }
  0x18   :  { %3050 = vsyncadd [#allocation7], 4294967280 }
  0x19   :  { %96 = sfence }
  0x1a   :  { %s3951_s26 = sld [smem:[#allocation15_spill]]  ;;  %vm111_vm0 = vcmask 261120   ;;  %v3057_v8 = vmov 32.0   ;;  %v2741_v35 = vld [vmem:[%s3922_s7 + $0x8] sm:$0xff]  ;;  %v2740_v41 = vld [vmem:[%s3922_s7] sm:$0xff]  ;;  %s3058_s28 = smov 96  }
  0x1b   :  { %2825 = vrcp.f32 %v3057_v8  ;;  %255 = vmatpush.bf16.msra.mxu0 %v2741_v35  ;;  %s3952_s6 = sld [smem:[#allocation20_spill]]  ;;  %vm277_vm14 = vcmask 130048   ;;  %vm385_vm15 = vcmask 64512   ;;  %s3059_s0 = smov 64  }
  0x1c   :  { %s3953_s2 = sld [smem:[#allocation21_spill]]  ;;  %s3060_s23 = smov 80  }
  0x1d   :  { %s3954_s4 = sld [smem:[#allocation16_spill]]  ;;  %s3061_s1 = smov 112  }
  0x1e   :  { %s3062_s5 = smov 48   ;;  %s3940_s24 = smov 16  }
  0x1f   :  { %256 = vmatpush.bf16.msra.mxu0 %v2740_v41  ;;  %s3834_s25 = sld [smem:[#allocation3]]  ;;  %s3066_s29 = smov [#allocation9]  }
  0x20   :  { %v107_v0 = vld [vmem:[%s3951_s26 + $0x10] sm:$0xff]  ;;  %v105_v1 = vld [vmem:[%s3951_s26] sm:$0xff]  ;;  %v106_v2 = vld [vmem:[%s3951_s26 + $0x8] sm:$0xff]  ;;  %s2728_s27 = sld [smem:[#allocation3 + $0x6]]  ;;  %s2524_s30 = sshll.u32 %s3066_s29, 4  ;;  %s2525_s30 = int_to_ptr.vmem [resolvable:$true] %s2524_s30 }
  0x21   :  { %v118_v3 = vsel %vm111_vm0, %v107_v0, 0.0  ;;  %v112_v4 = vsel %vm111_vm0, %v105_v1, 0.0  ;;  %v108_v5 = vld [vmem:[%s3951_s26 + $0x18] sm:$0xff]  ;;  %v115_v6 = vsel %vm111_vm0, %v106_v2, 0.0  ;;  %v2826_v9 = vpop.eup %2825  ;;  %s3843_s26 = sld [smem:[#allocation3 + $0x2]] }
  0x22   :  { %119 = vadd.xlane.f32.xlu2 %v118_v3  ;;  %113 = vadd.xlane.f32.xlu0 %v112_v4  ;;  %v121_v7 = vsel %vm111_vm0, %v108_v5, 0.0  ;;  %v125_v10 = vmul.f32 32.0, %v2826_v9  ;;  %vm129_vm1 = vweird.f32 %v2826_v9  ;;  %s2739_s3 = sld [smem:[#allocation6 + $0x1]] }
  0x24   :  { %v126_v11 = vsub.f32 1.0, %v125_v10  ;;  %v2807_v10 = vld [vmem:[%s3953_s2] ss:$0 sm:$0xff]  ;;  %s3845_s2 = sld [smem:[#allocation3 + $0x4]] }
  0x26   :  { %v127_v12 = vmul.f32 %v2826_v9, %v126_v11 }
  0x28   :  { %v128_v13 = vadd.f32 %v2826_v9, %v127_v12 }
  0x2a   :  { %116 = vadd.xlane.f32.xlu0 %v115_v6  ;;  %122 = vadd.xlane.f32.xlu2 %v121_v7  ;;  %v3205_v14 = vsel %vm129_vm1, %v2826_v9, %v128_v13  ;;  %vm439_vm1 = vcmask 1043456  }
  0x95   :  { %v120_v15 = vpop.xlane.xlu2 %119  ;;  %v114_v16 = vpop.xlane.xlu0 %113 }
  0x96   :  { %v133_v17 = vmul.f32 %v3205_v14, %v120_v15  ;;  %v131_v18 = vmul.f32 %v3205_v14, %v114_v16 }
  0x98   :  { %v3209_v19 = vsub.f32 %v107_v0, %v133_v17  ;;  %v135_v20 = vsub.f32 %v105_v1, %v131_v18 }
  0x9a   :  { %v141_v21 = vmul.f32 %v3209_v19, %v3209_v19  ;;  %v139_v22 = vmul.f32 %v135_v20, %v135_v20 }
  0x9c   :  { %v149_v23 = vsel %vm111_vm0, %v141_v21, 0.0  ;;  %v143_v24 = vsel %vm111_vm0, %v139_v22, 0.0 }
  0x9d   :  { %150 = vadd.xlane.f32.xlu0 %v149_v23  ;;  %144 = vadd.xlane.f32.xlu1 %v143_v24  ;;  %v117_v25 = vpop.xlane.xlu0 %116  ;;  %v123_v26 = vpop.xlane.xlu2 %122 }
  0x9e   :  { %v132_v27 = vmul.f32 %v3205_v14, %v117_v25  ;;  %v134_v28 = vmul.f32 %v3205_v14, %v123_v26 }
  0xa0   :  { %v136_v29 = vsub.f32 %v106_v2, %v132_v27  ;;  %v3217_v30 = vsub.f32 %v108_v5, %v134_v28  ;;  %v2806_v2 = vld [vmem:[%s3952_s6] ss:$0 sm:$0xff] }
  0xa2   :  { %v140_v31 = vmul.f32 %v136_v29, %v136_v29  ;;  %v142_v33 = vmul.f32 %v3217_v30, %v3217_v30 }
  0xa4   :  { %v146_v32 = vsel %vm111_vm0, %v140_v31, 0.0  ;;  %v152_v34 = vsel %vm111_vm0, %v142_v33, 0.0 }
  0xa5   :  { %147 = vadd.xlane.f32.xlu1 %v146_v32  ;;  %v2808_v32 = vld [vmem:[%s3923_s8] ss:$0 sm:$0xff] }
  0xad   :  { %153 = vadd.xlane.f32.xlu1 %v152_v34 }
 0x110   :  { %v145_v36 = vpop.xlane.xlu1 %144  ;;  %v151_v37 = vpop.xlane.xlu0 %150 }
 0x111   :  { %v155_v38 = vmul.f32 %v145_v36, %v3205_v14  ;;  %v157_v40 = vmul.f32 %v151_v37, %v3205_v14 }
 0x113   :  { %v159_v39 = vadd.f32 1e-12, %v155_v38  ;;  %v161_v42 = vadd.f32 1e-12, %v157_v40 }
 0x115   :  { %2827 = vrsqrt.f32 %v159_v39  ;;  %vm169_vm3 = vweird.f32 %v159_v39  ;;  %vm189_vm10 = vweird.f32 %v161_v42 }
 0x116   :  { %2829 = vrsqrt.f32 %v161_v42 }
 0x118   :  { %v148_v43 = vpop.xlane.xlu1 %147 }
 0x119   :  { %v156_v44 = vmul.f32 %v148_v43, %v3205_v14 }
 0x11b   :  { %v2828_v45 = vpop.eup %2827  ;;  %v160_v46 = vadd.f32 1e-12, %v156_v44 }
 0x11c   :  { %v164_v47 = vmul.f32 %v2828_v45, %v159_v39  ;;  %v2830_v51 = vpop.eup %2829  ;;  %vm170_vm2 = vweird.f32 %v2828_v45 }
 0x11d   :  { %2831 = vrsqrt.f32 %v160_v46  ;;  %v184_v57 = vmul.f32 %v2830_v51, %v161_v42  ;;  %vm171_vm4 = vmor %vm169_vm3, %vm170_vm2  ;;  %vm179_vm6 = vweird.f32 %v160_v46  ;;  %vm190_vm11 = vweird.f32 %v2830_v51 }
 0x11e   :  { %v165_v48 = vmul.f32 %v2828_v45, %v164_v47  ;;  %vm191_vm13 = vmor %vm189_vm10, %vm190_vm11 }
 0x11f   :  { %v185_v61 = vmul.f32 %v2830_v51, %v184_v57 }
 0x120   :  { %v166_v49 = vmul.f32 0.5, %v165_v48  ;;  %v154_v50 = vpop.xlane.xlu1 %153 }
 0x121   :  { %v158_v52 = vmul.f32 %v154_v50, %v3205_v14  ;;  %v186_v3 = vmul.f32 0.5, %v185_v61 }
 0x122   :  { %v167_v53 = vsub.f32 1.5, %v166_v49 }
 0x123   :  { %v2832_v54 = vpop.eup %2831  ;;  %v162_v55 = vadd.f32 1e-12, %v158_v52  ;;  %v187_v11 = vsub.f32 1.5, %v186_v3 }
 0x124   :  { %v168_v56 = vmul.f32 %v2828_v45, %v167_v53  ;;  %v174_v58 = vmul.f32 %v2832_v54, %v160_v46  ;;  %vm180_vm5 = vweird.f32 %v2832_v54 }
 0x125   :  { %2833 = vrsqrt.f32 %v162_v55  ;;  %vm181_vm7 = vmor %vm179_vm6, %vm180_vm5  ;;  %vm199_vm8 = vweird.f32 %v162_v55  ;;  %v188_v18 = vmul.f32 %v2830_v51, %v187_v11 }
 0x126   :  { %v175_v59 = vmul.f32 %v2832_v54, %v174_v58  ;;  %v172_v60 = vsel %vm171_vm4, %v2828_v45, %v168_v56 }
 0x127   :  { %v203_v1 = vmul.f32 %v172_v60, %v135_v20  ;;  %v192_v23 = vsel %vm191_vm13, %v2830_v51, %v188_v18 }
 0x128   :  { %v176_v62 = vmul.f32 0.5, %v175_v59  ;;  %v205_v25 = vmul.f32 %v192_v23, %v3209_v19  ;;  %v98_v59 = vld [vmem:[%s3954_s4] sm:$0xf] }
 0x129   :  { %v210_v9 = vmul.f32 %v2806_v2, %v203_v1  ;;  %v99_v60 = vsub.f32 1.0, %v98_v59 }
 0x12a   :  { %v177_v63 = vsub.f32 1.5, %v176_v62  ;;  %v212_v27 = vmul.f32 %v2806_v2, %v205_v25 }
 0x12b   :  { %v2834_v0 = vpop.eup %2833  ;;  %v3239_v16 = vadd.f32 %v2807_v10, %v210_v9  ;;  %v100_v61 = vmul.f32 -1e+09, %v99_v60 }
 0x12c   :  { %v178_v4 = vmul.f32 %v2832_v54, %v177_v63  ;;  %v194_v5 = vmul.f32 %v2834_v0, %v162_v55  ;;  %vm200_vm9 = vweird.f32 %v2834_v0 }
 0x12d   :  { %vm201_vm12 = vmor %vm199_vm8, %vm200_vm9  ;;  %v102_v62 = vrot.slane %v100_v61, 1 }
 0x12e   :  { %v182_v6 = vsel %vm181_vm7, %v2832_v54, %v178_v4  ;;  %v195_v7 = vmul.f32 %v2834_v0, %v194_v5  ;;  %v3289_v5 = vperm.slane %v100_v61, 0 }
 0x12f   :  { %v204_v8 = vmul.f32 %v182_v6, %v136_v29  ;;  %v3250_v29 = vadd.f32 %v2807_v10, %v212_v27  ;;  %v3285_v63 = vperm.slane %v102_v62, 0 }
 0x130   :  { %v196_v12 = vmul.f32 0.5, %v195_v7 }
 0x131   :  { %v211_v13 = vmul.f32 %v2806_v2, %v204_v8 }
 0x132   :  { %v197_v15 = vsub.f32 1.5, %v196_v12  ;;  %v103_v12 = vrot.slane %v100_v61, 2 }
 0x133   :  { %v3241_v17 = vadd.f32 %v2807_v10, %v211_v13 }
 0x134   :  { %v198_v20 = vmul.f32 %v2834_v0, %v197_v15  ;;  %v3295_v13 = vperm.slane %v103_v12, 0 }
 0x135   :  { %v225_v21 = vpack.c.bf16 %v3241_v17, %v3239_v16 }
 0x136   :  { %v202_v22 = vsel %vm201_vm12, %v2834_v0, %v198_v20 }
 0x137   :  { %2564 = vmatmul.msk.bf16.vlgmr.msra.gmra.mxu0 %vm111_vm0, %v225_v21  ;;  %v206_v24 = vmul.f32 %v202_v22, %v3217_v30 }
 0x139   :  { %v213_v26 = vmul.f32 %v2806_v2, %v206_v24  ;;  %v104_v24 = vrot.slane %v100_v61, 3 }
 0x13b   :  { %v3248_v28 = vadd.f32 %v2807_v10, %v213_v26  ;;  %v3301_v26 = vperm.slane %v104_v24, 0 }
 0x13d   :  { %v226_v31 = vpack.c.bf16 %v3248_v28, %v3250_v29 }
 0x147   :  { %2565 = vmatmul.msk.bf16.gmra.mxu0 %vm111_vm0, %v226_v31 }
 0x1b4   :  { %v258_v33 = vpop.f32.mrf.mxu0 }
 0x1b5   :  { %v259_v34 = vadd.f32 %v2808_v32, %v258_v33 }
 0x1b7   :  { %v268_v30 = vpack.c.bf16 %v259_v34, %v259_v34 }
 0x1b9   :  { %v273_v35 = vunpack.c.l.b16 %v268_v30 }
 0x1bb   :  { %v3258_v19 = vpack.c.b16 %v273_v35, %v273_v35 }
 0x1bc   :  { %v260_v36 = vpop.f32.mrf.mxu0 }
 0x1bd   :  { %v261_v37 = vadd.f32 %v2808_v32, %v260_v36  ;;  %275 = vrot.lane.b32.xlu0 %v3258_v19, %s3058_s28 }
 0x1bf   :  { %v269_v38 = vpack.c.bf16 %v261_v37, %v261_v37 }
 0x1c1   :  { %v298_v39 = vunpack.c.l.b16 %v269_v38 }
 0x1c3   :  { %v3262_v40 = vpack.c.b16 %v298_v39, %v298_v39 }
 0x1c4   :  { %v263_v41 = vpop.f32.mrf.mxu0 }
 0x1c5   :  { %v264_v42 = vadd.f32 %v2808_v32, %v263_v41  ;;  %300 = vrot.lane.b32.xlu2 %v3262_v40, %s3058_s28 }
 0x1c7   :  { %v270_v43 = vpack.c.bf16 %v264_v42, %v264_v42 }
 0x1c9   :  { %v322_v44 = vunpack.c.l.b16 %v270_v43 }
 0x1cb   :  { %v3266_v45 = vpack.c.b16 %v322_v44, %v322_v44 }
 0x1cc   :  { %v265_v46 = vpop.f32.mrf.mxu0 }
 0x1cd   :  { %v266_v47 = vadd.f32 %v2808_v32, %v265_v46  ;;  %324 = vrot.lane.b32.xlu1 %v3266_v45, %s3058_s28 }
 0x1cf   :  { %v271_v48 = vpack.c.bf16 %v266_v47, %v266_v47 }
 0x1d1   :  { %v346_v49 = vunpack.c.l.b16 %v271_v48 }
 0x1d3   :  { %v3270_v50 = vpack.c.b16 %v346_v49, %v346_v49 }
 0x1d5   :  { %348 = vrot.lane.b32.xlu2 %v3270_v50, %s3058_s28 }
 0x21f   :  { %v301_v51 = vpop.permute.xlu2 %300 }
 0x220   :  { %v306_v52 = vsel %vm277_vm14, %v301_v51, 0 }
 0x221   :  { %315 = vmatpush.bf16.xpose.msra.mxu2 %v306_v52 }
 0x228   :  { %2567 = vmatmul.msk.bf16.vlgmr.msra.gmra.mxu2 %vm277_vm14, %v269_v38 }
 0x22f   :  { %v349_v53 = vpop.permute.xlu2 %348  ;;  %v276_v54 = vpop.permute.xlu0 %275 }
 0x230   :  { %v282_v55 = vsel %vm277_vm14, %v276_v54, 0  ;;  %v354_v56 = vsel %vm277_vm14, %v349_v53, 0 }
 0x231   :  { %291 = vmatpush.bf16.xpose.msra.mxu1 %v282_v55 }
 0x238   :  { %2566 = vmatmul.msk.bf16.vlgmr.msra.gmra.mxu1 %vm277_vm14, %v268_v30 }
 0x239   :  { %363 = vmatpush.bf16.xpose.msrb.mxu1 %v354_v56 }
 0x23f   :  { %v325_v57 = vpop.permute.xlu1 %324 }
 0x240   :  { %v330_v58 = vsel %vm277_vm14, %v325_v57, 0 }
 0x241   :  { %339 = vmatpush.bf16.xpose.msra.mxu3 %v330_v58 }
 0x248   :  { %2568 = vmatmul.msk.bf16.vlgmr.msra.gmra.mxu3 %vm277_vm14, %v270_v43  ;;  %2569 = vmatmul.msk.bf16.vlgmr.msrb.gmra.mxu1 %vm277_vm14, %v271_v48 }
 0x2ab   :  { %v317_v0 = vpop.f32.mrf.mxu2 }
 0x2ac   :  { %v370_v1 = vmul.f32 0.25, %v317_v0 }
 0x2ae   :  { %v382_v2 = vadd.f32 %v3285_v63, %v370_v1 }
 0x2b0   :  { %v389_v3 = vsel %vm385_vm15, %v382_v2, -inf }
 0x2b1   :  { %390 = vmax.xlane.f32.xlu2 %v389_v3 }
 0x2b3   :  { %v319_v4 = vpop.f32.mrf.mxu2 }
 0x2b5   :  { %v293_v6 = vpop.f32.mrf.mxu1 }
 0x2b6   :  { %v369_v7 = vmul.f32 0.25, %v293_v6 }
 0x2b8   :  { %v381_v8 = vadd.f32 %v3289_v5, %v369_v7 }
 0x2ba   :  { %v386_v9 = vsel %vm385_vm15, %v381_v8, -inf }
 0x2bb   :  { %387 = vmax.xlane.f32.xlu0 %v386_v9 }
 0x2bd   :  { %v295_v10 = vpop.f32.mrf.mxu1 }
 0x2c5   :  { %v365_v11 = vpop.f32.mrf.mxu1 }
 0x2c6   :  { %v372_v25 = vmul.f32 0.25, %v365_v11 }
 0x2c8   :  { %v384_v27 = vadd.f32 %v3301_v26, %v372_v25 }
 0x2c9   :  { %456 = vrot.lane.b32.xlu2 %v3262_v40, %s3059_s0 }
 0x2ca   :  { %v395_v31 = vsel %vm385_vm15, %v384_v27, -inf }
 0x2cb   :  { %v341_v15 = vpop.f32.mrf.mxu3 }
 0x2cc   :  { %v371_v18 = vmul.f32 0.25, %v341_v15 }
 0x2cd   :  { %v367_v20 = vpop.f32.mrf.mxu1 }
 0x2ce   :  { %v383_v21 = vadd.f32 %v3295_v13, %v371_v18 }
 0x2cf   :  { %434 = vrot.lane.b32.xlu0 %v3258_v19, %s3059_s0 }
 0x2d0   :  { %v392_v22 = vsel %vm385_vm15, %v383_v21, -inf }
 0x2d1   :  { %393 = vmax.xlane.f32.xlu1 %v392_v22 }
 0x2d3   :  { %v343_v23 = vpop.f32.mrf.mxu3 }
 0x2f9   :  { %396 = vmax.xlane.f32.xlu0 %v395_v31 }
 0x30d   :  { %544 = vrot.lane.b32.xlu0 %v3262_v40, %s3060_s23 }
 0x315   :  { %542 = vrot.lane.b32.xlu0 %v3262_v40, %s3061_s1 }
 0x31d   :  { %477 = vrot.lane.b32.xlu0 %v3266_v45, %s3059_s0 }
 0x324   :  { %v391_v32 = vpop.xlane.xlu2 %390 }
 0x325   :  { %v399_v33 = vsub.f32 %v382_v2, %v391_v32  ;;  %498 = vrot.lane.b32.xlu0 %v3270_v50, %s3059_s0 }
 0x327   :  { %v404_v34 = vmul.f32 1.442695, %v399_v33 }
 0x329   :  { %2835 = vpow2.f32 %v404_v34 }
 0x32c   :  { %v457_v30 = vpop.permute.xlu2 %456 }
 0x32d   :  { %567 = vrot.lane.b32.xlu0 %v3266_v45, %s3060_s23  ;;  %v462_v35 = vsel %vm439_vm1, %v457_v30, 0 }
 0x32e   :  { %v388_v36 = vpop.xlane.xlu0 %387  ;;  %471 = vmatpush.bf16.msrb.mxu3 %v462_v35 }
 0x32f   :  { %v2836_v37 = vpop.eup %2835  ;;  %v398_v38 = vsub.f32 %v381_v8, %v388_v36 }
 0x330   :  { %v413_v39 = vsel %vm385_vm15, %v2836_v37, 0.0 }
 0x331   :  { %v402_v41 = vmul.f32 1.442695, %v398_v38  ;;  %414 = vadd.xlane.f32.xlu1 %v413_v39 }
 0x333   :  { %2837 = vpow2.f32 %v402_v41 }
 0x335   :  { %590 = vrot.lane.b32.xlu0 %v3270_v50, %s3060_s23 }
 0x339   :  { %v2838_v42 = vpop.eup %2837 }
 0x33a   :  { %v410_v43 = vsel %vm385_vm15, %v2838_v42, 0.0 }
 0x33b   :  { %411 = vadd.xlane.f32.xlu2 %v410_v43 }
 0x33d   :  { %565 = vrot.lane.b32.xlu0 %v3266_v45, %s3061_s1 }
 0x341   :  { %v435_v44 = vpop.permute.xlu0 %434 }
 0x342   :  { %v441_v46 = vsel %vm439_vm1, %v435_v44, 0 }
 0x343   :  { %450 = vmatpush.bf16.msrb.mxu2 %v441_v46 }
 0x344   :  { %v394_v47 = vpop.xlane.xlu1 %393 }
 0x345   :  { %v400_v48 = vsub.f32 %v383_v21, %v394_v47 }
 0x347   :  { %v406_v49 = vmul.f32 1.442695, %v400_v48 }
 0x349   :  { %2839 = vpow2.f32 %v406_v49 }
 0x34a   :  { %521 = vrot.lane.b32.xlu1 %v3258_v19, %s3060_s23 }
 0x34f   :  { %v2840_v54 = vpop.eup %2839 }
 0x350   :  { %v416_v55 = vsel %vm385_vm15, %v2840_v54, 0.0 }
 0x353   :  { %519 = vrot.lane.b32.xlu2 %v3258_v19, %s3061_s1 }
 0x36c   :  { %v397_v51 = vpop.xlane.xlu0 %396 }
 0x36d   :  { %v401_v52 = vsub.f32 %v384_v27, %v397_v51 }
 0x36f   :  { %v408_v53 = vmul.f32 1.442695, %v401_v52 }
 0x371   :  { %2841 = vpow2.f32 %v408_v53 }
 0x374   :  { %417 = vadd.xlane.f32.xlu1 %v416_v55 }
 0x377   :  { %v2842_v56 = vpop.eup %2841 }
 0x378   :  { %v419_v57 = vsel %vm385_vm15, %v2842_v56, 0.0 }
 0x37c   :  { %420 = vadd.xlane.f32.xlu2 %v419_v57 }
 0x37f   :  { %v545_v58 = vpop.permute.xlu0 %544 }
 0x380   :  { %v550_v59 = vsel %vm277_vm14, %v545_v58, 0 }
 0x381   :  { %559 = vmatpush.bf16.xpose.msra.mxu3 %v550_v59 }
 0x387   :  { %v543_v60 = vpop.permute.xlu0 %542 }
 0x38d   :  { %588 = vrot.lane.b32.xlu1 %v3270_v50, %s3061_s1 }
 0x38f   :  { %v478_v61 = vpop.permute.xlu0 %477 }
 0x390   :  { %v483_v62 = vsel %vm439_vm1, %v478_v61, 0 }
 0x391   :  { %492 = vmatpush.bf16.msrb.mxu0 %v483_v62 }
 0x397   :  { %v499_v0 = vpop.permute.xlu0 %498 }
 0x398   :  { %v504_v1 = vsel %vm439_vm1, %v499_v0, 0 }
 0x399   :  { %513 = vmatpush.bf16.msra.mxu1 %v504_v1 }
 0x39f   :  { %v568_v2 = vpop.permute.xlu0 %567 }
 0x3a0   :  { %v573_v3 = vsel %vm277_vm14, %v568_v2, 0 }
 0x3a1   :  { %582 = vmatpush.bf16.xpose.msra.mxu0 %v573_v3 }
 0x3a4   :  { %v415_v4 = vpop.xlane.xlu1 %414 }
 0x3a5   :  { %2843 = vrcp.f32 %v415_v4 }
 0x3a7   :  { %v591_v6 = vpop.permute.xlu0 %590 }
 0x3a8   :  { %v596_v7 = vsel %vm277_vm14, %v591_v6, 0 }
 0x3a9   :  { %605 = vmatpush.bf16.xpose.msrb.mxu1 %v596_v7 }
 0x3ab   :  { %v2844_v8 = vpop.eup %2843 }
 0x3ac   :  { %v427_v9 = vmul.f32 %v2844_v8, %v2836_v37 }
 0x3ae   :  { %v412_v10 = vpop.xlane.xlu2 %411  ;;  %v431_v11 = vpack.c.bf16 %v427_v9, %v427_v9 }
 0x3af   :  { %2845 = vrcp.f32 %v412_v10  ;;  %v566_v30 = vpop.permute.xlu0 %565 }
 0x3b0   :  { %2571 = vmatmul.msk.bf16.vlgmr.msrb.gmra.mxu3 %vm385_vm15, %v431_v11 }
 0x3b5   :  { %v2846_v12 = vpop.eup %2845 }
 0x3b6   :  { %v426_v15 = vmul.f32 %v2846_v12, %v2838_v42  ;;  %v520_v22 = vpop.permute.xlu2 %519 }
 0x3b8   :  { %v430_v18 = vpack.c.bf16 %v426_v15, %v426_v15 }
 0x3ba   :  { %2570 = vmatmul.msk.bf16.vlgmr.msrb.gmra.mxu2 %vm385_vm15, %v430_v18 }
 0x3bc   :  { %v522_v20 = vpop.permute.xlu1 %521 }
 0x3bd   :  { %v527_v21 = vsel %vm277_vm14, %v522_v20, 0 }
 0x3be   :  { %536 = vmatpush.bf16.xpose.msra.mxu2 %v527_v21 }
 0x3c0   :  { %2575 = vmatmul.msk.bf16.vlgmr.msra.gmra.mxu3 %vm277_vm14, %v543_v60 }
 0x3ca   :  { %2574 = vmatmul.msk.bf16.vlgmr.msra.gmra.mxu2 %vm277_vm14, %v520_v22 }
 0x3e7   :  { %v418_v23 = vpop.xlane.xlu1 %417 }
 0x3e8   :  { %2847 = vrcp.f32 %v418_v23 }
 0x3ee   :  { %v2848_v24 = vpop.eup %2847 }
 0x3ef   :  { %v428_v25 = vmul.f32 %v2848_v24, %v2840_v54  ;;  %v421_v27 = vpop.xlane.xlu2 %420 }
 0x3f0   :  { %2849 = vrcp.f32 %v421_v27 }
 0x3f1   :  { %v432_v31 = vpack.c.bf16 %v428_v25, %v428_v25 }
 0x3f3   :  { %2572 = vmatmul.msk.bf16.vlgmr.msrb.gmra.mxu0 %vm385_vm15, %v432_v31 }
 0x3f6   :  { %v2850_v32 = vpop.eup %2849 }
 0x3f7   :  { %v429_v33 = vmul.f32 %v2850_v32, %v2842_v56 }
 0x3f9   :  { %v433_v34 = vpack.c.bf16 %v429_v33, %v429_v33 }
 0x3fb   :  { %2573 = vmatmul.msk.bf16.vlgmr.msra.gmra.mxu1 %vm385_vm15, %v433_v34 }
 0x3ff   :  { %v589_v35 = vpop.permute.xlu1 %588 }
 0x403   :  { %2576 = vmatmul.msk.bf16.vlgmr.msra.gmra.mxu0 %vm277_vm14, %v566_v30 }
 0x40b   :  { %2577 = vmatmul.msk.bf16.vlgmr.msrb.gmra.mxu1 %vm277_vm14, %v589_v35 }
 0x433   :  { %v3345_v36 = vpop.f32.mrf.mxu3 }
 0x43b   :  { %v475_v37 = vpop.f32.mrf.mxu3 }
 0x43d   :  { %v3347_v38 = vpop.f32.mrf.mxu2 }
 0x443   :  { %v561_v39 = vpop.f32.mrf.mxu3 }
 0x444   :  { %v612_v41 = vmul.f32 0.25, %v561_v39 }
 0x445   :  { %v454_v42 = vpop.f32.mrf.mxu2 }
 0x446   :  { %v616_v43 = vadd.f32 %v612_v41, %v3285_v63 }
 0x448   :  { %v622_v44 = vsel %vm385_vm15, %v616_v43, -inf }
 0x449   :  { %623 = vmax.xlane.f32.xlu2 %v622_v44 }
 0x44b   :  { %v563_v46 = vpop.f32.mrf.mxu3 }
 0x44d   :  { %v538_v47 = vpop.f32.mrf.mxu2 }
 0x44e   :  { %v611_v48 = vmul.f32 0.25, %v538_v47 }
 0x450   :  { %v615_v49 = vadd.f32 %v611_v48, %v3289_v5 }
 0x452   :  { %v619_v51 = vsel %vm385_vm15, %v615_v49, -inf }
 0x453   :  { %620 = vmax.xlane.f32.xlu0 %v619_v51 }
 0x455   :  { %v540_v52 = vpop.f32.mrf.mxu2 }
 0x467   :  { %688 = vrot.lane.b32.xlu0 %v3262_v40, %s3062_s5 }
 0x470   :  { %v3355_v53 = vpop.f32.mrf.mxu0 }
 0x478   :  { %v496_v54 = vpop.f32.mrf.mxu0  ;;  %v3357_v55 = vpop.f32.mrf.mxu1 }
 0x480   :  { %v517_v56 = vpop.f32.mrf.mxu1  ;;  %v584_v57 = vpop.f32.mrf.mxu0 }
 0x481   :  { %v613_v58 = vmul.f32 0.25, %v584_v57 }
 0x483   :  { %v617_v59 = vadd.f32 %v613_v58, %v3295_v13 }
 0x485   :  { %v625_v60 = vsel %vm385_vm15, %v617_v59, -inf }
 0x486   :  { %626 = vmax.xlane.f32.xlu2 %v625_v60 }
 0x488   :  { %v586_v61 = vpop.f32.mrf.mxu0  ;;  %v607_v62 = vpop.f32.mrf.mxu1 }
 0x489   :  { %v614_v0 = vmul.f32 0.25, %v607_v62 }
 0x48b   :  { %v618_v1 = vadd.f32 %v614_v0, %v3301_v26 }
 0x48d   :  { %v628_v40 = vsel %vm385_vm15, %v618_v1, -inf }
 0x48e   :  { %629 = vmax.xlane.f32.xlu2 %v628_v40  ;;  %v2743_v40 = vld [vmem:[%s3924_s9 + $0x8] sm:$0xff] }
 0x490   :  { %v609_v2 = vpop.f32.mrf.mxu1 }
 0x4bc   :  { %v624_v3 = vpop.xlane.xlu2 %623 }
 0x4bd   :  { %v632_v4 = vsub.f32 %v616_v43, %v624_v3 }
 0x4bf   :  { %v637_v6 = vmul.f32 1.442695, %v632_v4 }
 0x4c1   :  { %2851 = vpow2.f32 %v637_v6 }
 0x4c6   :  { %v621_v7 = vpop.xlane.xlu0 %620 }
 0x4c7   :  { %v2852_v8 = vpop.eup %2851  ;;  %v631_v9 = vsub.f32 %v615_v49, %v621_v7 }
 0x4c8   :  { %v646_v10 = vsel %vm385_vm15, %v2852_v8, 0.0 }
 0x4c9   :  { %v635_v11 = vmul.f32 1.442695, %v631_v9  ;;  %647 = vadd.xlane.f32.xlu2 %v646_v10 }
 0x4cb   :  { %2853 = vpow2.f32 %v635_v11 }
 0x4d1   :  { %v2854_v12 = vpop.eup %2853 }
 0x4d2   :  { %v643_v15 = vsel %vm385_vm15, %v2854_v12, 0.0 }
 0x4d3   :  { %644 = vadd.xlane.f32.xlu1 %v643_v15 }
 0x4d9   :  { %v689_v18 = vpop.permute.xlu0 %688 }
 0x4da   :  { %v694_v20 = vsel %vm439_vm1, %v689_v18, 0 }
 0x4db   :  { %703 = vmatpush.bf16.msrb.mxu3 %v694_v20 }
 0x4e1   :  { %667 = vrot.lane.b32.xlu2 %v3258_v19, %s3062_s5 }
 0x4ec   :  { %709 = vrot.lane.b32.xlu1 %v3266_v45, %s3062_s5 }
 0x4f4   :  { %730 = vrot.lane.b32.xlu1 %v3270_v50, %s3062_s5 }
 0x4f9   :  { %v627_v21 = vpop.xlane.xlu2 %626 }
 0x4fa   :  { %v633_v22 = vsub.f32 %v617_v59, %v627_v21 }
 0x4fc   :  { %v639_v23 = vmul.f32 1.442695, %v633_v22 }
 0x4fe   :  { %2855 = vpow2.f32 %v639_v23 }
 0x501   :  { %v630_v24 = vpop.xlane.xlu2 %629 }
 0x502   :  { %v634_v25 = vsub.f32 %v618_v1, %v630_v24 }
 0x504   :  { %v641_v27 = vmul.f32 1.442695, %v634_v25  ;;  %v2856_v31 = vpop.eup %2855 }
 0x505   :  { %v649_v32 = vsel %vm385_vm15, %v2856_v31, 0.0 }
 0x506   :  { %2857 = vpow2.f32 %v641_v27 }
 0x50a   :  { %650 = vadd.xlane.f32.xlu2 %v649_v32 }
 0x50c   :  { %v2858_v33 = vpop.eup %2857 }
 0x50d   :  { %v652_v19 = vsel %vm385_vm15, %v2858_v33, 0.0 }
 0x50e   :  { %653 = vadd.xlane.f32.xlu0 %v652_v19 }
 0x53c   :  { %v648_v45 = vpop.xlane.xlu2 %647 }
 0x53d   :  { %2859 = vrcp.f32 %v648_v45 }
 0x543   :  { %v2860_v34 = vpop.eup %2859 }
 0x544   :  { %v660_v50 = vmul.f32 %v2860_v34, %v2852_v8  ;;  %v668_v30 = vpop.permute.xlu2 %667  ;;  %v2742_v8 = vld [vmem:[%s3924_s9] sm:$0xff] }
 0x545   :  { %v673_v35 = vsel %vm439_vm1, %v668_v30, 0 }
 0x546   :  { %v664_v37 = vpack.c.bf16 %v660_v50, %v660_v50  ;;  %v645_v39 = vpop.xlane.xlu1 %644  ;;  %682 = vmatpush.bf16.msrb.mxu2 %v673_v35 }
 0x547   :  { %2861 = vrcp.f32 %v645_v39 }
 0x548   :  { %2579 = vmatmul.msk.bf16.vlgmr.msrb.gmra.mxu3 %vm385_vm15, %v664_v37 }
 0x54a   :  { %805 = vmatpush.bf16.msra.mxu2 %v2743_v40 }
 0x54d   :  { %v2862_v41 = vpop.eup %2861 }
 0x54e   :  { %v659_v42 = vmul.f32 %v2862_v41, %v2854_v12  ;;  %806 = vmatpush.bf16.msra.mxu2 %v2742_v8 }
 0x550   :  { %v663_v43 = vpack.c.bf16 %v659_v42, %v659_v42 }
 0x552   :  { %2578 = vmatmul.msk.bf16.vlgmr.msrb.gmra.mxu2 %vm385_vm15, %v663_v43 }
 0x55e   :  { %v710_v44 = vpop.permute.xlu1 %709 }
 0x55f   :  { %v715_v46 = vsel %vm439_vm1, %v710_v44, 0 }
 0x560   :  { %724 = vmatpush.bf16.msrb.mxu0 %v715_v46 }
 0x566   :  { %v731_v47 = vpop.permute.xlu1 %730 }
 0x567   :  { %v736_v48 = vsel %vm439_vm1, %v731_v47, 0 }
 0x568   :  { %745 = vmatpush.bf16.msra.mxu1 %v736_v48 }
 0x57d   :  { %v651_v49 = vpop.xlane.xlu2 %650 }
 0x57e   :  { %2863 = vrcp.f32 %v651_v49 }
 0x581   :  { %v654_v51 = vpop.xlane.xlu0 %653 }
 0x582   :  { %2865 = vrcp.f32 %v654_v51 }
 0x584   :  { %v2864_v52 = vpop.eup %2863 }
 0x585   :  { %v661_v54 = vmul.f32 %v2864_v52, %v2856_v31 }
 0x587   :  { %v665_v56 = vpack.c.bf16 %v661_v54, %v661_v54 }
 0x588   :  { %v2866_v57 = vpop.eup %2865 }
 0x589   :  { %v662_v58 = vmul.f32 %v2866_v57, %v2858_v33  ;;  %2580 = vmatmul.msk.bf16.vlgmr.msrb.gmra.mxu0 %vm385_vm15, %v665_v56 }
 0x58b   :  { %v666_v59 = vpack.c.bf16 %v662_v58, %v662_v58 }
 0x58d   :  { %2581 = vmatmul.msk.bf16.vlgmr.msra.gmra.mxu1 %vm385_vm15, %v666_v59 }
 0x5cb   :  { %v705_v60 = vpop.f32.mrf.mxu3 }
 0x5d3   :  { %v707_v61 = vpop.f32.mrf.mxu3 }
 0x5d5   :  { %v684_v62 = vpop.f32.mrf.mxu2 }
 0x5d6   :  { %v2783_v0 = vpack.i.bf16 %v705_v60, %v684_v62  ;;  %v2745_v62 = vld [vmem:[%s3928_s13 + $0x8] sm:$0xff] }
 0x5d7   :  { %960 = vmatpush.bf16.msra.mxu3 %v2745_v62 }
 0x5d8   :  { %2784 = vrot.lane.b32.xlu1 %v2783_v0, %s3940_s24 }
 0x5dd   :  { %v686_v1 = vpop.f32.mrf.mxu2 }
 0x606   :  { %v726_v2 = vpop.f32.mrf.mxu0 }
 0x60a   :  { %v747_v3 = vpop.f32.mrf.mxu1 }
 0x60b   :  { %v2788_v4 = vpack.i.bf16 %v747_v3, %v726_v2  ;;  %v2744_v2 = vld [vmem:[%s3928_s13] sm:$0xff] }
 0x60c   :  { %961 = vmatpush.bf16.msra.mxu3 %v2744_v2 }
 0x60d   :  { %2789 = vrot.lane.b32.xlu2 %v2788_v4, %s3940_s24  ;;  %s2439_s24 = scalar_lea.vmem [#allocation2], %s3834_s25 }
 0x60e   :  { %v728_v6 = vpop.f32.mrf.mxu0 }
 0x612   :  { %v749_v7 = vpop.f32.mrf.mxu1 }
 0x64a   :  { %v2785_v9 = vpop.permute.xlu1 %2784 }
 0x64b   :  { %v2787_v10 = vunpack.i.h.bf16 %v2785_v9  ;;  %v2786_v11 = vunpack.i.l.bf16 %v2785_v9 }
 0x64d   :  { %v768_v12 = vsel %vm277_vm14, %v3345_v36, %v2787_v10  ;;  %v767_v15 = vsel %vm277_vm14, %v3347_v38, %v2786_v11  ;;  %v2809_v36 = vld [vmem:[%s3925_s10] ss:$0 sm:$0xff] }
 0x64e   :  { %v775_v18 = vpack.c.bf16 %v768_v12, %v767_v15 }
 0x650   :  { %2590 = vmatmul.msk.bf16.vlgmr.msra.gmra.mxu2 %vm111_vm0, %v775_v18 }
 0x667   :  { %v2790_v20 = vpop.permute.xlu2 %2789 }
 0x668   :  { %v2792_v21 = vunpack.i.h.bf16 %v2790_v20  ;;  %v2791_v22 = vunpack.i.l.bf16 %v2790_v20 }
 0x66a   :  { %v769_v23 = vsel %vm277_vm14, %v3355_v53, %v2791_v22  ;;  %v770_v24 = vsel %vm277_vm14, %v3357_v55, %v2792_v21 }
 0x66b   :  { %v776_v25 = vpack.c.bf16 %v770_v24, %v769_v23  ;;  %v2810_v24 = vld [vmem:[%s3926_s11] ss:$0 sm:$0xff] }
 0x66d   :  { %2591 = vmatmul.msk.bf16.gmra.mxu2 %vm111_vm0, %v776_v25 }
 0x6d3   :  { %v808_v38 = vpop.f32.mrf.mxu2 }
 0x6d4   :  { %v809_v27 = vadd.f32 %v2809_v36, %v808_v38 }
 0x6d6   :  { %v818_v31 = vadd.f32 %v809_v27, %v3239_v16 }
 0x6d8   :  { %v824_v32 = vsel %vm111_vm0, %v818_v31, 0.0 }
 0x6d9   :  { %825 = vadd.xlane.f32.xlu0 %v824_v32  ;;  %v2811_v32 = vld [vmem:[%s3927_s12] ss:$0 sm:$0xff] }
 0x6db   :  { %v810_v33 = vpop.f32.mrf.mxu2 }
 0x6dc   :  { %v811_v19 = vadd.f32 %v2809_v36, %v810_v33 }
 0x6de   :  { %v819_v53 = vadd.f32 %v811_v19, %v3241_v17 }
 0x6e0   :  { %v827_v55 = vsel %vm111_vm0, %v819_v53, 0.0 }
 0x6e1   :  { %828 = vadd.xlane.f32.xlu1 %v827_v55 }
 0x6f0   :  { %v813_v45 = vpop.f32.mrf.mxu2 }
 0x6f1   :  { %v814_v34 = vadd.f32 %v2809_v36, %v813_v45 }
 0x6f3   :  { %v820_v50 = vadd.f32 %v814_v34, %v3250_v29 }
 0x6f5   :  { %v830_v30 = vsel %vm111_vm0, %v820_v50, 0.0 }
 0x6f6   :  { %831 = vadd.xlane.f32.xlu0 %v830_v30 }
 0x6f8   :  { %v815_v35 = vpop.f32.mrf.mxu2 }
 0x6f9   :  { %v816_v37 = vadd.f32 %v2809_v36, %v815_v35 }
 0x6fb   :  { %v821_v16 = vadd.f32 %v816_v37, %v3248_v28 }
 0x6fd   :  { %v833_v39 = vsel %vm111_vm0, %v821_v16, 0.0 }
 0x6fe   :  { %834 = vadd.xlane.f32.xlu0 %v833_v39 }
 0x74c   :  { %v826_v41 = vpop.xlane.xlu0 %825 }
 0x74d   :  { %v836_v17 = vmul.f32 %v826_v41, %v3205_v14 }
 0x74f   :  { %v840_v42 = vsub.f32 %v818_v31, %v836_v17 }
 0x751   :  { %v844_v43 = vmul.f32 %v840_v42, %v840_v42 }
 0x753   :  { %v848_v44 = vsel %vm111_vm0, %v844_v43, 0.0 }
 0x754   :  { %v829_v46 = vpop.xlane.xlu1 %828  ;;  %849 = vadd.xlane.f32.xlu2 %v848_v44 }
 0x755   :  { %v837_v29 = vmul.f32 %v829_v46, %v3205_v14 }
 0x757   :  { %v841_v47 = vsub.f32 %v819_v53, %v837_v29 }
 0x759   :  { %v845_v48 = vmul.f32 %v841_v47, %v841_v47 }
 0x75b   :  { %v851_v49 = vsel %vm111_vm0, %v845_v48, 0.0 }
 0x75c   :  { %852 = vadd.xlane.f32.xlu0 %v851_v49 }
 0x769   :  { %v832_v28 = vpop.xlane.xlu0 %831 }
 0x76a   :  { %v838_v51 = vmul.f32 %v832_v28, %v3205_v14 }
 0x76c   :  { %v3415_v52 = vsub.f32 %v820_v50, %v838_v51 }
 0x76e   :  { %v846_v54 = vmul.f32 %v3415_v52, %v3415_v52 }
 0x770   :  { %v854_v56 = vsel %vm111_vm0, %v846_v54, 0.0 }
 0x771   :  { %855 = vadd.xlane.f32.xlu0 %v854_v56  ;;  %v835_v57 = vpop.xlane.xlu0 %834 }
 0x772   :  { %v839_v58 = vmul.f32 %v835_v57, %v3205_v14 }
 0x774   :  { %v3421_v59 = vsub.f32 %v821_v16, %v839_v58 }
 0x776   :  { %v847_v60 = vmul.f32 %v3421_v59, %v3421_v59 }
 0x778   :  { %v857_v61 = vsel %vm111_vm0, %v847_v60, 0.0 }
 0x779   :  { %858 = vadd.xlane.f32.xlu0 %v857_v61 }
 0x7c7   :  { %v850_v0 = vpop.xlane.xlu2 %849 }
 0x7c8   :  { %v860_v1 = vmul.f32 %v850_v0, %v3205_v14  ;;  %v2747_v0 = vld [vmem:[%s3930_s15 + $0x8] sm:$0xff] }
 0x7ca   :  { %v864_v40 = vadd.f32 1e-12, %v860_v1  ;;  %v2812_v1 = vld [vmem:[%s3929_s14] ss:$0 sm:$0xff] }
 0x7cc   :  { %2867 = vrsqrt.f32 %v864_v40  ;;  %vm874_vm3 = vweird.f32 %v864_v40 }
 0x7cf   :  { %v853_v3 = vpop.xlane.xlu0 %852 }
 0x7d0   :  { %v861_v4 = vmul.f32 %v853_v3, %v3205_v14 }
 0x7d2   :  { %v2868_v6 = vpop.eup %2867  ;;  %v865_v7 = vadd.f32 1e-12, %v861_v4 }
 0x7d3   :  { %v869_v8 = vmul.f32 %v2868_v6, %v864_v40  ;;  %vm875_vm2 = vweird.f32 %v2868_v6  ;;  %v2746_v40 = vld [vmem:[%s3930_s15] sm:$0xff] }
 0x7d4   :  { %2869 = vrsqrt.f32 %v865_v7  ;;  %vm876_vm4 = vmor %vm874_vm3, %vm875_vm2  ;;  %vm884_vm6 = vweird.f32 %v865_v7  ;;  %vm1047_vm2 = vcmask 523264  }
 0x7d5   :  { %v870_v9 = vmul.f32 %v2868_v6, %v869_v8 }
 0x7d7   :  { %v871_v10 = vmul.f32 0.5, %v870_v9 }
 0x7d9   :  { %v872_v11 = vsub.f32 1.5, %v871_v10 }
 0x7da   :  { %v2870_v12 = vpop.eup %2869 }
 0x7db   :  { %v873_v15 = vmul.f32 %v2868_v6, %v872_v11  ;;  %v879_v18 = vmul.f32 %v2870_v12, %v865_v7  ;;  %vm885_vm5 = vweird.f32 %v2870_v12 }
 0x7dc   :  { %vm886_vm7 = vmor %vm884_vm6, %vm885_vm5 }
 0x7dd   :  { %v880_v20 = vmul.f32 %v2870_v12, %v879_v18  ;;  %v877_v21 = vsel %vm876_vm4, %v2868_v6, %v873_v15 }
 0x7de   :  { %v908_v25 = vmul.f32 %v877_v21, %v840_v42 }
 0x7df   :  { %v881_v22 = vmul.f32 0.5, %v880_v20 }
 0x7e0   :  { %v915_v33 = vmul.f32 %v2810_v24, %v908_v25 }
 0x7e1   :  { %v882_v23 = vsub.f32 1.5, %v881_v22 }
 0x7e2   :  { %v3441_v45 = vadd.f32 %v2811_v32, %v915_v33 }
 0x7e3   :  { %v883_v36 = vmul.f32 %v2870_v12, %v882_v23 }
 0x7e4   :  { %v856_v38 = vpop.xlane.xlu0 %855 }
 0x7e5   :  { %v887_v27 = vsel %vm886_vm7, %v2870_v12, %v883_v36  ;;  %v862_v31 = vmul.f32 %v856_v38, %v3205_v14 }
 0x7e6   :  { %v909_v19 = vmul.f32 %v887_v27, %v841_v47 }
 0x7e7   :  { %v866_v53 = vadd.f32 1e-12, %v862_v31 }
 0x7e8   :  { %v916_v55 = vmul.f32 %v2810_v24, %v909_v19 }
 0x7e9   :  { %2871 = vrsqrt.f32 %v866_v53  ;;  %vm894_vm9 = vweird.f32 %v866_v53 }
 0x7ea   :  { %v3443_v34 = vadd.f32 %v2811_v32, %v916_v55 }
 0x7ec   :  { %v859_v50 = vpop.xlane.xlu0 %858  ;;  %v930_v30 = vpack.c.bf16 %v3443_v34, %v3441_v45 }
 0x7ed   :  { %v863_v35 = vmul.f32 %v859_v50, %v3205_v14 }
 0x7ee   :  { %2600 = vmatmul.msk.bf16.vlgmr.msra.gmra.mxu3 %vm111_vm0, %v930_v30 }
 0x7ef   :  { %v2872_v37 = vpop.eup %2871  ;;  %v867_v16 = vadd.f32 1e-12, %v863_v35 }
 0x7f0   :  { %v889_v39 = vmul.f32 %v2872_v37, %v866_v53  ;;  %vm895_vm8 = vweird.f32 %v2872_v37 }
 0x7f1   :  { %2873 = vrsqrt.f32 %v867_v16  ;;  %vm896_vm10 = vmor %vm894_vm9, %vm895_vm8  ;;  %vm904_vm12 = vweird.f32 %v867_v16 }
 0x7f2   :  { %v890_v41 = vmul.f32 %v2872_v37, %v889_v39 }
 0x7f4   :  { %v891_v17 = vmul.f32 0.5, %v890_v41 }
 0x7f6   :  { %v892_v42 = vsub.f32 1.5, %v891_v17 }
 0x7f7   :  { %v2874_v43 = vpop.eup %2873 }
 0x7f8   :  { %v893_v44 = vmul.f32 %v2872_v37, %v892_v42  ;;  %v899_v46 = vmul.f32 %v2874_v43, %v867_v16  ;;  %vm905_vm11 = vweird.f32 %v2874_v43 }
 0x7f9   :  { %vm906_vm13 = vmor %vm904_vm12, %vm905_vm11 }
 0x7fa   :  { %v900_v29 = vmul.f32 %v2874_v43, %v899_v46  ;;  %v897_v47 = vsel %vm896_vm10, %v2872_v37, %v893_v44 }
 0x7fb   :  { %v910_v28 = vmul.f32 %v897_v47, %v3415_v52  ;;  %v2749_v52 = vld [vmem:[%s3930_s15 + $0x18] sm:$0xff] }
 0x7fc   :  { %v901_v48 = vmul.f32 0.5, %v900_v29  ;;  %1058 = vmatpush.bf16.msra.mxu0 %v2749_v52 }
 0x7fd   :  { %v917_v57 = vmul.f32 %v2810_v24, %v910_v28 }
 0x7fe   :  { %v902_v49 = vsub.f32 1.5, %v901_v48 }
 0x7ff   :  { %v3451_v60 = vadd.f32 %v2811_v32, %v917_v57 }
 0x800   :  { %v903_v51 = vmul.f32 %v2874_v43, %v902_v49 }
 0x802   :  { %v907_v54 = vsel %vm906_vm13, %v2874_v43, %v903_v51 }
 0x803   :  { %v911_v56 = vmul.f32 %v907_v54, %v3421_v59  ;;  %v2748_v59 = vld [vmem:[%s3930_s15 + $0x10] sm:$0xff] }
 0x804   :  { %1059 = vmatpush.bf16.msra.mxu0 %v2748_v59 }
 0x805   :  { %v918_v58 = vmul.f32 %v2810_v24, %v911_v56  ;;  %v2813_v56 = vld [vmem:[%s3931_s16] ss:$0 sm:$0xff] }
 0x807   :  { %v3453_v61 = vadd.f32 %v2811_v32, %v918_v58 }
 0x808   :  { %1060 = vmatpush.bf16.msra.mxu0 %v2747_v0 }
 0x809   :  { %v931_v62 = vpack.c.bf16 %v3453_v61, %v3451_v60 }
 0x80b   :  { %2601 = vmatmul.msk.bf16.gmra.mxu3 %vm111_vm0, %v931_v62 }
 0x80c   :  { %1061 = vmatpush.bf16.msra.mxu0 %v2746_v40 }
 0x871   :  { %v963_v2 = vpop.f32.mrf.mxu3 }
 0x872   :  { %v964_v3 = vadd.f32 %v2812_v1, %v963_v2 }
 0x874   :  { %v977_v4 = vmul.f32 0.044715, %v964_v3  ;;  %v973_v25 = vmul.f32 0.5, %v964_v3 }
 0x876   :  { %v981_v6 = vmul.f32 %v977_v4, %v964_v3 }
 0x878   :  { %v985_v7 = vmul.f32 %v981_v6, %v964_v3 }
 0x879   :  { %v965_v8 = vpop.f32.mrf.mxu3 }
 0x87a   :  { %v989_v9 = vadd.f32 %v985_v7, %v964_v3  ;;  %v966_v10 = vadd.f32 %v2812_v1, %v965_v8 }
 0x87c   :  { %v978_v11 = vmul.f32 0.044715, %v966_v10  ;;  %v993_v12 = vmul.f32 0.7978846, %v989_v9  ;;  %v974_v36 = vmul.f32 0.5, %v966_v10 }
 0x87e   :  { %v982_v15 = vmul.f32 %v978_v11, %v966_v10  ;;  %2875 = vtanh.f32 %v993_v12 }
 0x880   :  { %v986_v18 = vmul.f32 %v982_v15, %v966_v10 }
 0x882   :  { %v990_v20 = vadd.f32 %v986_v18, %v966_v10 }
 0x884   :  { %v994_v21 = vmul.f32 0.7978846, %v990_v20  ;;  %v2876_v22 = vpop.eup %2875 }
 0x885   :  { %v1001_v23 = vadd.f32 1.0, %v2876_v22 }
 0x886   :  { %2877 = vtanh.f32 %v994_v21 }
 0x887   :  { %v1005_v32 = vmul.f32 %v1001_v23, %v973_v25 }
 0x88c   :  { %v2878_v24 = vpop.eup %2877 }
 0x88d   :  { %v1002_v38 = vadd.f32 1.0, %v2878_v24 }
 0x88e   :  { %v968_v27 = vpop.f32.mrf.mxu3 }
 0x88f   :  { %v969_v31 = vadd.f32 %v2812_v1, %v968_v27  ;;  %v1006_v33 = vmul.f32 %v1002_v38, %v974_v36 }
 0x891   :  { %v979_v19 = vmul.f32 0.044715, %v969_v31  ;;  %v1017_v53 = vpack.c.bf16 %v1006_v33, %v1005_v32  ;;  %v975_v47 = vmul.f32 0.5, %v969_v31 }
 0x893   :  { %v983_v55 = vmul.f32 %v979_v19, %v969_v31  ;;  %2618 = vmatmul.msk.bf16.vlgmr.msra.gmra.mxu0 %vm1047_vm2, %v1017_v53  ;;  %v2751_v19 = vld [vmem:[%s3922_s7 + $0x18] sm:$0xff] }
 0x894   :  { %1217 = vmatpush.bf16.msrb.mxu1 %v2751_v19 }
 0x895   :  { %v987_v50 = vmul.f32 %v983_v55, %v969_v31 }
 0x896   :  { %v970_v30 = vpop.f32.mrf.mxu3 }
 0x897   :  { %v971_v35 = vadd.f32 %v2812_v1, %v970_v30  ;;  %v991_v37 = vadd.f32 %v987_v50, %v969_v31  ;;  %v2750_v30 = vld [vmem:[%s3922_s7 + $0x10] sm:$0xff] }
 0x898   :  { %1218 = vmatpush.bf16.msrb.mxu1 %v2750_v30 }
 0x899   :  { %v980_v16 = vmul.f32 0.044715, %v971_v35  ;;  %v995_v41 = vmul.f32 0.7978846, %v991_v37  ;;  %v976_v48 = vmul.f32 0.5, %v971_v35 }
 0x89b   :  { %v984_v39 = vmul.f32 %v980_v16, %v971_v35  ;;  %2879 = vtanh.f32 %v995_v41 }
 0x89d   :  { %v988_v17 = vmul.f32 %v984_v39, %v971_v35 }
 0x89f   :  { %v992_v42 = vadd.f32 %v988_v17, %v971_v35 }
 0x8a1   :  { %v996_v43 = vmul.f32 0.7978846, %v992_v42  ;;  %v2880_v44 = vpop.eup %2879 }
 0x8a2   :  { %v1003_v46 = vadd.f32 1.0, %v2880_v44 }
 0x8a3   :  { %2881 = vtanh.f32 %v996_v43 }
 0x8a4   :  { %v1007_v28 = vmul.f32 %v1003_v46, %v975_v47 }
 0x8a9   :  { %v2882_v29 = vpop.eup %2881 }
 0x8aa   :  { %v1004_v49 = vadd.f32 1.0, %v2882_v29 }
 0x8ac   :  { %v1008_v51 = vmul.f32 %v1004_v49, %v976_v48 }
 0x8ae   :  { %v1018_v54 = vpack.c.bf16 %v1008_v51, %v1007_v28  ;;  %v2814_v51 = vld [vmem:[%s3932_s17] ss:$0 sm:$0xff] }
 0x8b0   :  { %2619 = vmatmul.msk.bf16.gmra.mxu0 %vm1047_vm2, %v1018_v54 }
 0x910   :  { %v1063_v57 = vpop.f32.mrf.mxu0 }
 0x911   :  { %v1064_v58 = vadd.f32 %v2813_v56, %v1063_v57 }
 0x913   :  { %v1073_v62 = vadd.f32 %v1064_v58, %v3441_v45 }
 0x915   :  { %v1079_v52 = vsel %vm111_vm0, %v1073_v62, 0.0 }
 0x916   :  { %1080 = vadd.xlane.f32.xlu1 %v1079_v52  ;;  %v2815_v52 = vld [vmem:[%s3933_s18] ss:$0 sm:$0xff] }
 0x918   :  { %v1065_v59 = vpop.f32.mrf.mxu0 }
 0x919   :  { %v1066_v0 = vadd.f32 %v2813_v56, %v1065_v59 }
 0x91b   :  { %v1074_v1 = vadd.f32 %v1066_v0, %v3443_v34 }
 0x91d   :  { %v1082_v40 = vsel %vm111_vm0, %v1074_v1, 0.0 }
 0x91e   :  { %1083 = vadd.xlane.f32.xlu0 %v1082_v40 }
 0x92d   :  { %v1068_v2 = vpop.f32.mrf.mxu0 }
 0x92e   :  { %v1069_v3 = vadd.f32 %v2813_v56, %v1068_v2 }
 0x930   :  { %v1075_v4 = vadd.f32 %v1069_v3, %v3451_v60 }
 0x932   :  { %v1085_v6 = vsel %vm111_vm0, %v1075_v4, 0.0 }
 0x933   :  { %1086 = vadd.xlane.f32.xlu1 %v1085_v6 }
 0x935   :  { %v1070_v7 = vpop.f32.mrf.mxu0 }
 0x936   :  { %v1071_v8 = vadd.f32 %v2813_v56, %v1070_v7 }
 0x938   :  { %v1076_v45 = vadd.f32 %v1071_v8, %v3453_v61 }
 0x93a   :  { %v1088_v9 = vsel %vm111_vm0, %v1076_v45, 0.0 }
 0x93b   :  { %1089 = vadd.xlane.f32.xlu0 %v1088_v9 }
 0x989   :  { %v1081_v10 = vpop.xlane.xlu1 %1080 }
 0x98a   :  { %v1091_v34 = vmul.f32 %v1081_v10, %v3205_v14 }
 0x98c   :  { %v1095_v11 = vsub.f32 %v1073_v62, %v1091_v34 }
 0x98e   :  { %v1099_v12 = vmul.f32 %v1095_v11, %v1095_v11 }
 0x990   :  { %v1103_v15 = vsel %vm111_vm0, %v1099_v12, 0.0 }
 0x991   :  { %v1084_v18 = vpop.xlane.xlu0 %1083  ;;  %1104 = vadd.xlane.f32.xlu1 %v1103_v15 }
 0x992   :  { %v1092_v60 = vmul.f32 %v1084_v18, %v3205_v14 }
 0x994   :  { %v1096_v20 = vsub.f32 %v1074_v1, %v1092_v60 }
 0x996   :  { %v1100_v21 = vmul.f32 %v1096_v20, %v1096_v20 }
 0x998   :  { %v1106_v22 = vsel %vm111_vm0, %v1100_v21, 0.0 }
 0x999   :  { %1107 = vadd.xlane.f32.xlu2 %v1106_v22 }
 0x9a6   :  { %v1087_v61 = vpop.xlane.xlu1 %1086 }
 0x9a7   :  { %v1093_v23 = vmul.f32 %v1087_v61, %v3205_v14 }
 0x9a9   :  { %v3491_v24 = vsub.f32 %v1075_v4, %v1093_v23 }
 0x9ab   :  { %v1101_v25 = vmul.f32 %v3491_v24, %v3491_v24 }
 0x9ad   :  { %v1109_v36 = vsel %vm111_vm0, %v1101_v25, 0.0 }
 0x9ae   :  { %v1090_v38 = vpop.xlane.xlu0 %1089  ;;  %1110 = vadd.xlane.f32.xlu0 %v1109_v36 }
 0x9af   :  { %v1094_v27 = vmul.f32 %v1090_v38, %v3205_v14 }
 0x9b1   :  { %v3497_v31 = vsub.f32 %v1076_v45, %v1094_v27 }
 0x9b3   :  { %v1102_v32 = vmul.f32 %v3497_v31, %v3497_v31 }
 0x9b5   :  { %v1112_v33 = vsel %vm111_vm0, %v1102_v32, 0.0 }
 0x9b6   :  { %1113 = vadd.xlane.f32.xlu1 %v1112_v33 }
 0xa04   :  { %v1105_v53 = vpop.xlane.xlu1 %1104 }
 0xa05   :  { %v1115_v55 = vmul.f32 %v1105_v53, %v3205_v14 }
 0xa07   :  { %v1119_v50 = vadd.f32 1e-12, %v1115_v55 }
 0xa09   :  { %2883 = vrsqrt.f32 %v1119_v50  ;;  %vm1129_vm4 = vweird.f32 %v1119_v50 }
 0xa0c   :  { %v1108_v35 = vpop.xlane.xlu2 %1107 }
 0xa0d   :  { %v1116_v37 = vmul.f32 %v1108_v35, %v3205_v14 }
 0xa0f   :  { %v2884_v16 = vpop.eup %2883  ;;  %v1120_v39 = vadd.f32 1e-12, %v1116_v37 }
 0xa10   :  { %v1124_v41 = vmul.f32 %v2884_v16, %v1119_v50  ;;  %vm1130_vm3 = vweird.f32 %v2884_v16 }
 0xa11   :  { %2885 = vrsqrt.f32 %v1120_v39  ;;  %vm1131_vm5 = vmor %vm1129_vm4, %vm1130_vm3  ;;  %vm1139_vm7 = vweird.f32 %v1120_v39 }
 0xa12   :  { %v1125_v17 = vmul.f32 %v2884_v16, %v1124_v41 }
 0xa14   :  { %v1126_v42 = vmul.f32 0.5, %v1125_v17 }
 0xa16   :  { %v1127_v43 = vsub.f32 1.5, %v1126_v42 }
 0xa17   :  { %v2886_v44 = vpop.eup %2885 }
 0xa18   :  { %v1128_v46 = vmul.f32 %v2884_v16, %v1127_v43  ;;  %v1134_v29 = vmul.f32 %v2886_v44, %v1120_v39  ;;  %vm1140_vm6 = vweird.f32 %v2886_v44 }
 0xa19   :  { %vm1141_vm8 = vmor %vm1139_vm7, %vm1140_vm6 }
 0xa1a   :  { %v1135_v47 = vmul.f32 %v2886_v44, %v1134_v29  ;;  %v1132_v48 = vsel %vm1131_vm5, %v2884_v16, %v1128_v46 }
 0xa1b   :  { %v1163_v54 = vmul.f32 %v1132_v48, %v1095_v11 }
 0xa1c   :  { %v1136_v49 = vmul.f32 0.5, %v1135_v47 }
 0xa1d   :  { %v1170_v59 = vmul.f32 %v2814_v51, %v1163_v54 }
 0xa1e   :  { %v1137_v28 = vsub.f32 1.5, %v1136_v49 }
 0xa1f   :  { %v3517_v2 = vadd.f32 %v2815_v52, %v1170_v59 }
 0xa20   :  { %v1138_v56 = vmul.f32 %v2886_v44, %v1137_v28 }
 0xa21   :  { %v1111_v57 = vpop.xlane.xlu0 %1110 }
 0xa22   :  { %v1142_v58 = vsel %vm1141_vm8, %v2886_v44, %v1138_v56  ;;  %v1117_v62 = vmul.f32 %v1111_v57, %v3205_v14 }
 0xa23   :  { %v1164_v0 = vmul.f32 %v1142_v58, %v1096_v20 }
 0xa24   :  { %v1121_v1 = vadd.f32 1e-12, %v1117_v62 }
 0xa25   :  { %v1171_v40 = vmul.f32 %v2814_v51, %v1164_v0 }
 0xa26   :  { %2887 = vrsqrt.f32 %v1121_v1  ;;  %vm1149_vm10 = vweird.f32 %v1121_v1 }
 0xa27   :  { %v3519_v3 = vadd.f32 %v2815_v52, %v1171_v40 }
 0xa29   :  { %v1114_v4 = vpop.xlane.xlu1 %1113  ;;  %v1186_v6 = vpack.c.bf16 %v3519_v3, %v3517_v2 }
 0xa2a   :  { %v1118_v7 = vmul.f32 %v1114_v4, %v3205_v14 }
 0xa2b   :  { %2633 = vmatmul.msk.bf16.vlgmr.msrb.gmra.mxu1 %vm111_vm0, %v1186_v6 }
 0xa2c   :  { %v2888_v8 = vpop.eup %2887  ;;  %v1122_v45 = vadd.f32 1e-12, %v1118_v7 }
 0xa2d   :  { %v1144_v9 = vmul.f32 %v2888_v8, %v1121_v1  ;;  %vm1150_vm9 = vweird.f32 %v2888_v8 }
 0xa2e   :  { %2889 = vrsqrt.f32 %v1122_v45  ;;  %vm1151_vm11 = vmor %vm1149_vm10, %vm1150_vm9  ;;  %vm1159_vm13 = vweird.f32 %v1122_v45 }
 0xa2f   :  { %v1145_v10 = vmul.f32 %v2888_v8, %v1144_v9 }
 0xa31   :  { %v1146_v34 = vmul.f32 0.5, %v1145_v10 }
 0xa33   :  { %v1147_v11 = vsub.f32 1.5, %v1146_v34 }
 0xa34   :  { %v2890_v12 = vpop.eup %2889 }
 0xa35   :  { %v1148_v15 = vmul.f32 %v2888_v8, %v1147_v11  ;;  %v1154_v18 = vmul.f32 %v2890_v12, %v1122_v45  ;;  %vm1160_vm12 = vweird.f32 %v2890_v12 }
 0xa36   :  { %vm1161_vm3 = vmor %vm1159_vm13, %vm1160_vm12 }
 0xa37   :  { %v1155_v60 = vmul.f32 %v2890_v12, %v1154_v18  ;;  %v1152_v20 = vsel %vm1151_vm11, %v2888_v8, %v1148_v15 }
 0xa38   :  { %v1165_v61 = vmul.f32 %v1152_v20, %v3491_v24  ;;  %v2816_v24 = vld [vmem:[%s3923_s8 + $0x1] ss:$0 sm:$0xff]  ;;  %s3955_s8 = smov 16  }
 0xa39   :  { %v1156_v21 = vmul.f32 0.5, %v1155_v60 }
 0xa3a   :  { %v1172_v38 = vmul.f32 %v2814_v51, %v1165_v61 }
 0xa3b   :  { %v1157_v22 = vsub.f32 1.5, %v1156_v21 }
 0xa3c   :  { %v3527_v32 = vadd.f32 %v2815_v52, %v1172_v38 }
 0xa3d   :  { %v1158_v23 = vmul.f32 %v2890_v12, %v1157_v22 }
 0xa3f   :  { %v1162_v25 = vsel %vm1161_vm3, %v2890_v12, %v1158_v23 }
 0xa40   :  { %v1166_v36 = vmul.f32 %v1162_v25, %v3497_v31 }
 0xa42   :  { %v1173_v27 = vmul.f32 %v2814_v51, %v1166_v36 }
 0xa44   :  { %v3529_v33 = vadd.f32 %v2815_v52, %v1173_v27 }
 0xa46   :  { %v1187_v19 = vpack.c.bf16 %v3529_v33, %v3527_v32 }
 0xa48   :  { %2634 = vmatmul.msk.bf16.gmra.mxu1 %vm111_vm0, %v1187_v19 }
 0xaa8   :  { %v1220_v53 = vpop.f32.mrf.mxu1 }
 0xaa9   :  { %v1221_v55 = vadd.f32 %v2816_v24, %v1220_v53 }
 0xaab   :  { %v1230_v50 = vpack.c.bf16 %v1221_v55, %v1221_v55 }
 0xaad   :  { %v1235_v30 = vunpack.c.l.b16 %v1230_v50 }
 0xaaf   :  { %v3537_v31 = vpack.c.b16 %v1235_v30, %v1235_v30 }
 0xab0   :  { %v1222_v35 = vpop.f32.mrf.mxu1 }
 0xab1   :  { %v1223_v37 = vadd.f32 %v2816_v24, %v1222_v35  ;;  %1237 = vrot.lane.b32.xlu2 %v3537_v31, %s3058_s28 }
 0xab3   :  { %v1231_v16 = vpack.c.bf16 %v1223_v37, %v1223_v37 }
 0xab5   :  { %v1259_v39 = vunpack.c.l.b16 %v1231_v16 }
 0xab7   :  { %v3541_v41 = vpack.c.b16 %v1259_v39, %v1259_v39 }
 0xab9   :  { %1261 = vrot.lane.b32.xlu0 %v3541_v41, %s3058_s28 }
 0xac1   :  { %1386 = vrot.lane.b32.xlu0 %v3537_v31, %s3059_s0 }
 0xac5   :  { %v1225_v17 = vpop.f32.mrf.mxu1 }
 0xac6   :  { %v1226_v42 = vadd.f32 %v2816_v24, %v1225_v17 }
 0xac8   :  { %v1232_v43 = vpack.c.bf16 %v1226_v42, %v1226_v42 }
 0xaca   :  { %v1283_v44 = vunpack.c.l.b16 %v1232_v43 }
 0xacc   :  { %v3547_v46 = vpack.c.b16 %v1283_v44, %v1283_v44 }
 0xacd   :  { %v1227_v29 = vpop.f32.mrf.mxu1 }
 0xace   :  { %v1228_v47 = vadd.f32 %v2816_v24, %v1227_v29  ;;  %1285 = vrot.lane.b32.xlu1 %v3547_v46, %s3058_s28 }
 0xad0   :  { %v1233_v48 = vpack.c.bf16 %v1228_v47, %v1228_v47 }
 0xad2   :  { %v1307_v49 = vunpack.c.l.b16 %v1233_v48 }
 0xad4   :  { %v3551_v28 = vpack.c.b16 %v1307_v49, %v1307_v49 }
 0xad6   :  { %1309 = vrot.lane.b32.xlu2 %v3551_v28, %s3058_s28  ;;  %s2544_s28 = scalar_lea.vmem [#allocation2], %s3845_s2 }
 0xb0b   :  { %v1238_v51 = vpop.permute.xlu2 %1237 }
 0xb0c   :  { %v1243_v54 = vsel %vm277_vm14, %v1238_v51, 0 }
 0xb0d   :  { %1252 = vmatpush.bf16.xpose.msrb.mxu2 %v1243_v54 }
 0xb14   :  { %2635 = vmatmul.msk.bf16.vlgmr.msrb.gmra.mxu2 %vm277_vm14, %v1230_v50 }
 0xb2b   :  { %v1262_v56 = vpop.permute.xlu0 %1261 }
 0xb2c   :  { %v1267_v57 = vsel %vm277_vm14, %v1262_v56, 0 }
 0xb2d   :  { %1276 = vmatpush.bf16.xpose.msrb.mxu3 %v1267_v57 }
 0xb30   :  { %v1310_v58 = vpop.permute.xlu2 %1309 }
 0xb31   :  { %v1315_v62 = vsel %vm277_vm14, %v1310_v58, 0 }
 0xb32   :  { %1324 = vmatpush.bf16.xpose.msra.mxu1 %v1315_v62 }
 0xb33   :  { %v1387_v52 = vpop.permute.xlu0 %1386 }
 0xb34   :  { %v1392_v59 = vsel %vm439_vm1, %v1387_v52, 0  ;;  %2636 = vmatmul.msk.bf16.vlgmr.msrb.gmra.mxu3 %vm277_vm14, %v1231_v16 }
 0xb35   :  { %1401 = vmatpush.bf16.msra.mxu2 %v1392_v59 }
 0xb39   :  { %2638 = vmatmul.msk.bf16.vlgmr.msra.gmra.mxu1 %vm277_vm14, %v1233_v48 }
 0xb40   :  { %v1286_v0 = vpop.permute.xlu1 %1285 }
 0xb41   :  { %v1291_v1 = vsel %vm277_vm14, %v1286_v0, 0 }
 0xb42   :  { %1300 = vmatpush.bf16.xpose.msrb.mxu0 %v1291_v1 }
 0xb49   :  { %2637 = vmatmul.msk.bf16.vlgmr.msrb.gmra.mxu0 %vm277_vm14, %v1232_v43 }
 0xb97   :  { %v1254_v40 = vpop.f32.mrf.mxu2 }
 0xb98   :  { %v1330_v4 = vmul.f32 0.25, %v1254_v40 }
 0xb9a   :  { %v1334_v6 = vadd.f32 %v1330_v4, %v3289_v5 }
 0xb9c   :  { %v1338_v7 = vsel %vm385_vm15, %v1334_v6, -inf }
 0xb9d   :  { %1339 = vmax.xlane.f32.xlu0 %v1338_v7 }
 0xb9f   :  { %v1256_v8 = vpop.f32.mrf.mxu2 }
 0xbb6   :  { %v1326_v45 = vpop.f32.mrf.mxu1 }
 0xbb7   :  { %v1333_v9 = vmul.f32 0.25, %v1326_v45  ;;  %v1278_v10 = vpop.f32.mrf.mxu3 }
 0xbb8   :  { %v1331_v34 = vmul.f32 0.25, %v1278_v10 }
 0xbb9   :  { %v1337_v11 = vadd.f32 %v1333_v9, %v3301_v26 }
 0xbba   :  { %v1335_v12 = vadd.f32 %v1331_v34, %v3285_v63 }
 0xbbb   :  { %v1347_v15 = vsel %vm385_vm15, %v1337_v11, -inf }
 0xbbc   :  { %1348 = vmax.xlane.f32.xlu0 %v1347_v15  ;;  %v1341_v18 = vsel %vm385_vm15, %v1335_v12, -inf }
 0xbbd   :  { %1342 = vmax.xlane.f32.xlu2 %v1341_v18 }
 0xbbe   :  { %v1328_v60 = vpop.f32.mrf.mxu1 }
 0xbbf   :  { %v1280_v20 = vpop.f32.mrf.mxu3 }
 0xbc6   :  { %v1302_v21 = vpop.f32.mrf.mxu0 }
 0xbc7   :  { %v1332_v22 = vmul.f32 0.25, %v1302_v21 }
 0xbc9   :  { %v1336_v61 = vadd.f32 %v1332_v22, %v3295_v13 }
 0xbcb   :  { %v1344_v23 = vsel %vm385_vm15, %v1336_v61, -inf }
 0xbcc   :  { %1345 = vmax.xlane.f32.xlu1 %v1344_v23 }
 0xbce   :  { %v1304_v25 = vpop.f32.mrf.mxu0 }
 0xbd0   :  { %1495 = vrot.lane.b32.xlu0 %v3541_v41, %s3060_s23 }
 0xbe5   :  { %1472 = vrot.lane.b32.xlu1 %v3537_v31, %s3060_s23 }
 0xbed   :  { %1470 = vrot.lane.b32.xlu1 %v3537_v31, %s3061_s1 }
 0xbf5   :  { %1493 = vrot.lane.b32.xlu1 %v3541_v41, %s3061_s1 }
 0xbfd   :  { %1428 = vrot.lane.b32.xlu1 %v3547_v46, %s3059_s0 }
 0xc10   :  { %v1340_v36 = vpop.xlane.xlu0 %1339 }
 0xc11   :  { %v1350_v38 = vsub.f32 %v1334_v6, %v1340_v36 }
 0xc13   :  { %v1354_v27 = vmul.f32 1.442695, %v1350_v38 }
 0xc15   :  { %2891 = vpow2.f32 %v1354_v27 }
 0xc1b   :  { %v2892_v19 = vpop.eup %2891 }
 0xc1c   :  { %v1362_v24 = vsel %vm385_vm15, %v2892_v19, 0.0 }
 0xc1d   :  { %1363 = vadd.xlane.f32.xlu2 %v1362_v24 }
 0xc2f   :  { %v1349_v17 = vpop.xlane.xlu0 %1348 }
 0xc30   :  { %v1343_v53 = vpop.xlane.xlu2 %1342  ;;  %v1353_v44 = vsub.f32 %v1337_v11, %v1349_v17 }
 0xc31   :  { %v1351_v55 = vsub.f32 %v1335_v12, %v1343_v53 }
 0xc32   :  { %v1360_v29 = vmul.f32 1.442695, %v1353_v44 }
 0xc33   :  { %v1356_v50 = vmul.f32 1.442695, %v1351_v55 }
 0xc35   :  { %2893 = vpow2.f32 %v1356_v50  ;;  %1407 = vrot.lane.b32.xlu2 %v3541_v41, %s3059_s0 }
 0xc3b   :  { %v2894_v30 = vpop.eup %2893 }
 0xc3c   :  { %v1365_v35 = vsel %vm385_vm15, %v2894_v30, 0.0 }
 0xc3d   :  { %1366 = vadd.xlane.f32.xlu1 %v1365_v35 }
 0xc3f   :  { %v1346_v37 = vpop.xlane.xlu1 %1345 }
 0xc40   :  { %v1352_v16 = vsub.f32 %v1336_v61, %v1346_v37 }
 0xc42   :  { %v1358_v39 = vmul.f32 1.442695, %v1352_v16  ;;  %v1496_v59 = vpop.permute.xlu0 %1495 }
 0xc43   :  { %v1501_v4 = vsel %vm277_vm14, %v1496_v59, 0 }
 0xc44   :  { %2895 = vpow2.f32 %v1358_v39 }
 0xc45   :  { %2897 = vpow2.f32 %v1360_v29 }
 0xc4a   :  { %v2896_v42 = vpop.eup %2895 }
 0xc4b   :  { %v1368_v43 = vsel %vm385_vm15, %v2896_v42, 0.0  ;;  %v2898_v49 = vpop.eup %2897 }
 0xc4c   :  { %1369 = vadd.xlane.f32.xlu0 %v1368_v43  ;;  %v1371_v51 = vsel %vm385_vm15, %v2898_v49, 0.0 }
 0xc56   :  { %1449 = vrot.lane.b32.xlu1 %v3551_v28, %s3059_s0  ;;  %s2546_s0 = scalar_lea.vmem [#allocation2], %s2728_s27 }
 0xc57   :  { %v1473_v47 = vpop.permute.xlu1 %1472 }
 0xc58   :  { %v1478_v48 = vsel %vm277_vm14, %v1473_v47, 0 }
 0xc59   :  { %1487 = vmatpush.bf16.xpose.msrb.mxu2 %v1478_v48 }
 0xc5e   :  { %1372 = vadd.xlane.f32.xlu2 %v1371_v51  ;;  %1518 = vrot.lane.b32.xlu1 %v3547_v46, %s3060_s23 }
 0xc5f   :  { %v1471_v54 = vpop.permute.xlu1 %1470 }
 0xc60   :  { %1541 = vrot.lane.b32.xlu0 %v3551_v28, %s3060_s23  ;;  %s3876_s23 = sld [smem:[#allocation3 + $0x7]] }
 0xc66   :  { %1539 = vrot.lane.b32.xlu1 %v3551_v28, %s3061_s1 }
 0xc67   :  { %v1494_v56 = vpop.permute.xlu1 %1493 }
 0xc6f   :  { %v1429_v57 = vpop.permute.xlu1 %1428 }
 0xc70   :  { %v1434_v58 = vsel %vm439_vm1, %v1429_v57, 0 }
 0xc71   :  { %1443 = vmatpush.bf16.msra.mxu0 %v1434_v58 }
 0xc76   :  { %1516 = vrot.lane.b32.xlu2 %v3547_v46, %s3061_s1 }
 0xc90   :  { %v1364_v62 = vpop.xlane.xlu2 %1363 }
 0xc91   :  { %2899 = vrcp.f32 %v1364_v62 }
 0xc97   :  { %v2900_v52 = vpop.eup %2899 }
 0xc98   :  { %v1378_v0 = vmul.f32 %v2900_v52, %v2892_v19  ;;  %v1408_v1 = vpop.permute.xlu2 %1407 }
 0xc99   :  { %v1413_v40 = vsel %vm439_vm1, %v1408_v1, 0 }
 0xc9a   :  { %v1382_v6 = vpack.c.bf16 %v1378_v0, %v1378_v0  ;;  %1422 = vmatpush.bf16.msra.mxu3 %v1413_v40 }
 0xc9c   :  { %2639 = vmatmul.msk.bf16.vlgmr.msra.gmra.mxu2 %vm385_vm15, %v1382_v6 }
 0xc9e   :  { %1510 = vmatpush.bf16.xpose.msrb.mxu3 %v1501_v4 }
 0xcac   :  { %2643 = vmatmul.msk.bf16.vlgmr.msrb.gmra.mxu2 %vm277_vm14, %v1471_v54 }
 0xcb0   :  { %v1367_v7 = vpop.xlane.xlu1 %1366 }
 0xcb1   :  { %2901 = vrcp.f32 %v1367_v7 }
 0xcb7   :  { %v2902_v8 = vpop.eup %2901 }
 0xcb8   :  { %v1379_v45 = vmul.f32 %v2902_v8, %v2894_v30 }
 0xcba   :  { %v1383_v9 = vpack.c.bf16 %v1379_v45, %v1379_v45 }
 0xcbc   :  { %2640 = vmatmul.msk.bf16.vlgmr.msra.gmra.mxu3 %vm385_vm15, %v1383_v9 }
 0xcbf   :  { %v1370_v10 = vpop.xlane.xlu0 %1369 }
 0xcc0   :  { %2903 = vrcp.f32 %v1370_v10 }
 0xcc6   :  { %v2904_v34 = vpop.eup %2903 }
 0xcc7   :  { %v1380_v11 = vmul.f32 %v2904_v34, %v2896_v42 }
 0xcc8   :  { %v1450_v12 = vpop.permute.xlu1 %1449 }
 0xcc9   :  { %v1384_v15 = vpack.c.bf16 %v1380_v11, %v1380_v11  ;;  %v1455_v18 = vsel %vm439_vm1, %v1450_v12, 0 }
 0xcca   :  { %1464 = vmatpush.bf16.msrb.mxu1 %v1455_v18 }
 0xccb   :  { %2641 = vmatmul.msk.bf16.vlgmr.msra.gmra.mxu0 %vm385_vm15, %v1384_v15 }
 0xccc   :  { %2644 = vmatmul.msk.bf16.vlgmr.msrb.gmra.mxu3 %vm277_vm14, %v1494_v56 }
 0xcd0   :  { %v1519_v60 = vpop.permute.xlu1 %1518 }
 0xcd1   :  { %v1524_v20 = vsel %vm277_vm14, %v1519_v60, 0  ;;  %v1373_v21 = vpop.xlane.xlu2 %1372 }
 0xcd2   :  { %2905 = vrcp.f32 %v1373_v21  ;;  %v1542_v22 = vpop.permute.xlu0 %1541  ;;  %1533 = vmatpush.bf16.xpose.msrb.mxu0 %v1524_v20 }
 0xcd3   :  { %v1547_v61 = vsel %vm277_vm14, %v1542_v22, 0 }
 0xcd4   :  { %1556 = vmatpush.bf16.xpose.msra.mxu1 %v1547_v61 }
 0xcd8   :  { %v2906_v23 = vpop.eup %2905  ;;  %v1540_v27 = vpop.permute.xlu1 %1539 }
 0xcd9   :  { %v1381_v25 = vmul.f32 %v2906_v23, %v2898_v49  ;;  %v1517_v36 = vpop.permute.xlu2 %1516 }
 0xcdb   :  { %v1385_v38 = vpack.c.bf16 %v1381_v25, %v1381_v25  ;;  %2645 = vmatmul.msk.bf16.vlgmr.msrb.gmra.mxu0 %vm277_vm14, %v1517_v36 }
 0xcdd   :  { %2642 = vmatmul.msk.bf16.vlgmr.msrb.gmra.mxu1 %vm385_vm15, %v1385_v38 }
 0xced   :  { %2646 = vmatmul.msk.bf16.vlgmr.msra.gmra.mxu1 %vm277_vm14, %v1540_v27 }
 0xd1f   :  { %v3613_v19 = vpop.f32.mrf.mxu2 }
 0xd27   :  { %v1405_v24 = vpop.f32.mrf.mxu2 }
 0xd2f   :  { %v1489_v53 = vpop.f32.mrf.mxu2 }
 0xd30   :  { %v1562_v55 = vmul.f32 0.25, %v1489_v53 }
 0xd32   :  { %v1566_v50 = vadd.f32 %v1562_v55, %v3289_v5 }
 0xd34   :  { %v1570_v30 = vsel %vm385_vm15, %v1566_v50, -inf }
 0xd35   :  { %1571 = vmax.xlane.f32.xlu1 %v1570_v30 }
 0xd37   :  { %v1491_v35 = vpop.f32.mrf.mxu2 }
 0xd3f   :  { %v3617_v37 = vpop.f32.mrf.mxu3 }
 0xd47   :  { %v1426_v16 = vpop.f32.mrf.mxu3 }
 0xd48   :  { %v3619_v39 = vpop.f32.mrf.mxu0 }
 0xd4f   :  { %v1512_v17 = vpop.f32.mrf.mxu3 }
 0xd50   :  { %v1563_v42 = vmul.f32 0.25, %v1512_v17  ;;  %v1447_v43 = vpop.f32.mrf.mxu0 }
 0xd52   :  { %v1567_v44 = vadd.f32 %v1563_v42, %v3285_v63 }
 0xd54   :  { %v1573_v29 = vsel %vm385_vm15, %v1567_v44, -inf }
 0xd55   :  { %1574 = vmax.xlane.f32.xlu0 %v1573_v29 }
 0xd57   :  { %v1514_v47 = vpop.f32.mrf.mxu3 }
 0xd58   :  { %v1535_v48 = vpop.f32.mrf.mxu0 }
 0xd59   :  { %v1564_v5 = vmul.f32 0.25, %v1535_v48 }
 0xd5a   :  { %v3623_v49 = vpop.f32.mrf.mxu1 }
 0xd5b   :  { %v1568_v51 = vadd.f32 %v1564_v5, %v3295_v13 }
 0xd5d   :  { %v1576_v54 = vsel %vm385_vm15, %v1568_v51, -inf }
 0xd5e   :  { %1577 = vmax.xlane.f32.xlu2 %v1576_v54 }
 0xd60   :  { %v1537_v56 = vpop.f32.mrf.mxu0 }
 0xd62   :  { %v1468_v57 = vpop.f32.mrf.mxu1 }
 0xd6a   :  { %v1558_v58 = vpop.f32.mrf.mxu1 }
 0xd6b   :  { %v1565_v62 = vmul.f32 0.25, %v1558_v58 }
 0xd6d   :  { %v1569_v52 = vadd.f32 %v1565_v62, %v3301_v26 }
 0xd6f   :  { %v1579_v63 = vsel %vm385_vm15, %v1569_v52, -inf }
 0xd70   :  { %1580 = vmax.xlane.f32.xlu1 %v1579_v63 }
 0xd72   :  { %v1560_v59 = vpop.f32.mrf.mxu1 }
 0xd73   :  { %v2753_v59 = vld [vmem:[%s3924_s9 + $0x18] sm:$0xff] }
 0xd76   :  { %1618 = vrot.lane.b32.xlu2 %v3537_v31, %s3062_s5 }
 0xd7e   :  { %1681 = vrot.lane.b32.xlu2 %v3551_v28, %s3062_s5 }
 0xda8   :  { %v1572_v13 = vpop.xlane.xlu1 %1571 }
 0xda9   :  { %v1582_v0 = vsub.f32 %v1566_v50, %v1572_v13  ;;  %v2752_v13 = vld [vmem:[%s3924_s9 + $0x10] sm:$0xff] }
 0xdab   :  { %v1586_v1 = vmul.f32 1.442695, %v1582_v0 }
 0xdad   :  { %2907 = vpow2.f32 %v1586_v1 }
 0xdb3   :  { %v2908_v40 = vpop.eup %2907 }
 0xdb4   :  { %v1594_v4 = vsel %vm385_vm15, %v2908_v40, 0.0 }
 0xdb5   :  { %1595 = vadd.xlane.f32.xlu1 %v1594_v4 }
 0xdc8   :  { %v1575_v26 = vpop.xlane.xlu0 %1574 }
 0xdc9   :  { %v1583_v8 = vsub.f32 %v1567_v44, %v1575_v26 }
 0xdcb   :  { %v1588_v31 = vmul.f32 1.442695, %v1583_v8 }
 0xdce   :  { %1639 = vrot.lane.b32.xlu1 %v3541_v41, %s3062_s5 }
 0xdd1   :  { %v1578_v6 = vpop.xlane.xlu2 %1577 }
 0xdd2   :  { %v1584_v7 = vsub.f32 %v1568_v51, %v1578_v6 }
 0xdd4   :  { %v1590_v45 = vmul.f32 1.442695, %v1584_v7 }
 0xdd6   :  { %2909 = vpow2.f32 %v1590_v45 }
 0xdd7   :  { %2911 = vpow2.f32 %v1588_v31 }
 0xdd9   :  { %v1619_v9 = vpop.permute.xlu2 %1618 }
 0xdda   :  { %v1624_v28 = vsel %vm439_vm1, %v1619_v9, 0 }
 0xddb   :  { %1633 = vmatpush.bf16.msra.mxu2 %v1624_v28 }
 0xddc   :  { %v2910_v10 = vpop.eup %2909 }
 0xddd   :  { %v1600_v34 = vsel %vm385_vm15, %v2910_v10, 0.0  ;;  %v2912_v12 = vpop.eup %2911 }
 0xdde   :  { %1601 = vadd.xlane.f32.xlu0 %v1600_v34  ;;  %v1597_v60 = vsel %vm385_vm15, %v2912_v12, 0.0 }
 0xddf   :  { %1758 = vmatpush.bf16.msrb.mxu2 %v2753_v59 }
 0xde1   :  { %v1682_v11 = vpop.permute.xlu2 %1681 }
 0xde2   :  { %v1687_v41 = vsel %vm439_vm1, %v1682_v11, 0 }
 0xde3   :  { %v1581_v15 = vpop.xlane.xlu1 %1580  ;;  %1696 = vmatpush.bf16.msrb.mxu1 %v1687_v41  ;;  %1759 = vmatpush.bf16.msrb.mxu2 %v2752_v13 }
 0xde4   :  { %v1585_v18 = vsub.f32 %v1569_v52, %v1581_v15 }
 0xde6   :  { %v1592_v20 = vmul.f32 1.442695, %v1585_v18  ;;  %1598 = vadd.xlane.f32.xlu0 %v1597_v60 }
 0xde8   :  { %2913 = vpow2.f32 %v1592_v20 }
 0xdee   :  { %v2914_v21 = vpop.eup %2913 }
 0xdef   :  { %v1603_v22 = vsel %vm385_vm15, %v2914_v21, 0.0 }
 0xdf0   :  { %1604 = vadd.xlane.f32.xlu0 %v1603_v22 }
 0xe04   :  { %1660 = vrot.lane.b32.xlu0 %v3547_v46, %s3062_s5  ;;  %s2554_s5 = scalar_lea.vmem [#allocation2], %s3876_s23 }
 0xe28   :  { %v1596_v61 = vpop.xlane.xlu1 %1595 }
 0xe29   :  { %2915 = vrcp.f32 %v1596_v61 }
 0xe2f   :  { %v2916_v23 = vpop.eup %2915 }
 0xe30   :  { %v1610_v25 = vmul.f32 %v2916_v23, %v2908_v40 }
 0xe32   :  { %v1614_v36 = vpack.c.bf16 %v1610_v25, %v1610_v25 }
 0xe34   :  { %2647 = vmatmul.msk.bf16.vlgmr.msra.gmra.mxu2 %vm385_vm15, %v1614_v36 }
 0xe40   :  { %v1640_v38 = vpop.permute.xlu1 %1639 }
 0xe41   :  { %v1645_v27 = vsel %vm439_vm1, %v1640_v38, 0 }
 0xe42   :  { %1654 = vmatpush.bf16.msra.mxu3 %v1645_v27 }
 0xe51   :  { %v1602_v24 = vpop.xlane.xlu0 %1601 }
 0xe59   :  { %v1599_v53 = vpop.xlane.xlu0 %1598 }
 0xe5a   :  { %2917 = vrcp.f32 %v1599_v53 }
 0xe60   :  { %v2918_v55 = vpop.eup %2917 }
 0xe61   :  { %v1611_v50 = vmul.f32 %v2918_v55, %v2912_v12 }
 0xe63   :  { %v1615_v30 = vpack.c.bf16 %v1611_v50, %v1611_v50  ;;  %v1605_v35 = vpop.xlane.xlu0 %1604 }
 0xe64   :  { %2919 = vrcp.f32 %v1605_v35 }
 0xe65   :  { %2648 = vmatmul.msk.bf16.vlgmr.msra.gmra.mxu3 %vm385_vm15, %v1615_v30  ;;  %2921 = vrcp.f32 %v1602_v24 }
 0xe6a   :  { %v2920_v46 = vpop.eup %2919 }
 0xe6b   :  { %v1613_v16 = vmul.f32 %v2920_v46, %v2914_v21  ;;  %v2922_v42 = vpop.eup %2921 }
 0xe6c   :  { %v1612_v43 = vmul.f32 %v2922_v42, %v2910_v10 }
 0xe6d   :  { %v1617_v17 = vpack.c.bf16 %v1613_v16, %v1613_v16 }
 0xe6e   :  { %v1616_v47 = vpack.c.bf16 %v1612_v43, %v1612_v43 }
 0xe6f   :  { %2650 = vmatmul.msk.bf16.vlgmr.msrb.gmra.mxu1 %vm385_vm15, %v1617_v17 }
 0xe76   :  { %v1661_v44 = vpop.permute.xlu0 %1660 }
 0xe77   :  { %v1666_v29 = vsel %vm439_vm1, %v1661_v44, 0 }
 0xe78   :  { %1675 = vmatpush.bf16.msra.mxu0 %v1666_v29  ;;  %v2755_v29 = vld [vmem:[%s3928_s13 + $0x18] sm:$0xff] }
 0xe79   :  { %1917 = vmatpush.bf16.msrb.mxu3 %v2755_v29 }
 0xe7b   :  { %2649 = vmatmul.msk.bf16.vlgmr.msra.gmra.mxu0 %vm385_vm15, %v1616_v47 }
 0xeb7   :  { %v1635_v48 = vpop.f32.mrf.mxu2 }
 0xebf   :  { %v1637_v5 = vpop.f32.mrf.mxu2 }
 0xee8   :  { %v1656_v51 = vpop.f32.mrf.mxu3 }
 0xee9   :  { %v2793_v54 = vpack.i.bf16 %v1656_v51, %v1635_v48  ;;  %v2754_v51 = vld [vmem:[%s3928_s13 + $0x10] sm:$0xff]  ;;  %s3956_s13 = sld [smem:[#allocation17_spill]] }
 0xeea   :  { %1918 = vmatpush.bf16.msrb.mxu3 %v2754_v51 }
 0xeeb   :  { %2794 = vrot.lane.b32.xlu1 %v2793_v54, %s3955_s8 }
 0xeec   :  { %v1698_v56 = vpop.f32.mrf.mxu1 }
 0xef0   :  { %v1658_v57 = vpop.f32.mrf.mxu3 }
 0xef4   :  { %v1700_v58 = vpop.f32.mrf.mxu1 }
 0xef8   :  { %v1677_v62 = vpop.f32.mrf.mxu0 }
 0xef9   :  { %v2798_v52 = vpack.i.bf16 %v1698_v56, %v1677_v62 }
 0xefb   :  { %2799 = vrot.lane.b32.xlu2 %v2798_v52, %s3955_s8  ;;  %s2441_s8 = scalar_lea.vmem [#allocation2], %s3843_s26  ;;  %s2515_s26 = sshll.u32 %s3936_s21, 4  ;;  %s2516_s26 = int_to_ptr.hbm [resolvable:$true] %s2515_s26 }
 0xf00   :  { %v1679_v63 = vpop.f32.mrf.mxu0 }
 0xf55   :  { %v2800_v7 = vpop.permute.xlu2 %2799 }
 0xf56   :  { %v2802_v8 = vunpack.i.h.bf16 %v2800_v7  ;;  %v2801_v45 = vunpack.i.l.bf16 %v2800_v7 }
 0xf58   :  { %v1720_v31 = vsel %vm277_vm14, %v3619_v39, %v2801_v45  ;;  %v1721_v9 = vsel %vm277_vm14, %v3623_v49, %v2802_v8 }
 0xf59   :  { %v1728_v28 = vpack.c.bf16 %v1721_v9, %v1720_v31 }
 0xf5d   :  { %v2795_v0 = vpop.permute.xlu1 %2794 }
 0xf5e   :  { %v2797_v1 = vunpack.i.h.bf16 %v2795_v0  ;;  %v2796_v40 = vunpack.i.l.bf16 %v2795_v0 }
 0xf60   :  { %v1719_v4 = vsel %vm277_vm14, %v3617_v37, %v2797_v1  ;;  %v1718_v26 = vsel %vm277_vm14, %v3613_v19, %v2796_v40  ;;  %v2817_v37 = vld [vmem:[%s3925_s10 + $0x1] ss:$0 sm:$0xff]  ;;  %s2456_s10 = sld [smem:[#allocation6]] }
 0xf61   :  { %v1727_v6 = vpack.c.bf16 %v1719_v4, %v1718_v26 }
 0xf63   :  { %2664 = vmatmul.msk.bf16.vlgmr.msrb.gmra.mxu2 %vm111_vm0, %v1727_v6 }
 0xf73   :  { %2665 = vmatmul.msk.bf16.gmra.mxu2 %vm111_vm0, %v1728_v28 }
 0xfe6   :  { %v1761_v19 = vpop.f32.mrf.mxu2 }
 0xfe7   :  { %v1762_v10 = vadd.f32 %v2817_v37, %v1761_v19 }
 0xfe9   :  { %v1771_v34 = vadd.f32 %v1762_v10, %v3517_v2 }
 0xfeb   :  { %v1779_v11 = vsel %vm111_vm0, %v1771_v34, 0.0 }
 0xfec   :  { %1780 = vadd.xlane.f32.xlu1 %v1779_v11 }
 0xfee   :  { %v1763_v12 = vpop.f32.mrf.mxu2 }
 0xfef   :  { %v1764_v41 = vadd.f32 %v2817_v37, %v1763_v12 }
 0xff1   :  { %v1772_v39 = vadd.f32 %v1764_v41, %v3519_v3 }
 0xff3   :  { %v1782_v49 = vsel %vm111_vm0, %v1772_v39, 0.0 }
 0xff4   :  { %1783 = vadd.xlane.f32.xlu2 %v1782_v49 }
 0xff6   :  { %v1766_v15 = vpop.f32.mrf.mxu2 }
 0xff7   :  { %v1767_v18 = vadd.f32 %v2817_v37, %v1766_v15 }
 0xff9   :  { %v1773_v60 = vadd.f32 %v1767_v18, %v3527_v32 }
 0xffb   :  { %v1785_v20 = vsel %vm111_vm0, %v1773_v60, 0.0 }
 0xffc   :  { %1786 = vadd.xlane.f32.xlu0 %v1785_v20 }
 0xffe   :  { %v1768_v21 = vpop.f32.mrf.mxu2 }
 0xfff   :  { %v1769_v22 = vadd.f32 %v2817_v37, %v1768_v21  ;;  %v2818_v37 = vld [vmem:[%s3926_s11 + $0x1] ss:$0 sm:$0xff] }
0x1001   :  { %v1774_v2 = vadd.f32 %v1769_v22, %v3529_v33 }
0x1003   :  { %v1788_v61 = vsel %vm111_vm0, %v1774_v2, 0.0 }
0x1004   :  { %1789 = vadd.xlane.f32.xlu1 %v1788_v61 }
0x105f   :  { %v1781_v23 = vpop.xlane.xlu1 %1780 }
0x1060   :  { %v1791_v3 = vmul.f32 %v1781_v23, %v3205_v14 }
0x1062   :  { %v1795_v25 = vsub.f32 %v1771_v34, %v1791_v3 }
0x1064   :  { %v1799_v36 = vmul.f32 %v1795_v25, %v1795_v25 }
0x1066   :  { %v1803_v38 = vsel %vm111_vm0, %v1799_v36, 0.0 }
0x1067   :  { %1804 = vadd.xlane.f32.xlu2 %v1803_v38  ;;  %v1784_v27 = vpop.xlane.xlu2 %1783 }
0x1068   :  { %v1792_v32 = vmul.f32 %v1784_v27, %v3205_v14 }
0x106a   :  { %v3681_v24 = vsub.f32 %v1772_v39, %v1792_v32  ;;  %v2819_v39 = vld [vmem:[%s3927_s12 + $0x1] ss:$0 sm:$0xff] }
0x106c   :  { %v1800_v53 = vmul.f32 %v3681_v24, %v3681_v24 }
0x106e   :  { %v1806_v33 = vsel %vm111_vm0, %v1800_v53, 0.0 }
0x106f   :  { %1807 = vadd.xlane.f32.xlu0 %v1806_v33  ;;  %v1787_v55 = vpop.xlane.xlu0 %1786 }
0x1070   :  { %v1793_v50 = vmul.f32 %v1787_v55, %v3205_v14 }
0x1072   :  { %v3687_v30 = vsub.f32 %v1773_v60, %v1793_v50 }
0x1074   :  { %v1801_v35 = vmul.f32 %v3687_v30, %v3687_v30 }
0x1076   :  { %v1809_v46 = vsel %vm111_vm0, %v1801_v35, 0.0 }
0x1077   :  { %v1790_v16 = vpop.xlane.xlu1 %1789  ;;  %1810 = vadd.xlane.f32.xlu1 %v1809_v46 }
0x1078   :  { %v1794_v17 = vmul.f32 %v1790_v16, %v3205_v14 }
0x107a   :  { %v3693_v42 = vsub.f32 %v1774_v2, %v1794_v17  ;;  %v2758_v17 = vld [vmem:[%s3930_s15 + $0x30] sm:$0xff] }
0x107c   :  { %v1802_v43 = vmul.f32 %v3693_v42, %v3693_v42 }
0x107e   :  { %v1812_v44 = vsel %vm111_vm0, %v1802_v43, 0.0  ;;  %v2820_v43 = vld [vmem:[%s3929_s14 + $0x1] ss:$0 sm:$0xff]  ;;  %s3868_s14 = sld [smem:[#allocation3 + $0x1]] }
0x107f   :  { %1813 = vadd.xlane.f32.xlu2 %v1812_v44  ;;  %v2756_v44 = vld [vmem:[%s3930_s15 + $0x20] sm:$0xff] }
0x1084   :  { %s2548_s1 = scalar_lea.vmem [#allocation2], %s3868_s14 }
0x10da   :  { %v1805_v47 = vpop.xlane.xlu2 %1804 }
0x10db   :  { %v1815_v48 = vmul.f32 %v1805_v47, %v3205_v14 }
0x10dd   :  { %v1819_v5 = vadd.f32 1e-12, %v1815_v48 }
0x10df   :  { %2923 = vrsqrt.f32 %v1819_v5  ;;  %vm1829_vm15 = vweird.f32 %v1819_v5 }
0x10e2   :  { %v1808_v54 = vpop.xlane.xlu0 %1807 }
0x10e3   :  { %v1816_v56 = vmul.f32 %v1808_v54, %v3205_v14 }
0x10e5   :  { %v2924_v57 = vpop.eup %2923  ;;  %v1820_v58 = vadd.f32 1e-12, %v1816_v56 }
0x10e6   :  { %v1824_v62 = vmul.f32 %v2924_v57, %v1819_v5  ;;  %vm1830_vm14 = vweird.f32 %v2924_v57 }
0x10e7   :  { %2925 = vrsqrt.f32 %v1820_v58  ;;  %vm1831_vm1 = vmor %vm1829_vm15, %vm1830_vm14  ;;  %vm1839_vm5 = vweird.f32 %v1820_v58 }
0x10e8   :  { %v1825_v52 = vmul.f32 %v2924_v57, %v1824_v62 }
0x10ea   :  { %v1826_v63 = vmul.f32 0.5, %v1825_v52  ;;  %v1811_v59 = vpop.xlane.xlu1 %1810 }
0x10eb   :  { %v1817_v13 = vmul.f32 %v1811_v59, %v3205_v14 }
0x10ec   :  { %v1827_v0 = vsub.f32 1.5, %v1826_v63 }
0x10ed   :  { %v2926_v1 = vpop.eup %2925  ;;  %v1821_v40 = vadd.f32 1e-12, %v1817_v13 }
0x10ee   :  { %v1828_v4 = vmul.f32 %v2924_v57, %v1827_v0  ;;  %v1834_v26 = vmul.f32 %v2926_v1, %v1820_v58  ;;  %vm1840_vm4 = vweird.f32 %v2926_v1 }
0x10ef   :  { %2927 = vrsqrt.f32 %v1821_v40  ;;  %vm1841_vm6 = vmor %vm1839_vm5, %vm1840_vm4  ;;  %vm1849_vm8 = vweird.f32 %v1821_v40 }
0x10f0   :  { %v1835_v6 = vmul.f32 %v2926_v1, %v1834_v26  ;;  %v1832_v7 = vsel %vm1831_vm1, %v2924_v57, %v1828_v4 }
0x10f1   :  { %v1863_v19 = vmul.f32 %v1832_v7, %v1795_v25 }
0x10f2   :  { %v1836_v8 = vmul.f32 0.5, %v1835_v6  ;;  %v1814_v45 = vpop.xlane.xlu2 %1813 }
0x10f3   :  { %v1818_v31 = vmul.f32 %v1814_v45, %v3205_v14  ;;  %v1870_v49 = vmul.f32 %v2818_v37, %v1863_v19 }
0x10f4   :  { %v1837_v9 = vsub.f32 1.5, %v1836_v8 }
0x10f5   :  { %v2928_v28 = vpop.eup %2927  ;;  %v1822_v10 = vadd.f32 1e-12, %v1818_v31  ;;  %v3715_v22 = vadd.f32 %v2819_v39, %v1870_v49 }
0x10f6   :  { %v1838_v34 = vmul.f32 %v2926_v1, %v1837_v9  ;;  %v1844_v11 = vmul.f32 %v2928_v28, %v1821_v40  ;;  %vm1850_vm7 = vweird.f32 %v2928_v28 }
0x10f7   :  { %2929 = vrsqrt.f32 %v1822_v10  ;;  %vm1851_vm9 = vmor %vm1849_vm8, %vm1850_vm7  ;;  %vm1859_vm11 = vweird.f32 %v1822_v10 }
0x10f8   :  { %v1842_v12 = vsel %vm1841_vm6, %v2926_v1, %v1838_v34  ;;  %v1845_v41 = vmul.f32 %v2928_v28, %v1844_v11 }
0x10f9   :  { %v1864_v15 = vmul.f32 %v1842_v12, %v3681_v24 }
0x10fa   :  { %v1846_v18 = vmul.f32 0.5, %v1845_v41 }
0x10fb   :  { %v1871_v60 = vmul.f32 %v2818_v37, %v1864_v15 }
0x10fc   :  { %v1847_v20 = vsub.f32 1.5, %v1846_v18 }
0x10fd   :  { %v2930_v21 = vpop.eup %2929  ;;  %v3717_v2 = vadd.f32 %v2819_v39, %v1871_v60 }
0x10fe   :  { %v1848_v61 = vmul.f32 %v2928_v28, %v1847_v20  ;;  %v1854_v23 = vmul.f32 %v2930_v21, %v1822_v10  ;;  %vm1860_vm10 = vweird.f32 %v2930_v21 }
0x10ff   :  { %v1886_v3 = vpack.c.bf16 %v3717_v2, %v3715_v22  ;;  %vm1861_vm12 = vmor %vm1859_vm11, %vm1860_vm10 }
0x1100   :  { %v1855_v25 = vmul.f32 %v2930_v21, %v1854_v23  ;;  %v1852_v36 = vsel %vm1851_vm9, %v2928_v28, %v1848_v61 }
0x1101   :  { %2681 = vmatmul.msk.bf16.vlgmr.msrb.gmra.mxu3 %vm111_vm0, %v1886_v3  ;;  %v1865_v32 = vmul.f32 %v1852_v36, %v3687_v30  ;;  %v2759_v30 = vld [vmem:[%s3930_s15 + $0x38] sm:$0xff] }
0x1102   :  { %v1856_v38 = vmul.f32 0.5, %v1855_v25  ;;  %2016 = vmatpush.bf16.msrb.mxu0 %v2759_v30 }
0x1103   :  { %v1872_v55 = vmul.f32 %v2818_v37, %v1865_v32 }
0x1104   :  { %v1857_v27 = vsub.f32 1.5, %v1856_v38 }
0x1105   :  { %v3724_v35 = vadd.f32 %v2819_v39, %v1872_v55 }
0x1106   :  { %v1858_v24 = vmul.f32 %v2930_v21, %v1857_v27  ;;  %2017 = vmatpush.bf16.msrb.mxu0 %v2758_v17  ;;  %v2821_v27 = vld [vmem:[%s3931_s16 + $0x1] ss:$0 sm:$0xff]  ;;  %s3872_s16 = sld [smem:[#allocation3 + $0x5]] }
0x1108   :  { %v1862_v53 = vsel %vm1861_vm12, %v2930_v21, %v1858_v24 }
0x1109   :  { %v1866_v33 = vmul.f32 %v1862_v53, %v3693_v42  ;;  %v2757_v42 = vld [vmem:[%s3930_s15 + $0x28] sm:$0xff]  ;;  %s3870_s15 = sld [smem:[#allocation3 + $0x3]] }
0x110a   :  { %2018 = vmatpush.bf16.msrb.mxu0 %v2757_v42 }
0x110b   :  { %v1873_v50 = vmul.f32 %v2818_v37, %v1866_v33 }
0x110d   :  { %v3726_v46 = vadd.f32 %v2819_v39, %v1873_v50 }
0x110e   :  { %2019 = vmatpush.bf16.msrb.mxu0 %v2756_v44 }
0x110f   :  { %v1887_v16 = vpack.c.bf16 %v3726_v46, %v3724_v35  ;;  %s2550_s9 = scalar_lea.vmem [#allocation2], %s3870_s15 }
0x1111   :  { %2682 = vmatmul.msk.bf16.gmra.mxu3 %vm111_vm0, %v1887_v16 }
0x1184   :  { %v1920_v29 = vpop.f32.mrf.mxu3 }
0x1185   :  { %v1921_v47 = vadd.f32 %v2820_v43, %v1920_v29 }
0x1187   :  { %v1934_v48 = vmul.f32 0.044715, %v1921_v47  ;;  %v1930_v37 = vmul.f32 0.5, %v1921_v47 }
0x1189   :  { %v1938_v5 = vmul.f32 %v1934_v48, %v1921_v47 }
0x118b   :  { %v1942_v51 = vmul.f32 %v1938_v5, %v1921_v47 }
0x118c   :  { %v1922_v54 = vpop.f32.mrf.mxu3 }
0x118d   :  { %v1946_v56 = vadd.f32 %v1942_v51, %v1921_v47  ;;  %v1923_v57 = vadd.f32 %v2820_v43, %v1922_v54 }
0x118f   :  { %v1935_v58 = vmul.f32 0.044715, %v1923_v57  ;;  %v1950_v62 = vmul.f32 0.7978846, %v1946_v56  ;;  %v1931_v19 = vmul.f32 0.5, %v1923_v57 }
0x1191   :  { %v1939_v52 = vmul.f32 %v1935_v58, %v1923_v57  ;;  %2931 = vtanh.f32 %v1950_v62 }
0x1193   :  { %v1943_v63 = vmul.f32 %v1939_v52, %v1923_v57 }
0x1194   :  { %v1925_v59 = vpop.f32.mrf.mxu3 }
0x1195   :  { %v1947_v13 = vadd.f32 %v1943_v63, %v1923_v57  ;;  %v1926_v0 = vadd.f32 %v2820_v43, %v1925_v59 }
0x1197   :  { %v1951_v1 = vmul.f32 0.7978846, %v1947_v13  ;;  %v1936_v40 = vmul.f32 0.044715, %v1926_v0  ;;  %v2932_v26 = vpop.eup %2931  ;;  %v1932_v61 = vmul.f32 0.5, %v1926_v0 }
0x1198   :  { %v1958_v31 = vadd.f32 1.0, %v2932_v26 }
0x1199   :  { %2933 = vtanh.f32 %v1951_v1  ;;  %v1940_v4 = vmul.f32 %v1936_v40, %v1926_v0 }
0x119a   :  { %v1962_v12 = vmul.f32 %v1958_v31, %v1930_v37 }
0x119b   :  { %v1944_v6 = vmul.f32 %v1940_v4, %v1926_v0 }
0x119c   :  { %v1927_v7 = vpop.f32.mrf.mxu3 }
0x119d   :  { %v1948_v8 = vadd.f32 %v1944_v6, %v1926_v0  ;;  %v1928_v45 = vadd.f32 %v2820_v43, %v1927_v7  ;;  %v2761_v7 = vld [vmem:[%s3934_s19 + $0x8] sm:$0xff] }
0x119e   :  { %2179 = vmatpush.bf16.msra.mxu1 %v2761_v7 }
0x119f   :  { %v2934_v9 = vpop.eup %2933  ;;  %v1937_v28 = vmul.f32 0.044715, %v1928_v45  ;;  %v1952_v34 = vmul.f32 0.7978846, %v1948_v8  ;;  %v1933_v23 = vmul.f32 0.5, %v1928_v45 }
0x11a0   :  { %v1959_v10 = vadd.f32 1.0, %v2934_v9  ;;  %v2760_v9 = vld [vmem:[%s3934_s19] sm:$0xff]  ;;  %s2552_s19 = scalar_lea.vmem [#allocation2], %s3872_s16 }
0x11a1   :  { %v1941_v11 = vmul.f32 %v1937_v28, %v1928_v45  ;;  %2935 = vtanh.f32 %v1952_v34 }
0x11a2   :  { %v1963_v41 = vmul.f32 %v1959_v10, %v1931_v19  ;;  %2180 = vmatpush.bf16.msra.mxu1 %v2760_v9 }
0x11a3   :  { %v1945_v39 = vmul.f32 %v1941_v11, %v1928_v45 }
0x11a4   :  { %v1975_v49 = vpack.c.bf16 %v1963_v41, %v1962_v12 }
0x11a5   :  { %v1949_v15 = vadd.f32 %v1945_v39, %v1928_v45 }
0x11a6   :  { %2708 = vmatmul.msk.bf16.vlgmr.msrb.gmra.mxu0 %vm1047_vm2, %v1975_v49 }
0x11a7   :  { %v1953_v18 = vmul.f32 0.7978846, %v1949_v15  ;;  %v2936_v60 = vpop.eup %2935 }
0x11a8   :  { %v1960_v20 = vadd.f32 1.0, %v2936_v60 }
0x11a9   :  { %2937 = vtanh.f32 %v1953_v18 }
0x11aa   :  { %v1964_v25 = vmul.f32 %v1960_v20, %v1932_v61 }
0x11af   :  { %v2938_v21 = vpop.eup %2937 }
0x11b0   :  { %v1961_v3 = vadd.f32 1.0, %v2938_v21  ;;  %v2822_v21 = vld [vmem:[%s3932_s17 + $0x1] ss:$0 sm:$0xff] }
0x11b2   :  { %v1965_v36 = vmul.f32 %v1961_v3, %v1933_v23  ;;  %v2823_v3 = vld [vmem:[%s3933_s18 + $0x1] ss:$0 sm:$0xff]  ;;  %s2526_s18 = sshll.u32 %s3937_s22, 4  ;;  %s3067_s22 = smov [#allocation8]   ;;  %s2527_s18 = int_to_ptr.hbm [resolvable:$true] %s2526_s18 }
0x11b3   :  { %s2513_s11 = sshll.u32 %s3067_s22, 4  ;;  %s2514_s11 = int_to_ptr.vmem [resolvable:$true] %s2513_s11 }
0x11b4   :  { %v1976_v38 = vpack.c.bf16 %v1965_v36, %v1964_v25  ;;  %v3797_v36 = vld [vmem:[%s3956_s13 + $0x8] sm:$0xff] }
0x11b6   :  { %2709 = vmatmul.msk.bf16.gmra.mxu0 %vm1047_vm2, %v1976_v38 }
0x1223   :  { %v2021_v32 = vpop.f32.mrf.mxu0 }
0x1224   :  { %v2022_v24 = vadd.f32 %v2821_v27, %v2021_v32  ;;  %v3064_v32 = vmov 0  }
0x1225   :  { %2804 = vset.pattern.permute.xlu1 %v3064_v32  ;;  %2803 = vset.pattern.permute.xlu0 %v3064_v32 }
0x1226   :  { %v2031_v53 = vadd.f32 %v2022_v24, %v3715_v22  ;;  %2805 = vset.pattern.permute.xlu2 %v3064_v32  ;;  %v2240_v32 = vlaneseq }
0x1228   :  { %v2039_v33 = vsel %vm111_vm0, %v2031_v53, 0.0 }
0x1229   :  { %2040 = vadd.xlane.f32.xlu0 %v2039_v33 }
0x122b   :  { %v2023_v55 = vpop.f32.mrf.mxu0 }
0x122c   :  { %v2024_v50 = vadd.f32 %v2821_v27, %v2023_v55 }
0x122e   :  { %v2032_v16 = vadd.f32 %v2024_v50, %v3717_v2 }
0x1230   :  { %v2042_v30 = vsel %vm111_vm0, %v2032_v16, 0.0 }
0x1231   :  { %2043 = vadd.xlane.f32.xlu1 %v2042_v30 }
0x1233   :  { %v2026_v17 = vpop.f32.mrf.mxu0 }
0x1234   :  { %v2027_v42 = vadd.f32 %v2821_v27, %v2026_v17 }
0x1236   :  { %v2033_v43 = vadd.f32 %v2027_v42, %v3724_v35 }
0x1238   :  { %v2045_v44 = vsel %vm111_vm0, %v2033_v43, 0.0 }
0x1239   :  { %2046 = vadd.xlane.f32.xlu2 %v2045_v44 }
0x123b   :  { %v2028_v29 = vpop.f32.mrf.mxu0 }
0x123c   :  { %v2029_v47 = vadd.f32 %v2821_v27, %v2028_v29 }
0x123e   :  { %v2034_v22 = vadd.f32 %v2029_v47, %v3726_v46 }
0x1240   :  { %v2048_v48 = vsel %vm111_vm0, %v2034_v22, 0.0 }
0x1241   :  { %2049 = vadd.xlane.f32.xlu0 %v2048_v48 }
0x129c   :  { %v2041_v5 = vpop.xlane.xlu0 %2040 }
0x129d   :  { %v2051_v2 = vmul.f32 %v2041_v5, %v3205_v14 }
0x129f   :  { %v2055_v51 = vsub.f32 %v2031_v53, %v2051_v2 }
0x12a1   :  { %v2059_v54 = vmul.f32 %v2055_v51, %v2055_v51 }
0x12a3   :  { %v2063_v56 = vsel %vm111_vm0, %v2059_v54, 0.0 }
0x12a4   :  { %v2044_v57 = vpop.xlane.xlu1 %2043  ;;  %2064 = vadd.xlane.f32.xlu1 %v2063_v56 }
0x12a5   :  { %v2052_v35 = vmul.f32 %v2044_v57, %v3205_v14 }
0x12a7   :  { %v3762_v58 = vsub.f32 %v2032_v16, %v2052_v35 }
0x12a9   :  { %v2060_v62 = vmul.f32 %v3762_v58, %v3762_v58 }
0x12ab   :  { %v2066_v46 = vsel %vm111_vm0, %v2060_v62, 0.0 }
0x12ac   :  { %v2047_v52 = vpop.xlane.xlu2 %2046  ;;  %2067 = vadd.xlane.f32.xlu2 %v2066_v46 }
0x12ad   :  { %v2053_v63 = vmul.f32 %v2047_v52, %v3205_v14 }
0x12af   :  { %v3768_v59 = vsub.f32 %v2033_v43, %v2053_v63 }
0x12b1   :  { %v2061_v13 = vmul.f32 %v3768_v59, %v3768_v59 }
0x12b3   :  { %v2069_v0 = vsel %vm111_vm0, %v2061_v13, 0.0 }
0x12b4   :  { %2070 = vadd.xlane.f32.xlu0 %v2069_v0  ;;  %v2050_v1 = vpop.xlane.xlu0 %2049 }
0x12b5   :  { %v2054_v40 = vmul.f32 %v2050_v1, %v3205_v14 }
0x12b7   :  { %v3774_v4 = vsub.f32 %v2034_v22, %v2054_v40  ;;  %v2824_v40 = vld [vmem:[%s3935_s20] ss:$0 sm:$0xff] }
0x12b9   :  { %v2062_v26 = vmul.f32 %v3774_v4, %v3774_v4 }
0x12bb   :  { %v2072_v6 = vsel %vm111_vm0, %v2062_v26, 0.0 }
0x12bc   :  { %2073 = vadd.xlane.f32.xlu1 %v2072_v6 }
0x12d5   :  { %2246 = vperm.xlu1 %2804, %v3797_v36  }
0x1317   :  { %v2065_v8 = vpop.xlane.xlu1 %2064 }
0x1318   :  { %v2075_v45 = vmul.f32 %v2065_v8, %v3205_v14 }
0x131a   :  { %v2079_v31 = vadd.f32 1e-12, %v2075_v45 }
0x131c   :  { %2939 = vrsqrt.f32 %v2079_v31  ;;  %vm2089_vm3 = vweird.f32 %v2079_v31 }
0x131f   :  { %v2068_v28 = vpop.xlane.xlu2 %2067 }
0x1320   :  { %v2076_v37 = vmul.f32 %v2068_v28, %v3205_v14 }
0x1322   :  { %v2940_v19 = vpop.eup %2939  ;;  %v2080_v10 = vadd.f32 1e-12, %v2076_v37 }
0x1323   :  { %v2084_v34 = vmul.f32 %v2940_v19, %v2079_v31  ;;  %vm2090_vm13 = vweird.f32 %v2940_v19 }
0x1324   :  { %2941 = vrsqrt.f32 %v2080_v10  ;;  %vm2091_vm14 = vmor %vm2089_vm3, %vm2090_vm13  ;;  %vm2099_vm1 = vweird.f32 %v2080_v10  ;;  %vm2315_vm13 = vcmask 7168  }
0x1325   :  { %v2085_v11 = vmul.f32 %v2940_v19, %v2084_v34  ;;  %v2192_v34 = vld [vmem:[%s3956_s13] sm:$0xff] }
0x1326   :  { %vm2278_vm11 = vcmp.ne.s32.totalorder %v2192_v34, 4294967196 }
0x1327   :  { %v2086_v12 = vmul.f32 0.5, %v2085_v11  ;;  %v2071_v41 = vpop.xlane.xlu0 %2070  ;;  %v2195_v11 = vld [vmem:[%s3956_s13 + $0x18] sm:$0xff] }
0x1328   :  { %v2077_v39 = vmul.f32 %v2071_v41, %v3205_v14  ;;  %vm2281_vm3 = vcmp.ne.s32.totalorder %v2195_v11, 4294967196 }
0x1329   :  { %v2087_v49 = vsub.f32 1.5, %v2086_v12  ;;  %v2194_v12 = vld [vmem:[%s3956_s13 + $0x10] sm:$0xff] }
0x132a   :  { %v2942_v15 = vpop.eup %2941  ;;  %v2081_v18 = vadd.f32 1e-12, %v2077_v39  ;;  %vm2280_vm12 = vcmp.ne.s32.totalorder %v2194_v12, 4294967196 }
0x132b   :  { %v2088_v60 = vmul.f32 %v2940_v19, %v2087_v49  ;;  %v2094_v20 = vmul.f32 %v2942_v15, %v2080_v10  ;;  %vm2100_vm15 = vweird.f32 %v2942_v15 }
0x132c   :  { %2943 = vrsqrt.f32 %v2081_v18  ;;  %vm2101_vm4 = vmor %vm2099_vm1, %vm2100_vm15  ;;  %vm2109_vm6 = vweird.f32 %v2081_v18 }
0x132d   :  { %v2092_v61 = vsel %vm2091_vm14, %v2940_v19, %v2088_v60  ;;  %v2095_v23 = vmul.f32 %v2942_v15, %v2094_v20 }
0x132e   :  { %v2123_v25 = vmul.f32 %v2092_v61, %v2055_v51 }
0x132f   :  { %v2096_v38 = vmul.f32 0.5, %v2095_v23  ;;  %v2074_v27 = vpop.xlane.xlu1 %2073 }
0x1330   :  { %v2130_v24 = vmul.f32 %v2822_v21, %v2123_v25  ;;  %v2078_v53 = vmul.f32 %v2074_v27, %v3205_v14 }
0x1331   :  { %v2097_v33 = vsub.f32 1.5, %v2096_v38 }
0x1332   :  { %v2944_v55 = vpop.eup %2943  ;;  %v2137_v50 = vadd.f32 %v2823_v3, %v2130_v24  ;;  %v2082_v16 = vadd.f32 1e-12, %v2078_v53 }
0x1333   :  { %v2098_v30 = vmul.f32 %v2942_v15, %v2097_v33  ;;  %v2104_v17 = vmul.f32 %v2944_v55, %v2081_v18  ;;  %vm2110_vm5 = vweird.f32 %v2944_v55  ;;  %v2241_v33 = vand.u32 127, %v2240_v32 }
0x1334   :  { %2141 = vst.msk [vmem:[#allocation2] sm:$0xff] %vm111_vm0, %v2137_v50  ;;  %2945 = vrsqrt.f32 %v2082_v16  ;;  %vm2111_vm7 = vmor %vm2109_vm6, %vm2110_vm5  ;;  %vm2119_vm9 = vweird.f32 %v2082_v16  ;;  %vm2452_vm5 = vcmask 253952  }
0x1335   :  { %v2102_v42 = vsel %vm2101_vm4, %v2942_v15, %v2098_v30  ;;  %v2105_v43 = vmul.f32 %v2944_v55, %v2104_v17 }
0x1336   :  { %v2124_v44 = vmul.f32 %v2102_v42, %v3762_v58 }
0x1337   :  { %v2106_v14 = vmul.f32 0.5, %v2105_v43 }
0x1338   :  { %v2131_v29 = vmul.f32 %v2822_v21, %v2124_v44 }
0x1339   :  { %v2107_v47 = vsub.f32 1.5, %v2106_v14 }
0x133a   :  { %v2946_v22 = vpop.eup %2945  ;;  %v2138_v48 = vadd.f32 %v2823_v3, %v2131_v29 }
0x133b   :  { %v2108_v5 = vmul.f32 %v2944_v55, %v2107_v47  ;;  %v2114_v2 = vmul.f32 %v2946_v22, %v2082_v16  ;;  %vm2120_vm8 = vweird.f32 %v2946_v22 }
0x133c   :  { %2142 = vst.msk [vmem:[#allocation2 + $0x8] sm:$0xff] %vm111_vm0, %v2138_v48  ;;  %v2149_v51 = vpack.c.bf16 %v2138_v48, %v2137_v50  ;;  %vm2121_vm10 = vmor %vm2119_vm9, %vm2120_vm8  ;;  %v3065_v50 = vmov 0.0  }
0x133d   :  { %v2112_v54 = vsel %vm2111_vm7, %v2944_v55, %v2108_v5  ;;  %v2115_v56 = vmul.f32 %v2946_v22, %v2114_v2  ;;  %v3838_v30 = vsel %vm2278_vm11, 1.0, %v3065_v50  ;;  %v3840_v17 = vsel %vm2280_vm12, 1.0, %v3065_v50 }
0x133e   :  { %v2125_v57 = vmul.f32 %v2112_v54, %v3768_v59  ;;  %2720 = vmatmul.msk.bf16.vlgmr.msra.gmra.mxu1 %vm111_vm0, %v2149_v51  ;;  %v2337_v29 = vsel %vm2315_vm13, %v3838_v30, 0.0  ;;  %v2335_v47 = vmul.f32 0.0, %v3840_v17  ;;  %v3853_v48 = vsel %vm2281_vm3, 1.0, %v3065_v50 }
0x133f   :  { %v2116_v35 = vmul.f32 0.5, %v2115_v56  ;;  %v2336_v54 = vmul.f32 0.0, %v3853_v48 }
0x1340   :  { %v2132_v58 = vmul.f32 %v2822_v21, %v2125_v57  ;;  %v2340_v56 = vsel %vm2315_vm13, %v2335_v47, 0.0 }
0x1341   :  { %v2117_v62 = vsub.f32 1.5, %v2116_v35 }
0x1342   :  { %v2139_v46 = vadd.f32 %v2823_v3, %v2132_v58 }
0x1343   :  { %v2118_v52 = vmul.f32 %v2946_v22, %v2117_v62 }
0x1344   :  { %2143 = vst.msk [vmem:[#allocation2 + $0x10] sm:$0xff] %vm111_vm0, %v2139_v46 }
0x1345   :  { %v2122_v63 = vsel %vm2121_vm10, %v2946_v22, %v2118_v52 }
0x1346   :  { %v2126_v13 = vmul.f32 %v2122_v63, %v3774_v4 }
0x1347   :  { %v3826_v15 = vpop.permute.xlu1 %2246 }
0x1348   :  { %v2133_v0 = vmul.f32 %v2822_v21, %v2126_v13  ;;  %vm2255_vm1 = vcmp.eq.s32.totalorder %v2241_v33, %v3826_v15 }
0x134a   :  { %v2140_v1 = vadd.f32 %v2823_v3, %v2133_v0 }
0x134c   :  { %2144 = vst.msk [vmem:[#allocation2 + $0x18] sm:$0xff] %vm111_vm0, %v2140_v1  ;;  %v2150_v59 = vpack.c.bf16 %v2140_v1, %v2139_v46  ;;  %v2342_v46 = vsel %vm2315_vm13, %v2336_v54, 0.0 }
0x134e   :  { %2721 = vmatmul.msk.bf16.gmra.mxu1 %vm111_vm0, %v2150_v59  ;;  %vm2279_vm0 = vcmp.ne.s32.totalorder %v3797_v36, 4294967196 }
0x134f   :  { %v3836_v16 = vsel %vm2279_vm0, 1.0, %v3065_v50 }
0x1350   :  { %v2338_v14 = vsel %vm2315_vm13, %v3836_v16, 0.0 }
0x1351   :  { %v2339_v2 = vadd.f32 %v2338_v14, %v2337_v29 }
0x1353   :  { %v2341_v62 = vadd.f32 %v2340_v56, %v2339_v2  ;;  %v2440_v63 = vld [vmem:[%s2439_s24] sm:$0x1]  ;;  %v2729_v59 = vld [vmem:[%s2544_s28 + $0x10] sm:$0x1] }
0x1354   :  { %v2442_v13 = vld [vmem:[%s2441_s8] sm:$0x1] }
0x1355   :  { %v2343_v0 = vadd.f32 %v2342_v46, %v2341_v62  ;;  %v2736_v46 = vld [vmem:[%s2550_s9 + $0x8] sm:$0x1] }
0x13bb   :  { %v2182_v26 = vpop.f32.mrf.mxu1 }
0x13bc   :  { %v2183_v6 = vadd.f32 %v2824_v40, %v2182_v26 }
0x13be   :  { %v2196_v7 = vsel %vm1047_vm2, %v2183_v6, -inf }
0x13bf   :  { %2197 = vmax.xlane.f32.xlu2 %v2196_v7 }
0x13c3   :  { %v2184_v8 = vpop.f32.mrf.mxu1 }
0x13c4   :  { %v2185_v45 = vadd.f32 %v2824_v40, %v2184_v8  ;;  %v2449_v8 = vmul.f32 %v2729_v59, %v2440_v63  ;;  %v2738_v63 = vld [vmem:[%s2554_s5 + $0x18] sm:$0x1]  ;;  %v2389_v59 = vsel %vm2315_vm13, %v3853_v48, 0.0 }
0x13c6   :  { %v2199_v4 = vsel %vm1047_vm2, %v2185_v45, -inf }
0x13c7   :  { %2200 = vmax.xlane.f32.xlu0 %v2199_v4 }
0x13cb   :  { %v2187_v31 = vpop.f32.mrf.mxu1 }
0x13cc   :  { %v2188_v9 = vadd.f32 %v2824_v40, %v2187_v31 }
0x13ce   :  { %v2202_v28 = vsel %vm1047_vm2, %v2188_v9, -inf }
0x13cf   :  { %2203 = vmax.xlane.f32.xlu1 %v2202_v28 }
0x13d3   :  { %v2189_v37 = vpop.f32.mrf.mxu1 }
0x13d4   :  { %v2190_v19 = vadd.f32 %v2824_v40, %v2189_v37  ;;  %v2730_v40 = vld [vmem:[%s2546_s0 + $0x10] sm:$0x1] }
0x13d6   :  { %v2205_v10 = vsel %vm1047_vm2, %v2190_v19, -inf }
0x13d7   :  { %2206 = vmax.xlane.f32.xlu2 %v2205_v10 }
0x13db   :  { %2243 = vperm.xlu0 %2803, %v2192_v34  }
0x13e8   :  { %2252 = vperm.xlu1 %2804, %v2195_v11  }
0x13ef   :  { %2249 = vperm.xlu2 %2805, %v2194_v12  }
0x1432   :  { %v2198_v41 = vpop.xlane.xlu2 %2197 }
0x1433   :  { %v2208_v39 = vsub.f32 %v2183_v6, %v2198_v41 }
0x1435   :  { %v2212_v49 = vmul.f32 1.442695, %v2208_v39 }
0x1437   :  { %2947 = vpow2.f32 %v2212_v49 }
0x143a   :  { %v2201_v18 = vpop.xlane.xlu0 %2200 }
0x143b   :  { %v3828_v60 = vsub.f32 %v2185_v45, %v2201_v18  ;;  %v2450_v45 = vmul.f32 %v2730_v40, %v2442_v13 }
0x143d   :  { %v2948_v20 = vpop.eup %2947  ;;  %v2214_v21 = vmul.f32 1.442695, %v3828_v60  ;;  %v2259_v1 = vsel %vm2255_vm1, %v3828_v60, 0.0  ;;  %v2451_v4 = vadd.f32 %v2450_v45, %v2449_v8 }
0x143e   :  { %v2220_v61 = vsel %vm1047_vm2, %v2948_v20, 0.0  ;;  %v2265_v7 = vsel %vm1047_vm2, %v2259_v1, 0.0 }
0x143f   :  { %2949 = vpow2.f32 %v2214_v21  ;;  %2221 = vadd.xlane.f32.xlu2 %v2220_v61  ;;  %v2453_v31 = vsel %vm2452_vm5, %v2451_v4, 0.0 }
0x1442   :  { %v2204_v23 = vpop.xlane.xlu1 %2203 }
0x1443   :  { %v2210_v3 = vsub.f32 %v2188_v9, %v2204_v23  ;;  %v2380_v23 = vmul.f32 0.0, %v3838_v30 }
0x1445   :  { %v2950_v25 = vpop.eup %2949  ;;  %v2216_v38 = vmul.f32 1.442695, %v2210_v3 }
0x1446   :  { %v2223_v27 = vsel %vm1047_vm2, %v2950_v25, 0.0 }
0x1447   :  { %2951 = vpow2.f32 %v2216_v38  ;;  %2224 = vadd.xlane.f32.xlu1 %v2223_v27  ;;  %v2381_v38 = vmul.f32 0.0, %v3836_v16 }
0x144a   :  { %v2207_v24 = vpop.xlane.xlu2 %2206 }
0x144b   :  { %v2211_v53 = vsub.f32 %v2190_v19, %v2207_v24 }
0x144d   :  { %v2952_v55 = vpop.eup %2951  ;;  %v2218_v42 = vmul.f32 1.442695, %v2211_v53  ;;  %v2244_v43 = vpop.permute.xlu0 %2243 }
0x144e   :  { %vm2254_vm14 = vcmp.eq.s32.totalorder %v2241_v33, %v2244_v43  ;;  %v2226_v36 = vsel %vm1047_vm2, %v2952_v55, 0.0 }
0x144f   :  { %2953 = vpow2.f32 %v2218_v42  ;;  %2227 = vadd.xlane.f32.xlu0 %v2226_v36  ;;  %v2258_v44 = vsel %vm2254_vm14, %v2208_v39, 0.0  ;;  %v2384_v42 = vsel %vm2315_vm13, %v2380_v23, 0.0 }
0x1450   :  { %v2262_v22 = vsel %vm1047_vm2, %v2258_v44, 0.0  ;;  %v2385_v44 = vsel %vm2315_vm13, %v2381_v38, 0.0 }
0x1451   :  { %2263 = vadd.xlane.f32.xlu1 %v2262_v22  ;;  %v2386_v54 = vadd.f32 %v2385_v44, %v2384_v42 }
0x1452   :  { %v2250_v5 = vpop.permute.xlu2 %2249 }
0x1453   :  { %vm2256_vm15 = vcmp.eq.s32.totalorder %v2241_v33, %v2250_v5 }
0x1454   :  { %v2260_v51 = vsel %vm2256_vm15, %v2210_v3, 0.0 }
0x1455   :  { %v2954_v57 = vpop.eup %2953  ;;  %v2268_v35 = vsel %vm1047_vm2, %v2260_v51, 0.0 }
0x1456   :  { %v2229_v58 = vsel %vm1047_vm2, %v2954_v57, 0.0  ;;  %v2387_v57 = vsel %vm2315_vm13, %v3840_v17, 0.0 }
0x1457   :  { %2230 = vadd.xlane.f32.xlu2 %v2229_v58  ;;  %2269 = vadd.xlane.f32.xlu0 %v2268_v35  ;;  %v2735_v35 = vld [vmem:[%s2548_s1 + $0x8] sm:$0x1]  ;;  %v2388_v1 = vadd.f32 %v2387_v57, %v2386_v54 }
0x145a   :  { %v2253_v52 = vpop.permute.xlu1 %2252 }
0x145b   :  { %vm2257_vm4 = vcmp.eq.s32.totalorder %v2241_v33, %v2253_v52  ;;  %v2737_v52 = vld [vmem:[%s2552_s19 + $0x18] sm:$0x1] }
0x145c   :  { %v2261_v26 = vsel %vm2257_vm4, %v2211_v53, 0.0  ;;  %v2486_v40 = vmul.f32 %v2737_v52, %v2735_v35 }
0x145d   :  { %v2271_v6 = vsel %vm1047_vm2, %v2261_v26, 0.0  ;;  %v2390_v26 = vadd.f32 %v2389_v59, %v2388_v1  ;;  %vm2433_vm2 = vcmask 0  }
0x145e   :  { %2272 = vadd.xlane.f32.xlu1 %v2271_v6 }
0x145f   :  { %2344 = vadd.xlane.f32.xlu0 %v2343_v0  ;;  %2266 = vadd.xlane.f32.xlu2 %v2265_v7 }
0x1467   :  { %2454 = vadd.xlane.f32.xlu0 %v2453_v31 }
0x14b2   :  { %v2222_v9 = vpop.xlane.xlu2 %2221 }
0x14b3   :  { %2955 = vlog2.f32 %v2222_v9 }
0x14b9   :  { %v2956_v19 = vpop.eup %2955 }
0x14ba   :  { %v2225_v28 = vpop.xlane.xlu1 %2224  ;;  %v2233_v39 = vmul.f32 0.6931472, %v2956_v19 }
0x14c2   :  { %v2228_v37 = vpop.xlane.xlu0 %2227 }
0x14c3   :  { %2957 = vlog2.f32 %v2228_v37 }
0x14c4   :  { %2959 = vlog2.f32 %v2225_v28  ;;  %v2264_v34 = vpop.xlane.xlu1 %2263 }
0x14c5   :  { %v2274_v49 = vsub.f32 %v2233_v39, %v2264_v34 }
0x14c7   :  { %v2307_v21 = vmul.f32 %v3838_v30, %v2274_v49 }
0x14c9   :  { %v2958_v10 = vpop.eup %2957  ;;  %v2359_v53 = vmul.f32 0.0, %v2307_v21  ;;  %v2316_v43 = vsel %vm2315_vm13, %v2307_v21, 0.0 }
0x14ca   :  { %v2237_v11 = vmul.f32 0.6931472, %v2958_v10  ;;  %v2231_v12 = vpop.xlane.xlu2 %2230  ;;  %v2270_v41 = vpop.xlane.xlu0 %2269 }
0x14cb   :  { %2961 = vlog2.f32 %v2231_v12  ;;  %v2960_v18 = vpop.eup %2959 }
0x14cc   :  { %v2276_v15 = vsub.f32 %v2237_v11, %v2270_v41  ;;  %v2235_v20 = vmul.f32 0.6931472, %v2960_v18 }
0x14ce   :  { %v2309_v61 = vmul.f32 %v3840_v17, %v2276_v15  ;;  %v2487_v17 = vmul.f32 %v2738_v63, %v2736_v46 }
0x14d0   :  { %v2313_v33 = vmul.f32 0.0, %v2309_v61  ;;  %v2366_v56 = vsel %vm2315_vm13, %v2309_v61, 0.0  ;;  %v2488_v6 = vadd.f32 %v2487_v17, %v2486_v40 }
0x14d1   :  { %v2962_v60 = vpop.eup %2961  ;;  %v2273_v27 = vpop.xlane.xlu1 %2272 }
0x14d2   :  { %v2239_v3 = vmul.f32 0.6931472, %v2962_v60  ;;  %v2267_v25 = vpop.xlane.xlu2 %2266  ;;  %v2319_v47 = vsel %vm2315_vm13, %v2313_v33, 0.0  ;;  %v2489_v7 = vsel %vm2452_vm5, %v2488_v6, 0.0  ;;  %v2345_v8 = vpop.xlane.xlu0 %2344 }
0x14d3   :  { %v2275_v32 = vsub.f32 %v2235_v20, %v2267_v25  ;;  %v2346_v45 = vrot.slane %v2345_v8, 4 }
0x14d4   :  { %v2277_v24 = vsub.f32 %v2239_v3, %v2273_v27 }
0x14d5   :  { %v2308_v55 = vmul.f32 %v3836_v16, %v2275_v32  ;;  %v2363_v16 = vsel %vm2315_vm13, %v2359_v53, 0.0  ;;  %v2347_v31 = vadd.f32 %v2346_v45, %v2345_v8 }
0x14d6   :  { %v2310_v50 = vmul.f32 %v3853_v48, %v2277_v24 }
0x14d7   :  { %v2317_v30 = vsel %vm2315_vm13, %v2308_v55, 0.0  ;;  %v2360_v36 = vmul.f32 0.0, %v2308_v55  ;;  %v2348_v28 = vrot.slane %v2347_v31, 2 }
0x14d8   :  { %v2314_v14 = vmul.f32 0.0, %v2310_v50  ;;  %v2318_v29 = vadd.f32 %v2317_v30, %v2316_v43  ;;  %v2368_v13 = vsel %vm2315_vm13, %v2310_v50, 0.0 }
0x14d9   :  { %v2364_v22 = vsel %vm2315_vm13, %v2360_v36, 0.0  ;;  %v2349_v12 = vadd.f32 %v2348_v28, %v2347_v31 }
0x14da   :  { %v2320_v5 = vadd.f32 %v2319_v47, %v2318_v29  ;;  %v2321_v2 = vsel %vm2315_vm13, %v2314_v14, 0.0  ;;  %v2365_v51 = vadd.f32 %v2364_v22, %v2363_v16  ;;  %v2455_v4 = vpop.xlane.xlu0 %2454  ;;  %v2458_v47 = vstv %s2456_s10 }
0x14db   :  { %v2461_v9 = vand.u32 2147483647, %v2455_v4  ;;  %v2350_v60 = vrot.slane %v2349_v12, 1  ;;  %v2494_v16 = vstv %s2739_s3 }
0x14dc   :  { %v2322_v58 = vadd.f32 %v2321_v2, %v2320_v5  ;;  %v2367_v62 = vadd.f32 %v2366_v56, %v2365_v51  ;;  %v2457_v5 = vmax.f32 %v2455_v4, 0.0  ;;  %v2459_v2 = vmul.f32 %v2458_v47, %v2455_v4 }
0x14dd   :  { %v2462_v19 = vsub.f32 0.0, %v2461_v9  ;;  %v2351_v27 = vadd.f32 %v2350_v60, %v2349_v12 }
0x14de   :  { %2323 = vadd.xlane.f32.xlu2 %v2322_v58  ;;  %v2369_v0 = vadd.f32 %v2368_v13, %v2367_v62  ;;  %v2460_v35 = vsub.f32 %v2457_v5, %v2459_v2 }
0x14df   :  { %v2463_v41 = vmul.f32 1.442695, %v2462_v19 }
0x14e0   :  { %2370 = vadd.xlane.f32.xlu1 %v2369_v0 }
0x14e1   :  { %2963 = vpow2.f32 %v2463_v41 }
0x14e6   :  { %2391 = vadd.xlane.f32.xlu2 %v2390_v26 }
0x14e7   :  { %v2964_v50 = vpop.eup %2963 }
0x14e8   :  { %2490 = vadd.xlane.f32.xlu1 %v2489_v7  ;;  %v2465_v36 = vadd.f32 1.0, %v2964_v50 }
0x1551   :  { %v2324_v37 = vpop.xlane.xlu2 %2323 }
0x1552   :  { %v2325_v10 = vrot.slane %v2324_v37, 4 }
0x1553   :  { %v2371_v34 = vpop.xlane.xlu1 %2370 }
0x1554   :  { %v2326_v48 = vadd.f32 %v2325_v10, %v2324_v37  ;;  %v2372_v11 = vrot.slane %v2371_v34, 4 }
0x1556   :  { %v2327_v39 = vrot.slane %v2326_v48, 2  ;;  %v2373_v49 = vadd.f32 %v2372_v11, %v2371_v34 }
0x1558   :  { %v2374_v15 = vrot.slane %v2373_v49, 2  ;;  %v2328_v18 = vadd.f32 %v2327_v39, %v2326_v48 }
0x1559   :  { %v2392_v20 = vpop.xlane.xlu2 %2391 }
0x155a   :  { %v2393_v21 = vrot.slane %v2392_v20, 4  ;;  %v2329_v61 = vrot.slane %v2328_v18, 1  ;;  %v2375_v23 = vadd.f32 %v2374_v15, %v2373_v49 }
0x155b   :  { %v2491_v3 = vpop.xlane.xlu1 %2490 }
0x155c   :  { %v2394_v25 = vadd.f32 %v2393_v21, %v2392_v20  ;;  %v2497_v38 = vand.u32 2147483647, %v2491_v3  ;;  %v2330_v32 = vadd.f32 %v2329_v61, %v2328_v18  ;;  %v2376_v24 = vrot.slane %v2375_v23, 1 }
0x155d   :  { %v2493_v51 = vmax.f32 %v2491_v3, 0.0  ;;  %v2495_v54 = vmul.f32 %v2494_v16, %v2491_v3 }
0x155e   :  { %v2395_v53 = vrot.slane %v2394_v25, 2  ;;  %v2498_v33 = vsub.f32 0.0, %v2497_v38  ;;  %2762 = vpush %v2330_v32  ;;  %v2377_v55 = vadd.f32 %v2376_v24, %v2375_v23 }
0x155f   :  { %2764 = vpush %v2351_v27  ;;  %v2496_v58 = vsub.f32 %v2493_v51, %v2495_v54 }
0x1560   :  { %v2396_v42 = vadd.f32 %v2395_v53, %v2394_v25  ;;  %v2499_v43 = vmul.f32 1.442695, %v2498_v33  ;;  %2766 = vpush %v2377_v55 }
0x1562   :  { %2965 = vpow2.f32 %v2499_v43  ;;  %v2397_v30 = vrot.slane %v2396_v42, 1 }
0x1563   :  { %2967 = vlog2.f32 %v2465_v36 }
0x1564   :  { %v2398_v44 = vadd.f32 %v2397_v30, %v2396_v42 }
0x1566   :  { %2768 = vpush %v2398_v44 }
0x1568   :  { %v2966_v14 = vpop.eup %2965 }
0x1569   :  { %v2501_v29 = vadd.f32 1.0, %v2966_v14  ;;  %v2968_v22 = vpop.eup %2967 }
0x156a   :  { %v2467_v56 = vmul.f32 0.6931472, %v2968_v22 }
0x156b   :  { %2969 = vlog2.f32 %v2501_v29 }
0x156c   :  { %v2468_v46 = vadd.f32 %v2467_v56, %v2460_v35 }
0x1571   :  { %v2970_v57 = vpop.eup %2969 }
0x1572   :  { %v2503_v62 = vmul.f32 0.6931472, %v2970_v57 }
0x1574   :  { %v2504_v52 = vadd.f32 %v2503_v62, %v2496_v58 }
0x1576   :  { %v2505_v63 = vadd.f32 %v2504_v52, %v2468_v46 }
0x1578   :  { %v2506_v13 = vmul.f32 0.5, %v2505_v63 }
0x157a   :  { %2507 = vst.msk [vmem:[#allocation9] sm:$0x1] %vm2433_vm2, %v2506_v13 }
0x157b   :  { %2529 = dma.vmem_to_hbm [thread:$0]  %s2525_s30, 16, %s2527_s18, [#allocation10]  }
0x158f   :  { %s3905_s20 = spop %2762 }
0x1590   :  { %s2765_s4 = spop %2764  ;;  %v2332_v49 = vstv %s3905_s20 }
0x1591   :  { %v2353_v0 = vstv %s2765_s4  ;;  %s3907_s6 = spop %2766 }
0x1592   :  { %v2354_v1 = vmax.f32 %v2353_v0, 1.0  ;;  %v2379_v15 = vstv %s3907_s6 }
0x1594   :  { %2971 = vrcp.f32 %v2354_v1  ;;  %v2413_v31 = vand.u32 2147483648, %v2354_v1  ;;  %vm2407_vm7 = vweird.f32 %v2354_v1  ;;  %v2411_v28 = vand.u32 2147483647, %v2354_v1 }
0x1596   :  { %v2414_v48 = vor.u32 1.1754944e-38, %v2413_v31  ;;  %vm2412_vm10 = vcmp.eq.f32.partialorder %v2411_v28, 8.507059e+37 }
0x1597   :  { %s2769_s7 = spop %2768 }
0x1598   :  { %v2400_v59 = vstv %s2769_s7 }
0x1599   :  { %v2401_v40 = vmax.f32 %v2400_v59, 1.0 }
0x159a   :  { %v2972_v17 = vpop.eup %2971 }
0x159b   :  { %2973 = vrcp.f32 %v2401_v40  ;;  %v2403_v26 = vmul.f32 %v2972_v17, %v2354_v1  ;;  %vm2408_vm6 = vweird.f32 %v2972_v17  ;;  %v2428_v37 = vand.u32 2147483648, %v2401_v40 }
0x159c   :  { %vm2409_vm8 = vmor %vm2407_vm7, %vm2408_vm6  ;;  %v2426_v34 = vand.u32 2147483647, %v2401_v40  ;;  %vm2422_vm0 = vweird.f32 %v2401_v40 }
0x159d   :  { %v2404_v6 = vsub.f32 1.0, %v2403_v26  ;;  %v2429_v41 = vor.u32 1.1754944e-38, %v2428_v37 }
0x159e   :  { %vm2427_vm12 = vcmp.eq.f32.partialorder %v2426_v34, 8.507059e+37 }
0x159f   :  { %v2405_v7 = vmul.f32 %v2972_v17, %v2404_v6 }
0x15a1   :  { %v2974_v8 = vpop.eup %2973  ;;  %v2406_v4 = vadd.f32 %v2972_v17, %v2405_v7 }
0x15a2   :  { %v2418_v45 = vmul.f32 %v2974_v8, %v2401_v40  ;;  %vm2423_vm9 = vweird.f32 %v2974_v8 }
0x15a3   :  { %v2410_v10 = vsel %vm2409_vm8, %v2972_v17, %v2406_v4  ;;  %vm2424_vm11 = vmor %vm2422_vm0, %vm2423_vm9 }
0x15a4   :  { %v2419_v9 = vsub.f32 1.0, %v2418_v45  ;;  %v2415_v12 = vsel %vm2412_vm10, %v2414_v48, %v2410_v10 }
0x15a5   :  { %v2416_v60 = vmul.f32 %v2415_v12, %v2332_v49 }
0x15a6   :  { %v2420_v19 = vmul.f32 %v2974_v8, %v2419_v9 }
0x15a8   :  { %v2421_v11 = vadd.f32 %v2974_v8, %v2420_v19 }
0x15aa   :  { %v2425_v39 = vsel %vm2424_vm11, %v2974_v8, %v2421_v11 }
0x15ab   :  { %v2430_v18 = vsel %vm2427_vm12, %v2429_v41, %v2425_v39 }
0x15ac   :  { %v2431_v20 = vmul.f32 %v2430_v18, %v2379_v15 }
0x15ae   :  { %v2432_v21 = vadd.f32 %v2431_v20, %v2416_v60 }
0x15b0   :  { %2434 = vst.msk [vmem:[#allocation8] sm:$0x1] %vm2433_vm2, %v2432_v21 }
0x15b1   :  { %2518 = dma.vmem_to_hbm [thread:$0]  %s2514_s11, 16, %s2516_s26, [#allocation4]  }
0x15b2   :  { %3051 = dma.done.wait [#allocation4], 16  }
0x15b3   :  { %3052 = vsyncadd [#allocation4], 4294967280 }
0x15b4   :  { %3053 = dma.done.wait [#allocation10], 16  }
0x15b5   :  { %3054 = vsyncadd [#allocation10], 4294967280 }
0x15b6   :  { %2538 = vsyncpa [#allocation4], 1 }
0x15b7   :  { %2539 = vsyncpa [#allocation10], 1 }
0x15b8   :  { %2540 = vsyncpa [#allocation5], 1 }
0x15b9   :  { %2541 = vsyncpa [#allocation7], 1 }

</bundles_post_ra>
